<compile_context>
chip_gen: v7x
topology: tpu7x:2x2x1
jax: 0.10.0
libtpu: 0.0.40
codegen_flags: <defaults>
</compile_context>

<pallas_src>
import math

import jax
import jax.numpy as jnp
from jax.experimental import pallas as pl
from jax.experimental.pallas import tpu as pltpu


def _erf_f32(x):
    # Abramowitz & Stegun 7.1.26 rational approximation, |err| <= 1.5e-7.
    # Uses only abs/mul/add/div/exp/select so it always lowers in Mosaic.
    a1 = 0.254829592
    a2 = -0.284496736
    a3 = 1.421413741
    a4 = -1.453152027
    a5 = 1.061405429
    p = 0.3275911
    ax = jnp.abs(x)
    t = 1.0 / (1.0 + p * ax)
    poly = ((((a5 * t + a4) * t + a3) * t + a2) * t + a1) * t
    y = 1.0 - poly * jnp.exp(-ax * ax)
    return jnp.where(x < 0.0, -y, y)


def _gelu_exact(x):
    # Exact GELU (torch nn.GELU default): 0.5 * x * (1 + erf(x / sqrt(2))).
    return 0.5 * x * (1.0 + _erf_f32(x * (1.0 / math.sqrt(2.0))))


def _mlp_kernel(x_ref, w1_ref, b1_ref, w2_ref, b2_ref, out_ref):
    # x_ref: (TM, C_in); weights/biases: full resident blocks.
    x = x_ref[...]
    h = jnp.dot(x, w1_ref[...], preferred_element_type=jnp.float32) + b1_ref[...]
    h = _gelu_exact(h)
    y = jnp.dot(h, w2_ref[...], preferred_element_type=jnp.float32) + b2_ref[...]
    out_ref[...] = y.astype(out_ref.dtype)
    # TODO(synk): nn.Dropout is identity in eval mode / p=0.0; not modeled.


def mlp_pallas(x, w1, b1, w2, b2, *, block_rows=128):
    """x: (..., C_in); w1: (C_in, H); b1: (H,); w2: (H, C_out); b2: (C_out,)."""
    orig_shape = x.shape
    c_in = orig_shape[-1]
    hidden = w1.shape[1]
    c_out = w2.shape[1]
    assert w1.shape[0] == c_in and w2.shape[0] == hidden and b1.shape == (hidden,)
    assert b2.shape == (c_out,)

    x2 = x.reshape(-1, c_in).astype(jnp.float32)
    m = x2.shape[0]

    # Row tile: as large as block_rows, multiple of 8 sublanes.
    tm = min(block_rows, ((m + 7) // 8) * 8)
    grid_m = pl.cdiv(m, tm)
    m_pad = grid_m * tm
    if m_pad != m:
        x2 = jnp.pad(x2, ((0, m_pad - m), (0, 0)))

    out = pl.pallas_call(
        _mlp_kernel,
        out_shape=jax.ShapeDtypeStruct((m_pad, c_out), jnp.float32),
        grid_spec=pltpu.PrefetchScalarGridSpec(
            num_scalar_prefetch=0,
            grid=(grid_m,),
            in_specs=[
                pl.BlockSpec((tm, c_in), lambda i: (i, 0)),        # x tile
                pl.BlockSpec((c_in, hidden), lambda i: (0, 0)),    # W1 (resident)
                pl.BlockSpec((1, hidden), lambda i: (0, 0)),       # b1 (resident)
                pl.BlockSpec((hidden, c_out), lambda i: (0, 0)),   # W2 (resident)
                pl.BlockSpec((1, c_out), lambda i: (0, 0)),        # b2 (resident)
            ],
            out_specs=pl.BlockSpec((tm, c_out), lambda i: (i, 0)),
        ),
        compiler_params=pltpu.CompilerParams(
            dimension_semantics=("parallel",)),
    )(x2,
      w1.astype(jnp.float32),
      b1.reshape(1, hidden).astype(jnp.float32),
      w2.astype(jnp.float32),
      b2.reshape(1, c_out).astype(jnp.float32))

    return out[:m].reshape(*orig_shape[:-1], c_out)


def mlp_reference(x, w1, b1, w2, b2):
    """Pure-JAX reference mirroring the PyTorch forward (exact GELU)."""
    h = x @ w1 + b1
    h = 0.5 * h * (1.0 + jax.scipy.special.erf(h / jnp.sqrt(2.0).astype(h.dtype)))
    return h @ w2 + b2


if __name__ == "__main__":
    # Small but lane-dense shapes consistent with Swin's Mlp:
    # tokens (B, L, C) with mlp_ratio = 4.
    B, L, C = 2, 128, 128
    hidden = 4 * C

    key = jax.random.PRNGKey(0)
    k1, k2, k3, k4, k5 = jax.random.split(key, 5)

    x = jax.random.normal(k1, (B, L, C), jnp.float32)
    # nn.Linear params, stored pre-transposed as (in_features, out_features).
    w1 = jax.random.normal(k2, (C, hidden), jnp.float32) * 0.05
    b1 = jax.random.normal(k3, (hidden,), jnp.float32) * 0.05
    w2 = jax.random.normal(k4, (hidden, C), jnp.float32) * 0.05
    b2 = jax.random.normal(k5, (C,), jnp.float32) * 0.05

    out = jax.block_until_ready(mlp_pallas(x, w1, b1, w2, b2))

    ref = mlp_reference(x, w1, b1, w2, b2)
    assert out.shape == ref.shape
    assert jnp.allclose(out, ref, atol=1e-4, rtol=1e-4), "mismatch vs reference"

    # Also exercise a ragged row count (padding path) with a different tile.
    x_odd = x[:, :100, :]                       # 200 rows -> padded to tile
    out_odd = jax.block_until_ready(mlp_pallas(x_odd, w1, b1, w2, b2,
                                               block_rows=64))
    ref_odd = mlp_reference(x_odd, w1, b1, w2, b2)
    assert jnp.allclose(out_odd, ref_odd, atol=1e-4, rtol=1e-4)

    print("KERNEL_OK")
</pallas_src>

<mosaic_0001>
module attributes {stable_mosaic.version = 11 : i64} {
  func.func @_mlp_kernel(%arg0: i32, %arg1: memref<128x128xf32, #tpu.memory_space<vmem>>, %arg2: memref<128x512xf32, #tpu.memory_space<vmem>>, %arg3: memref<1x512xf32, #tpu.memory_space<vmem>>, %arg4: memref<512x128xf32, #tpu.memory_space<vmem>>, %arg5: memref<1x128xf32, #tpu.memory_space<vmem>>, %arg6: memref<128x128xf32, #tpu.memory_space<vmem>>) attributes {dimension_semantics = [#tpu.dimension_semantics<parallel>], iteration_bounds = array<i64: 2>, scalar_prefetch = 0 : i64, scratch_operands = 0 : i64, tpu.core_type = #tpu.core_type<tc>, window_params = [{transform_indices = @transform_0, window_bounds = array<i64: 128, 128>}, {pipeline_mode = #tpu.pipeline_mode<synchronous>, transform_indices = @transform_1, window_bounds = array<i64: 128, 512>}, {pipeline_mode = #tpu.pipeline_mode<synchronous>, transform_indices = @transform_2, window_bounds = array<i64: 1, 512>}, {pipeline_mode = #tpu.pipeline_mode<synchronous>, transform_indices = @transform_3, window_bounds = array<i64: 512, 128>}, {pipeline_mode = #tpu.pipeline_mode<synchronous>, transform_indices = @transform_4, window_bounds = array<i64: 1, 128>}, {transform_indices = @transform_5, window_bounds = array<i64: 128, 128>}]} {
    %c0 = arith.constant 0 : index
    %c0_0 = arith.constant 0 : index
    %0 = vector.load %arg1[%c0, %c0_0] : memref<128x128xf32, #tpu.memory_space<vmem>>, vector<128x128xf32>
    %c0_1 = arith.constant 0 : index
    %c0_2 = arith.constant 0 : index
    %1 = vector.load %arg2[%c0_1, %c0_2] : memref<128x512xf32, #tpu.memory_space<vmem>>, vector<128x512xf32>
    %cst = arith.constant dense<0.000000e+00> : vector<128x512xf32>
    %2 = tpu.matmul %0, %1, %cst {dimension_numbers = #tpu.dot_dimension_numbers<[1], [0], [0], [1], [0, 0, 1, 1], [], []>} : vector<128x128xf32>, vector<128x512xf32>, vector<128x512xf32> -> vector<128x512xf32>
    %c0_3 = arith.constant 0 : index
    %c0_4 = arith.constant 0 : index
    %3 = vector.load %arg3[%c0_3, %c0_4] : memref<1x512xf32, #tpu.memory_space<vmem>>, vector<1x512xf32>
    %4 = vector.broadcast %3 : vector<1x512xf32> to vector<128x512xf32>
    %5 = arith.addf %2, %4 : vector<128x512xf32>
    %cst_5 = arith.constant 5.000000e-01 : f32
    %6 = vector.broadcast %cst_5 : f32 to vector<128x512xf32>
    %7 = arith.mulf %6, %5 : vector<128x512xf32>
    %cst_6 = arith.constant 0.707106769 : f32
    %8 = vector.broadcast %cst_6 : f32 to vector<128x512xf32>
    %9 = arith.mulf %5, %8 : vector<128x512xf32>
    %10 = math.absf %9 : vector<128x512xf32>
    %cst_7 = arith.constant 0.327591091 : f32
    %11 = vector.broadcast %cst_7 : f32 to vector<128x512xf32>
    %12 = arith.mulf %11, %10 : vector<128x512xf32>
    %cst_8 = arith.constant 1.000000e+00 : f32
    %13 = vector.broadcast %cst_8 : f32 to vector<128x512xf32>
    %14 = arith.addf %13, %12 : vector<128x512xf32>
    %cst_9 = arith.constant 1.000000e+00 : f32
    %15 = vector.broadcast %cst_9 : f32 to vector<128x512xf32>
    %16 = arith.divf %15, %14 : vector<128x512xf32>
    %cst_10 = arith.constant 1.06140542 : f32
    %17 = vector.broadcast %cst_10 : f32 to vector<128x512xf32>
    %18 = arith.mulf %17, %16 : vector<128x512xf32>
    %cst_11 = arith.constant -1.45315206 : f32
    %19 = vector.broadcast %cst_11 : f32 to vector<128x512xf32>
    %20 = arith.addf %18, %19 : vector<128x512xf32>
    %21 = arith.mulf %20, %16 : vector<128x512xf32>
    %cst_12 = arith.constant 1.42141378 : f32
    %22 = vector.broadcast %cst_12 : f32 to vector<128x512xf32>
    %23 = arith.addf %21, %22 : vector<128x512xf32>
    %24 = arith.mulf %23, %16 : vector<128x512xf32>
    %cst_13 = arith.constant -0.284496725 : f32
    %25 = vector.broadcast %cst_13 : f32 to vector<128x512xf32>
    %26 = arith.addf %24, %25 : vector<128x512xf32>
    %27 = arith.mulf %26, %16 : vector<128x512xf32>
    %cst_14 = arith.constant 0.254829586 : f32
    %28 = vector.broadcast %cst_14 : f32 to vector<128x512xf32>
    %29 = arith.addf %27, %28 : vector<128x512xf32>
    %30 = arith.mulf %29, %16 : vector<128x512xf32>
    %cst_15 = arith.constant 0.000000e+00 : f32
    %31 = vector.broadcast %cst_15 : f32 to vector<128x512xf32>
    %32 = arith.subf %31, %10 : vector<128x512xf32>
    %33 = arith.mulf %32, %10 : vector<128x512xf32>
    %34 = math.exp %33 : vector<128x512xf32>
    %35 = arith.mulf %30, %34 : vector<128x512xf32>
    %cst_16 = arith.constant 1.000000e+00 : f32
    %36 = vector.broadcast %cst_16 : f32 to vector<128x512xf32>
    %37 = arith.subf %36, %35 : vector<128x512xf32>
    %cst_17 = arith.constant 0.000000e+00 : f32
    %38 = vector.broadcast %cst_17 : f32 to vector<128x512xf32>
    %39 = arith.cmpf olt, %9, %38 : vector<128x512xf32>
    %cst_18 = arith.constant 0.000000e+00 : f32
    %40 = vector.broadcast %cst_18 : f32 to vector<128x512xf32>
    %41 = arith.subf %40, %37 : vector<128x512xf32>
    %42 = arith.select %39, %41, %37 : vector<128x512xi1>, vector<128x512xf32>
    %cst_19 = arith.constant 1.000000e+00 : f32
    %43 = vector.broadcast %cst_19 : f32 to vector<128x512xf32>
    %44 = arith.addf %43, %42 : vector<128x512xf32>
    %45 = arith.mulf %7, %44 : vector<128x512xf32>
    %c0_20 = arith.constant 0 : index
    %c0_21 = arith.constant 0 : index
    %46 = vector.load %arg4[%c0_20, %c0_21] : memref<512x128xf32, #tpu.memory_space<vmem>>, vector<512x128xf32>
    %cst_22 = arith.constant dense<0.000000e+00> : vector<128x128xf32>
    %47 = tpu.matmul %45, %46, %cst_22 {dimension_numbers = #tpu.dot_dimension_numbers<[1], [0], [0], [1], [0, 0, 1, 1], [], []>} : vector<128x512xf32>, vector<512x128xf32>, vector<128x128xf32> -> vector<128x128xf32>
    %c0_23 = arith.constant 0 : index
    %c0_24 = arith.constant 0 : index
    %48 = vector.load %arg5[%c0_23, %c0_24] : memref<1x128xf32, #tpu.memory_space<vmem>>, vector<1x128xf32>
    %49 = vector.broadcast %48 : vector<1x128xf32> to vector<128x128xf32>
    %50 = arith.addf %47, %49 : vector<128x128xf32>
    %c0_25 = arith.constant 0 : index
    %c0_26 = arith.constant 0 : index
    %51 = vector.load %arg6[%c0_25, %c0_26] : memref<128x128xf32, #tpu.memory_space<vmem>>, vector<128x128xf32>
    tpu.vector_store %arg6[%c0_25, %c0_26], %50 {strides = array<i32>} : memref<128x128xf32, #tpu.memory_space<vmem>>, vector<128x128xf32>,
    return
  }
  func.func @transform_0(%arg0: i32) -> (i32, i32) {
    %c0_i32 = arith.constant 0 : i32
    %c0_i32_0 = arith.constant 0 : i32
    return %arg0, %c0_i32 : i32, i32
  }
  func.func @transform_1(%arg0: i32) -> (i32, i32) {
    %c0_i32 = arith.constant 0 : i32
    %c0_i32_0 = arith.constant 0 : i32
    %c0_i32_1 = arith.constant 0 : i32
    return %c0_i32, %c0_i32_0 : i32, i32
  }
  func.func @transform_2(%arg0: i32) -> (i32, i32) {
    %c0_i32 = arith.constant 0 : i32
    %c0_i32_0 = arith.constant 0 : i32
    %c0_i32_1 = arith.constant 0 : i32
    return %c0_i32, %c0_i32_0 : i32, i32
  }
  func.func @transform_3(%arg0: i32) -> (i32, i32) {
    %c0_i32 = arith.constant 0 : i32
    %c0_i32_0 = arith.constant 0 : i32
    %c0_i32_1 = arith.constant 0 : i32
    return %c0_i32, %c0_i32_0 : i32, i32
  }
  func.func @transform_4(%arg0: i32) -> (i32, i32) {
    %c0_i32 = arith.constant 0 : i32
    %c0_i32_0 = arith.constant 0 : i32
    %c0_i32_1 = arith.constant 0 : i32
    return %c0_i32, %c0_i32_0 : i32, i32
  }
  func.func @transform_5(%arg0: i32) -> (i32, i32) {
    %c0_i32 = arith.constant 0 : i32
    %c0_i32_0 = arith.constant 0 : i32
    return %arg0, %c0_i32 : i32, i32
  }
}

</mosaic_0001>

<bundles_post_ra>
// kernel: tpu_custom_call.1
= control target key start
LH: loop header
LB: loop body
LE: loop exit
PB: predicated region body
PF: predicated region fallthrough
CT: control target
= control target key end

     0   :  { %10 = vsyncpa [#allocation3], 0  ;;  %s5796_s0 = inlined_call_operand.hbm [shape: f32[256,128], index: 0, kind: input, shape index: {}]   ;;  %s5797_s1 = inlined_call_operand.hbm [shape: f32[128,512], index: 1, kind: input, shape index: {}]   ;;  %s5798_s2 = inlined_call_operand.vmem [shape: f32[1,512], index: 2, kind: input, shape index: {}]   ;;  %s5799_s3 = inlined_call_operand.hbm [shape: f32[512,128], index: 3, kind: input, shape index: {}]   ;;  %s5800_s4 = inlined_call_operand.vmem [shape: f32[1,128], index: 4, kind: input, shape index: {}]   ;;  %s5801_s5 = inlined_call_operand.hbm [shape: f32[256,128], index: 5, kind: output, shape index: {}]  }
   0x1   :  { %12 = vsyncpa [#allocation3 + $0x1], 0 }
   0x2   :  { %13 = vsyncpa [#allocation6], 0 }
   0x3   :  { %14 = vsyncpa [#allocation4], 0 }
   0x4   :  { %16 = vsyncpa [#allocation4 + $0x1], 0  ;;  %s3747_s18 = smov 0   ;;  %s3749_s19 = smov 0  }
   0x5   :  { %s3751_s20 = smov 0   ;;  %s3753_s21 = smov 0  }
   0x6 LB: > { %s3768_s22 = sadd.s32 4294967295, %s3704_s21   ;;  %s2909_s23 = sadd.s32 4294967294, %s3704_s21   ;;  %s3704_s21 = sphi %s3753_s21, %s6427_s21   ;;  %s3700_s20 = sphi %s3751_s20, %s6426_s20   ;;  %s3696_s19 = sphi %s3749_s19, %s6425_s19   ;;  %s3692_s18 = sphi %s3747_s18, %s6424_s18  }
   0x7   : > { %p42_p0 = scmp.ne.s32.totalorder %s3696_s19, %s3692_s18  ;;  %p5802_p1 = scmp.eq.s32.totalorder %s3768_s22, 0 }
   0x8   : > { %p156_p3 = scmp.eq.s32.totalorder %s2909_s23, 1  ;;  %p2910_p5 = scmp.ge.s32.totalorder %s3704_s21, 1 }
   0x9   : > { %p3777_p4 = por %p5802_p1, %p42_p0  ;;  %p163_p7 = scmp.lt.s32.totalorder %s3704_s21, 3 }
   0xa   : > { %p3782_p6 = por %p156_p3, %p42_p0  ;;  %s3706_s27 = smov [#allocation5]  }
   0xb   : > { %s5965_s24 = scalar_select %p3777_p4, 1, 0 }
   0xc   : > { %s5966_s25 = scalar_select %p3782_p6, 1, 0 }
   0xd   : > { %p3787_p8 = pnand %p2910_p5, %p163_p7  ;;  %s175_s28 = sshll.u32 %s3706_s27, 4  ;;  %s3791_s28 = int_to_ptr.vmem [resolvable:$true] %s175_s28 }
   0xe   : > { %s3707_s30 = smov [#allocation7]   ;;  %s3548_s9 = scalar_lea.hbm %s5797_s1, 8192 }
   0xf   : > { %p3230_p9 = pneg %p3787_p8  ;;  %s191_s6 = sshll.u32 %s3707_s30, 4  ;;  %s3802_s6 = int_to_ptr.vmem [resolvable:$true] %s191_s6 }
  0x10   : > { %p3549_p12 = scmp.ne.s32.totalorder %s5797_s1, %s3548_s9  ;;  %p3555_p5 = scmp.lt.u32.totalorder %s3548_s9, %s5797_s1 }
  0x11   : > { %p3798_p11 = pnand %p3230_p9, %p5802_p1 }
  0x13   : > { %p3550_p13 = pneg %p3798_p11 }
  0x15   : > { %p3551_p0 = pnand %p3550_p13, %p3549_p12 }
  0x17   : > { %p3552_p3 = pneg %p3551_p0 }
  0x19   : > { %p3557_p7 = pnand %p3555_p5, %p3552_p3 }
  0x1b   : > { %3560 = shalt.err (!%p3557_p7)
}
  0x1c   : > { %s3561_s14 = scalar_lea.vmem %s3791_s28, 8192  ;;  %p3569_p2 = scmp.lt.s32.totalorder %s3791_s28, %s3791_s28 }
  0x1d   : > { %p3562_p9 = scmp.ne.s32.totalorder %s3791_s28, %s3561_s14  ;;  %p3570_p12 = scmp.lt.s32.totalorder %s3561_s14, %s3561_s14 }
  0x1f   : > { %p3564_p10 = pnand %p3562_p9, %p3550_p13  ;;  %p3571_p0 = por %p3570_p12, %p3569_p2 }
  0x21   : > { %p3565_p1 = pneg %p3564_p10 }
  0x23   : > { %p3572_p6 = pnand %p3571_p0, %p3565_p1 }
  0x25   : > { %3575 = shalt.err (!%p3572_p6)
}
  0x26   : > { %s3708_s15 = smov 512   ;;  %s3709_s16 = smov 32  }
  0x27   : > { %3233 = dma.hbm_to_vmem [thread:$0]  (!%p3798_p11), %s5797_s1, 8192, %s3791_s28, [#allocation6], %s3708_s15, %s3708_s15, %s3709_s16  }
  0x28   : > { %s3576_s7 = scalar_lea.hbm %s5799_s3, 8192 }
  0x29   : > { %p3577_p2 = scmp.ne.s32.totalorder %s5799_s3, %s3576_s7  ;;  %p3583_p10 = scmp.lt.u32.totalorder %s3576_s7, %s5799_s3 }
  0x2b   : > { %p3579_p1 = pnand %p3577_p2, %p3550_p13 }
  0x2d   : > { %p3580_p6 = pneg %p3579_p1 }
  0x2f   : > { %p3585_p3 = pnand %p3583_p10, %p3580_p6 }
  0x31   : > { %3588 = shalt.err (!%p3585_p3)
}
  0x32   : > { %s3589_s28 = scalar_lea.vmem %s3802_s6, 8192  ;;  %p3597_p12 = scmp.lt.s32.totalorder %s3802_s6, %s3802_s6 }
  0x33   : > { %p3590_p5 = scmp.ne.s32.totalorder %s3802_s6, %s3589_s28  ;;  %p3598_p0 = scmp.lt.s32.totalorder %s3589_s28, %s3589_s28 }
  0x35   : > { %p3592_p7 = pnand %p3590_p5, %p3550_p13  ;;  %p3599_p2 = por %p3598_p0, %p3597_p12 }
  0x37   : > { %p3593_p9 = pneg %p3592_p7 }
  0x39   : > { %p3600_p1 = pnand %p3599_p2, %p3593_p9 }
  0x3b   : > { %3603 = shalt.err (!%p3600_p1)
}
  0x3c   : > { %s3710_s12 = smov 128   ;;  %s3711_s13 = smov 8  }
  0x3d   : > { %3236 = dma.hbm_to_vmem [thread:$0]  (!%p3798_p11), %s5799_s3, 8192, %s3802_s6, [#allocation6], %s3710_s12, %s3710_s12, %s3711_s13  }
  0x3e   : > { %s3860_s16 = sadd.s32 1, %s3704_s21   ;;  %s29_s23 = sadd.s32 1, %s3700_s20 }
  0x3f   : > { %s26_s17 = ssub.s32 %s3704_s21, %s3860_s16  ;;  %p36_p6 = scmp.ne.s32.totalorder %s3700_s20, %s3696_s19 }
  0x40   : > { %p27_p13 = scmp.eq.s32.totalorder %s26_s17, 0  ;;  %p37_p10 = scmp.eq.s32.totalorder %s3704_s21, 0 }
  0x41   : > { %p5969_p5 = scmp.eq.s32.totalorder %s3768_s22, 1  ;;  %p3247_p9 = scmp.lt.s32.totalorder %s3704_s21, 2 }
  0x42   : > { %s3869_s27 = scalar_select %p27_p13, %s3700_s20, %s29_s23  }
  0x43   : > { %p38_p3 = por %p37_p10, %p36_p6  ;;  %p3873_p7 = por %p5969_p5, %p36_p6 }
  0x44   : > { %s208_s30 = sand.u32 1, %s3700_s20   ;;  %s2928_s6 = sshll.u32 %s3704_s21, 11 }
  0x45   : > { %s5970_s29 = scalar_select %p3873_p7, 1, 0 }
  0x46   : > { %s2914_s7 = sshll.u32 %s208_s30, 7  ;;  %s3883_s10 = scalar_lea.hbm %s5796_s0, %s2928_s6 }
  0x47   : > { %s212_s11 = scalar_lea.vmem [#allocation2], %s2914_s7  ;;  %p3887_p11 = pnand %p3247_p9, %p38_p3 }
  0x48   : > { %s219_s28 = sshll.u32 %s212_s11, 4  ;;  %s3891_s15 = scalar_lea.sflag [#allocation3], %s208_s30  ;;  %s3885_s28 = int_to_ptr.vmem [resolvable:$true] %s219_s28 }
  0x49   : > { %s3604_s17 = scalar_lea.hbm %s3883_s10, 2048  ;;  %p3606_p0 = pneg %p3887_p11 }
  0x4a   : > { %p3605_p12 = scmp.ne.s32.totalorder %s3883_s10, %s3604_s17  ;;  %s3609_s6 = scalar_lea.hbm %s5796_s0, 4096 }
  0x4b   : > { %p3610_p13 = scmp.lt.u32.totalorder %s3883_s10, %s5796_s0  ;;  %p3611_p6 = scmp.lt.u32.totalorder %s3609_s6, %s3604_s17 }
  0x4c   : > { %p3607_p2 = pnand %p3606_p0, %p3605_p12  ;;  %p3613_p3 = scmp.lt.u32.totalorder %s3604_s17, %s3883_s10 }
  0x4d   : > { %p3612_p10 = por %p3611_p6, %p3610_p13 }
  0x4e   : > { %p3608_p1 = pneg %p3607_p2 }
  0x4f   : > { %p3614_p5 = por %p3613_p3, %p3612_p10 }
  0x51   : > { %p3615_p9 = pnand %p3614_p5, %p3608_p1 }
  0x53   : > { %3618 = shalt.err (!%p3615_p9)
}
  0x54   : > { %s3619_s30 = scalar_lea.vmem %s3885_s28, 2048  ;;  %s3712_s11 = smov [#allocation2]  }
  0x55   : > { %p3620_p12 = scmp.ne.s32.totalorder %s3885_s28, %s3619_s30  ;;  %s3624_s23 = sshll.u32 %s3712_s11, 4  ;;  %s3625_s23 = int_to_ptr.vmem [resolvable:$false] %s3624_s23 }
  0x56   : > { %s3626_s7 = scalar_lea.vmem %s3625_s23, 4096  ;;  %p3627_p4 = scmp.lt.s32.totalorder %s3885_s28, %s3625_s23 }
  0x57   : > { %p3622_p2 = pnand %p3620_p12, %p3606_p0  ;;  %p3628_p13 = scmp.lt.s32.totalorder %s3626_s7, %s3619_s30 }
  0x59   : > { %p3623_p7 = pneg %p3622_p2  ;;  %p3629_p6 = por %p3628_p13, %p3627_p4 }
  0x5b   : > { %p3630_p10 = pnand %p3629_p6, %p3623_p7 }
  0x5d   : > { %3633 = shalt.err (!%p3630_p10)
}
  0x5e   : > { %3240 = dma.hbm_to_vmem [thread:$0]  (!%p3887_p11), %s3883_s10, 2048, %s3885_s28, %s3891_s15, %s3710_s12, %s3710_s12, %s3711_s13  }
  0x5f   : > { %231 = sbr.rel (%p3787_p8) target bundleno = 1051 (0x41b), region = 40 }
  0x66   : > { %s3925_s17 = sand.u32 1, %s3696_s19   ;;  %p5972_p4 = scmp.ne.s32.totalorder %s5965_s24, 0 }
  0x67   : > { %s2918_s6 = sshll.u32 %s3925_s17, 7  ;;  %s234_s8 = scalar_lea.sflag [#allocation3], %s3925_s17 }
  0x68   : > { %s3931_s14 = scalar_lea.vmem [#allocation2], %s2918_s6 }
  0x69   : > { %3679 = dma.done.wait (%p5972_p4), %s234_s8, 2048  }
  0x6a   : > { %3681 = vsyncadd (%p5972_p4), %s234_s8, 4294965248  ;;  %p5973_p7 = scmp.eq.s32.totalorder %s3768_s22, 0 }
  0x6c   : > { %3683 = dma.done.wait (%p5973_p7), [#allocation6], 16384   ;;  %p5974_p8 = pmov %p5973_p7 }
  0x6d   : > { %v3713_v0 = vmov 0.0   ;;  %v291_v1 = vld [vmem:[#allocation5 + $0x8] sm:$0xff]  ;;  %v293_v3 = vld [vmem:[#allocation5 + $0x18] sm:$0xff]  ;;  %v290_v6 = vld [vmem:[#allocation5] sm:$0xff]  ;;  %s5702_s10 = scalar_lea.vmem [#allocation8], %s2918_s6  ;;  %s2929_s28 = sshll.u32 %s3768_s22, 11 }
  0x6e   : > { %3685 = vsyncadd (%p5974_p8), [#allocation6], 4294950912  ;;  %440 = vmatprep.mubr.f32.mxu0 %v3713_v0  ;;  %601 = vmatprep.mubr.f32.mxu1 %v3713_v0  ;;  %v295_v2 = vld [vmem:[#allocation5 + $0x28] sm:$0xff]  ;;  %v297_v5 = vld [vmem:[#allocation5 + $0x38] sm:$0xff]  ;;  %s2817_s15 = sshll.u32 %s5702_s10, 4  ;;  %s5749_s11 = scalar_lea.hbm %s5801_s5, %s2929_s28  ;;  %s5751_s15 = int_to_ptr.vmem [resolvable:$true] %s2817_s15 }
  0x6f   : > { %v3090_v4 = vpack.c.bf16 %v295_v2, %v291_v1  ;;  %v294_v7 = vld [vmem:[#allocation5 + $0x20] sm:$0xff]  ;;  %v3122_v8 = vpack.c.bf16 %v297_v5, %v293_v3  ;;  %v292_v10 = vld [vmem:[#allocation5 + $0x10] sm:$0xff]  ;;  %v299_v12 = vld [vmem:[#allocation5 + $0x48] sm:$0xff]  ;;  %s2804_s23 = scalar_lea.sflag [#allocation4], %s3925_s17  ;;  %s3634_s7 = scalar_lea.vmem %s5751_s15, 2048 }
  0x70   : > { %v3092_v9 = vpack.c.bf16 %v294_v7, %v290_v6  ;;  %v296_v11 = vld [vmem:[#allocation5 + $0x30] sm:$0xff]  ;;  %v303_v14 = vld [vmem:[#allocation5 + $0x68] sm:$0xff]  ;;  %v301_v15 = vld [vmem:[#allocation5 + $0x58] sm:$0xff]  ;;  %p3635_p11 = scmp.ne.s32.totalorder %s5751_s15, %s3634_s7  ;;  %p6421_p0 = scmp.ne.s32.totalorder %s5970_s29, 0 }
  0x71   : > { %3091 = vmatprep.subr.bf16.mxu0 %v3090_v4  ;;  %v3124_v13 = vpack.c.bf16 %v296_v11, %v292_v10  ;;  %v305_v16 = vld [vmem:[#allocation5 + $0x78] sm:$0xff]  ;;  %3123 = vmatprep.subr.bf16.mxu1 %v3122_v8  ;;  %v3094_v17 = vpack.c.bf16 %v303_v14, %v299_v12  ;;  %v298_v19 = vld [vmem:[#allocation5 + $0x40] sm:$0xff]  ;;  %v300_v21 = vld [vmem:[#allocation5 + $0x50] sm:$0xff]  ;;  %s3714_s22 = smov [#allocation8]  }
  0x72   : > { %3093 = vmatpush1.bf16.msra.mxu0 %v3092_v9  ;;  %v3126_v18 = vpack.c.bf16 %v305_v16, %v301_v15  ;;  %v302_v20 = vld [vmem:[#allocation5 + $0x60] sm:$0xff]  ;;  %v304_v23 = vld [vmem:[#allocation5 + $0x70] sm:$0xff]  ;;  %v307_v24 = vld [vmem:[#allocation5 + $0x88] sm:$0xff]  ;;  %p3636_p1 = pnand %p3635_p11, %p6421_p0  ;;  %s3638_s6 = sshll.u32 %s3714_s22, 4  ;;  %s3639_s6 = int_to_ptr.vmem [resolvable:$false] %s3638_s6 }
  0x73   : > { %3125 = vmatpush1.bf16.msra.mxu1 %v3124_v13  ;;  %v3096_v22 = vpack.c.bf16 %v302_v20, %v298_v19  ;;  %v311_v25 = vld [vmem:[#allocation5 + $0xa8] sm:$0xff]  ;;  %3095 = vmatprep.subr.bf16.mxu0 %v3094_v17  ;;  %v3128_v26 = vpack.c.bf16 %v304_v23, %v300_v21  ;;  %v309_v28 = vld [vmem:[#allocation5 + $0x98] sm:$0xff]  ;;  %v306_v30 = vld [vmem:[#allocation5 + $0x80] sm:$0xff]  ;;  %s3640_s8 = scalar_lea.vmem %s3639_s6, 4096  ;;  %p3641_p5 = scmp.lt.s32.totalorder %s5751_s15, %s3639_s6 }
  0x74   : > { %3127 = vmatprep.subr.bf16.mxu1 %v3126_v18  ;;  %v3098_v27 = vpack.c.bf16 %v311_v25, %v307_v24  ;;  %v313_v29 = vld [vmem:[#allocation5 + $0xb8] sm:$0xff]  ;;  %v310_v32 = vld [vmem:[#allocation5 + $0xa0] sm:$0xff]  ;;  %v308_v33 = vld [vmem:[#allocation5 + $0x90] sm:$0xff]  ;;  %p3637_p3 = pneg %p3636_p1  ;;  %p3642_p9 = scmp.lt.s32.totalorder %s3640_s8, %s3634_s7 }
  0x75   : > { %v3130_v31 = vpack.c.bf16 %v313_v29, %v309_v28  ;;  %v312_v34 = vld [vmem:[#allocation5 + $0xb0] sm:$0xff]  ;;  %v3100_v35 = vpack.c.bf16 %v310_v32, %v306_v30  ;;  %v315_v36 = vld [vmem:[#allocation5 + $0xc8] sm:$0xff]  ;;  %v317_v38 = vld [vmem:[#allocation5 + $0xd8] sm:$0xff] }
  0x76   : > { %3097 = vmatpush1.bf16.msra.mxu0 %v3096_v22  ;;  %v319_v37 = vld [vmem:[#allocation5 + $0xe8] sm:$0xff]  ;;  %v3132_v39 = vpack.c.bf16 %v312_v34, %v308_v33  ;;  %v321_v41 = vld [vmem:[#allocation5 + $0xf8] sm:$0xff]  ;;  %v314_v42 = vld [vmem:[#allocation5 + $0xc0] sm:$0xff]  ;;  %p3643_p12 = por %p3642_p9, %p3641_p5 }
  0x77   : > { %3129 = vmatpush1.bf16.msra.mxu1 %v3128_v26  ;;  %3099 = vmatprep.subr.bf16.mxu0 %v3098_v27  ;;  %v3102_v40 = vpack.c.bf16 %v319_v37, %v315_v36  ;;  %v318_v43 = vld [vmem:[#allocation5 + $0xe0] sm:$0xff]  ;;  %v3134_v44 = vpack.c.bf16 %v321_v41, %v317_v38  ;;  %v316_v45 = vld [vmem:[#allocation5 + $0xd0] sm:$0xff]  ;;  %v323_v47 = vld [vmem:[#allocation5 + $0x108] sm:$0xff] }
  0x78   : > { %3131 = vmatprep.subr.bf16.mxu1 %v3130_v31  ;;  %v320_v46 = vld [vmem:[#allocation5 + $0xf0] sm:$0xff]  ;;  %v327_v48 = vld [vmem:[#allocation5 + $0x128] sm:$0xff]  ;;  %v325_v49 = vld [vmem:[#allocation5 + $0x118] sm:$0xff]  ;;  %v3104_v51 = vpack.c.bf16 %v318_v43, %v314_v42  ;;  %p3644_p2 = pnand %p3643_p12, %p3637_p3 }
  0x79   : > { %v329_v50 = vld [vmem:[#allocation5 + $0x138] sm:$0xff]  ;;  %v3136_v52 = vpack.c.bf16 %v320_v46, %v316_v45  ;;  %v3106_v53 = vpack.c.bf16 %v327_v48, %v323_v47  ;;  %v322_v54 = vld [vmem:[#allocation5 + $0x100] sm:$0xff]  ;;  %v324_v56 = vld [vmem:[#allocation5 + $0x110] sm:$0xff] }
  0x7a   : > { %3101 = vmatpush1.bf16.msra.mxu0 %v3100_v35  ;;  %v326_v55 = vld [vmem:[#allocation5 + $0x120] sm:$0xff]  ;;  %v3138_v57 = vpack.c.bf16 %v329_v50, %v325_v49  ;;  %v328_v58 = vld [vmem:[#allocation5 + $0x130] sm:$0xff]  ;;  %v331_v59 = vld [vmem:[#allocation5 + $0x148] sm:$0xff] }
  0x7b   : > { %3133 = vmatpush1.bf16.msra.mxu1 %v3132_v39  ;;  %3103 = vmatprep.subr.bf16.mxu0 %v3102_v40  ;;  %v335_v60 = vld [vmem:[#allocation5 + $0x168] sm:$0xff]  ;;  %v333_v61 = vld [vmem:[#allocation5 + $0x158] sm:$0xff]  ;;  %v3108_v63 = vpack.c.bf16 %v326_v55, %v322_v54  ;;  %v3140_v1 = vpack.c.bf16 %v328_v58, %v324_v56  ;;  %v330_v3 = vld [vmem:[#allocation5 + $0x140] sm:$0xff] }
  0x7c   : > { %3135 = vmatprep.subr.bf16.mxu1 %v3134_v44  ;;  %v337_v62 = vld [vmem:[#allocation5 + $0x178] sm:$0xff]  ;;  %v3110_v2 = vpack.c.bf16 %v335_v60, %v331_v59  ;;  %v334_v4 = vld [vmem:[#allocation5 + $0x160] sm:$0xff]  ;;  %v332_v5 = vld [vmem:[#allocation5 + $0x150] sm:$0xff] }
  0x7d   : > { %v3142_v6 = vpack.c.bf16 %v337_v62, %v333_v61  ;;  %v336_v7 = vld [vmem:[#allocation5 + $0x170] sm:$0xff]  ;;  %v339_v8 = vld [vmem:[#allocation5 + $0x188] sm:$0xff]  ;;  %v341_v10 = vld [vmem:[#allocation5 + $0x198] sm:$0xff]  ;;  %v3112_v12 = vpack.c.bf16 %v334_v4, %v330_v3 }
  0x7e   : > { %3105 = vmatpush1.bf16.msra.mxu0 %v3104_v51  ;;  %v343_v9 = vld [vmem:[#allocation5 + $0x1a8] sm:$0xff]  ;;  %v345_v11 = vld [vmem:[#allocation5 + $0x1b8] sm:$0xff]  ;;  %v3144_v13 = vpack.c.bf16 %v336_v7, %v332_v5  ;;  %v338_v15 = vld [vmem:[#allocation5 + $0x180] sm:$0xff] }
  0x7f   : > { %3137 = vmatpush1.bf16.msra.mxu1 %v3136_v52  ;;  %3107 = vmatprep.subr.bf16.mxu0 %v3106_v53  ;;  %v3114_v14 = vpack.c.bf16 %v343_v9, %v339_v8  ;;  %v342_v16 = vld [vmem:[#allocation5 + $0x1a0] sm:$0xff]  ;;  %v340_v17 = vld [vmem:[#allocation5 + $0x190] sm:$0xff]  ;;  %v3146_v18 = vpack.c.bf16 %v345_v11, %v341_v10  ;;  %v347_v20 = vld [vmem:[#allocation5 + $0x1c8] sm:$0xff] }
  0x80   : > { %3139 = vmatprep.subr.bf16.mxu1 %v3138_v57  ;;  %v344_v19 = vld [vmem:[#allocation5 + $0x1b0] sm:$0xff]  ;;  %v351_v21 = vld [vmem:[#allocation5 + $0x1e8] sm:$0xff]  ;;  %v349_v22 = vld [vmem:[#allocation5 + $0x1d8] sm:$0xff]  ;;  %v3116_v24 = vpack.c.bf16 %v342_v16, %v338_v15 }
  0x81   : > { %v353_v23 = vld [vmem:[#allocation5 + $0x1f8] sm:$0xff]  ;;  %v3148_v25 = vpack.c.bf16 %v344_v19, %v340_v17  ;;  %v3118_v26 = vpack.c.bf16 %v351_v21, %v347_v20  ;;  %v346_v27 = vld [vmem:[#allocation5 + $0x1c0] sm:$0xff]  ;;  %v348_v30 = vld [vmem:[#allocation5 + $0x1d0] sm:$0xff] }
  0x82   : > { %3109 = vmatpush1.bf16.msra.mxu0 %v3108_v63  ;;  %v350_v28 = vld [vmem:[#allocation5 + $0x1e0] sm:$0xff]  ;;  %v3150_v29 = vpack.c.bf16 %v353_v23, %v349_v22  ;;  %v352_v31 = vld [vmem:[#allocation5 + $0x1f0] sm:$0xff]  ;;  %v2443_v33 = vld [vmem:[#allocation7 + $0x88] sm:$0xff] }
  0x83   : > { %3141 = vmatpush1.bf16.msra.mxu1 %v3140_v1  ;;  %3111 = vmatprep.subr.bf16.mxu0 %v3110_v2  ;;  %v2442_v32 = vld [vmem:[#allocation7 + $0x80] sm:$0xff]  ;;  %v3120_v34 = vpack.c.bf16 %v350_v28, %v346_v27  ;;  %v2475_v36 = vld [vmem:[#allocation7 + $0x188] sm:$0xff]  ;;  %v3152_v37 = vpack.c.bf16 %v352_v31, %v348_v30  ;;  %v2444_v44 = vld [vmem:[#allocation7 + $0x90] sm:$0xff] }
  0x84   : > { %3143 = vmatprep.subr.bf16.mxu1 %v3142_v6  ;;  %v2474_v35 = vld [vmem:[#allocation7 + $0x180] sm:$0xff]  ;;  %v3154_v38 = vpack.c.bf16 %v2443_v33, %v2442_v32  ;;  %v2427_v40 = vld [vmem:[#allocation7 + $0x8] sm:$0xff]  ;;  %v2445_v45 = vld [vmem:[#allocation7 + $0x98] sm:$0xff] }
  0x85   : > { %v2426_v39 = vld [vmem:[#allocation7] sm:$0xff]  ;;  %v3186_v41 = vpack.c.bf16 %v2475_v36, %v2474_v35  ;;  %v2459_v43 = vld [vmem:[#allocation7 + $0x108] sm:$0xff]  ;;  %v2476_v47 = vld [vmem:[#allocation7 + $0x190] sm:$0xff]  ;;  %v3158_v51 = vpack.c.bf16 %v2445_v45, %v2444_v44 }
  0x86   : > { %3113 = vmatpush1.bf16.msra.mxu0 %v3112_v12  ;;  %v2458_v42 = vld [vmem:[#allocation7 + $0x100] sm:$0xff]  ;;  %v2477_v48 = vld [vmem:[#allocation7 + $0x198] sm:$0xff]  ;;  %v3156_v49 = vpack.c.bf16 %v2427_v40, %v2426_v39  ;;  %v2428_v52 = vld [vmem:[#allocation7 + $0x10] sm:$0xff] }
  0x87   : > { %3145 = vmatpush1.bf16.msra.mxu1 %v3144_v13  ;;  %3115 = vmatprep.subr.bf16.mxu0 %v3114_v14  ;;  %v274_v46 = vld [vmem:[%s3931_s14] sm:$0xff]  ;;  %v3188_v50 = vpack.c.bf16 %v2459_v43, %v2458_v42  ;;  %v2429_v53 = vld [vmem:[#allocation7 + $0x18] sm:$0xff]  ;;  %v3190_v54 = vpack.c.bf16 %v2477_v48, %v2476_v47  ;;  %v2460_v55 = vld [vmem:[#allocation7 + $0x110] sm:$0xff] }
  0x88   : > { %3147 = vmatprep.subr.bf16.mxu1 %v3146_v18  ;;  %v2461_v56 = vld [vmem:[#allocation7 + $0x118] sm:$0xff]  ;;  %v275_v57 = vld [vmem:[%s3931_s14 + $0x8] sm:$0xff]  ;;  %v3160_v58 = vpack.c.bf16 %v2429_v53, %v2428_v52  ;;  %v276_v60 = vld [vmem:[%s3931_s14 + $0x10] sm:$0xff] }
  0x89   : > { %v3192_v59 = vpack.c.bf16 %v2461_v56, %v2460_v55  ;;  %v277_v61 = vld [vmem:[%s3931_s14 + $0x18] sm:$0xff]  ;;  %v278_v62 = vld [vmem:[%s3931_s14 + $0x20] sm:$0xff]  ;;  %v279_v63 = vld [vmem:[%s3931_s14 + $0x28] sm:$0xff] }
  0x8a   : > { %3117 = vmatpush1.bf16.msra.mxu0 %v3116_v24  ;;  %v280_v1 = vld [vmem:[%s3931_s14 + $0x30] sm:$0xff]  ;;  %v281_v2 = vld [vmem:[%s3931_s14 + $0x38] sm:$0xff]  ;;  %v282_v3 = vld [vmem:[%s3931_s14 + $0x40] sm:$0xff] }
  0x8b   : > { %3149 = vmatpush1.bf16.msra.mxu1 %v3148_v25  ;;  %3119 = vmatprep.subr.bf16.mxu0 %v3118_v26  ;;  %v283_v4 = vld [vmem:[%s3931_s14 + $0x48] sm:$0xff]  ;;  %v284_v5 = vld [vmem:[%s3931_s14 + $0x50] sm:$0xff]  ;;  %v285_v6 = vld [vmem:[%s3931_s14 + $0x58] sm:$0xff] }
  0x8c   : > { %3151 = vmatprep.subr.bf16.mxu1 %v3150_v29  ;;  %v286_v7 = vld [vmem:[%s3931_s14 + $0x60] sm:$0xff]  ;;  %v287_v8 = vld [vmem:[%s3931_s14 + $0x68] sm:$0xff]  ;;  %v288_v9 = vld [vmem:[%s3931_s14 + $0x70] sm:$0xff] }
  0x8d   : > { %v289_v10 = vld [vmem:[%s3931_s14 + $0x78] sm:$0xff]  ;;  %v2446_v11 = vld [vmem:[#allocation7 + $0xa0] sm:$0xff]  ;;  %v2447_v12 = vld [vmem:[#allocation7 + $0xa8] sm:$0xff] }
  0x8e   : > { %3121 = vmatpush1.bf16.msra.mxu0 %v3120_v34  ;;  %v3162_v13 = vpack.c.bf16 %v2447_v12, %v2446_v11  ;;  %v2478_v14 = vld [vmem:[#allocation7 + $0x1a0] sm:$0xff]  ;;  %v2479_v15 = vld [vmem:[#allocation7 + $0x1a8] sm:$0xff]  ;;  %v2448_v23 = vld [vmem:[#allocation7 + $0xb0] sm:$0xff] }
  0x8f   : > { %3153 = vmatpush1.bf16.msra.mxu1 %v3152_v37  ;;  %3155 = vmatprep.subr.bf16.mxu0 %v3154_v38  ;;  %v2430_v16 = vld [vmem:[#allocation7 + $0x20] sm:$0xff]  ;;  %v2431_v17 = vld [vmem:[#allocation7 + $0x28] sm:$0xff]  ;;  %v3194_v18 = vpack.c.bf16 %v2479_v15, %v2478_v14  ;;  %v2432_v25 = vld [vmem:[#allocation7 + $0x30] sm:$0xff] }
  0x90   : > { %3187 = vmatprep.subr.bf16.mxu1 %v3186_v41  ;;  %v2462_v19 = vld [vmem:[#allocation7 + $0x120] sm:$0xff]  ;;  %v3164_v20 = vpack.c.bf16 %v2431_v17, %v2430_v16  ;;  %v2463_v21 = vld [vmem:[#allocation7 + $0x128] sm:$0xff]  ;;  %v2433_v26 = vld [vmem:[#allocation7 + $0x38] sm:$0xff] }
  0x91   : > { %441 = vmatmul.mubr.f32.vlgmr.msra.gmra.mrb[0].mxu0 %v274_v46  ;;  %v3196_v22 = vpack.c.bf16 %v2463_v21, %v2462_v19  ;;  %v2480_v27 = vld [vmem:[#allocation7 + $0x1b0] sm:$0xff]  ;;  %v3168_v28 = vpack.c.bf16 %v2433_v26, %v2432_v25  ;;  %v2481_v29 = vld [vmem:[#allocation7 + $0x1b8] sm:$0xff]  ;;  %v2450_v34 = vld [vmem:[#allocation7 + $0xc0] sm:$0xff] }
  0x92   : > { %602 = vmatmul.mubr.f32.vlgmr.msra.gmra.mrb[0].mxu1 %v274_v46  ;;  %446 = vmatprep.mubr.f32.mxu0 %v3713_v0  ;;  %v2464_v30 = vld [vmem:[#allocation7 + $0x130] sm:$0xff]  ;;  %v2465_v31 = vld [vmem:[#allocation7 + $0x138] sm:$0xff]  ;;  %v3198_v32 = vpack.c.bf16 %v2481_v29, %v2480_v27  ;;  %v2451_v35 = vld [vmem:[#allocation7 + $0xc8] sm:$0xff] }
  0x93   : > { %607 = vmatprep.mubr.f32.mxu1 %v3713_v0  ;;  %3157 = vmatpush3.bf16.msra.mxu0 %v3156_v49  ;;  %v3200_v33 = vpack.c.bf16 %v2465_v31, %v2464_v30  ;;  %v3170_v36 = vpack.c.bf16 %v2451_v35, %v2450_v34  ;;  %v2434_v37 = vld [vmem:[#allocation7 + $0x40] sm:$0xff]  ;;  %v2435_v38 = vld [vmem:[#allocation7 + $0x48] sm:$0xff]  ;;  %v2452_v46 = vld [vmem:[#allocation7 + $0xd0] sm:$0xff] }
  0x94   : > { %3189 = vmatpush3.bf16.msra.mxu1 %v3188_v50  ;;  %3159 = vmatprep.subr.bf16.mxu0 %v3158_v51  ;;  %v2482_v39 = vld [vmem:[#allocation7 + $0x1c0] sm:$0xff]  ;;  %v3172_v40 = vpack.c.bf16 %v2435_v38, %v2434_v37  ;;  %v2483_v41 = vld [vmem:[#allocation7 + $0x1c8] sm:$0xff]  ;;  %v2453_v47 = vld [vmem:[#allocation7 + $0xd8] sm:$0xff] }
  0x95   : > { %447 = vmatmul.mubr.f32.gmra.mrb[2].mxu0 %v275_v57  ;;  %3191 = vmatprep.subr.bf16.mxu1 %v3190_v54  ;;  %v2466_v42 = vld [vmem:[#allocation7 + $0x140] sm:$0xff]  ;;  %v2467_v43 = vld [vmem:[#allocation7 + $0x148] sm:$0xff]  ;;  %v3202_v44 = vpack.c.bf16 %v2483_v41, %v2482_v39  ;;  %v3174_v48 = vpack.c.bf16 %v2453_v47, %v2452_v46  ;;  %v2484_v49 = vld [vmem:[#allocation7 + $0x1d0] sm:$0xff] }
  0x96   : > { %608 = vmatmul.mubr.f32.gmra.mrb[2].mxu1 %v275_v57  ;;  %452 = vmatprep.mubr.f32.mxu0 %v3713_v0  ;;  %v3204_v45 = vpack.c.bf16 %v2467_v43, %v2466_v42  ;;  %v2485_v50 = vld [vmem:[#allocation7 + $0x1d8] sm:$0xff]  ;;  %v2436_v51 = vld [vmem:[#allocation7 + $0x50] sm:$0xff]  ;;  %v2470_v11 = vld [vmem:[#allocation7 + $0x160] sm:$0xff] }
  0x97   : > { %613 = vmatprep.mubr.f32.mxu1 %v3713_v0  ;;  %3161 = vmatpush3.bf16.msra.mxu0 %v3160_v58  ;;  %v2437_v52 = vld [vmem:[#allocation7 + $0x58] sm:$0xff]  ;;  %v3206_v53 = vpack.c.bf16 %v2485_v50, %v2484_v49  ;;  %v2468_v54 = vld [vmem:[#allocation7 + $0x150] sm:$0xff]  ;;  %v356_v58 = vlaneseq  ;;  %v2471_v16 = vld [vmem:[#allocation7 + $0x168] sm:$0xff] }
  0x98   : > { %3193 = vmatpush3.bf16.msra.mxu1 %v3192_v59  ;;  %3163 = vmatprep.subr.bf16.mxu0 %v3162_v13  ;;  %v3176_v55 = vpack.c.bf16 %v2437_v52, %v2436_v51  ;;  %v2469_v56 = vld [vmem:[#allocation7 + $0x158] sm:$0xff]  ;;  %v3212_v19 = vpack.c.bf16 %v2471_v16, %v2470_v11 }
  0x99   : > { %453 = vmatmul.mubr.f32.gmra.mrb[4].mxu0 %v276_v60  ;;  %3195 = vmatprep.subr.bf16.mxu1 %v3194_v18  ;;  %v3208_v57 = vpack.c.bf16 %v2469_v56, %v2468_v54  ;;  %v357_v59 = vshrl.u32 %v356_v58, 7 }
  0x9a   : > { %614 = vmatmul.mubr.f32.gmra.mrb[4].mxu1 %v276_v60  ;;  %458 = vmatprep.mubr.f32.mxu0 %v3713_v0  ;;  %v2454_v60 = vld [vmem:[#allocation7 + $0xe0] sm:$0xff] }
  0x9b   : > { %619 = vmatprep.mubr.f32.mxu1 %v3713_v0  ;;  %3165 = vmatpush3.bf16.msra.mxu0 %v3164_v20  ;;  %v370_v25 = vsub.s32 3, %v357_v59 }
  0x9c   : > { %3197 = vmatpush3.bf16.msra.mxu1 %v3196_v22 }
  0x9d   : > { %459 = vmatmul.mubr.f32.gmra.mrb[6].mxu0 %v277_v61  ;;  %3199 = vmatprep.subr.bf16.mxu1 %v3198_v32 }
  0x9e   : > { %620 = vmatmul.mubr.f32.gmra.mrb[6].mxu1 %v277_v61  ;;  %464 = vmatprep.mubr.f32.mxu0 %v3713_v0  ;;  %v2455_v61 = vld [vmem:[#allocation7 + $0xe8] sm:$0xff] }
  0x9f   : > { %625 = vmatprep.mubr.f32.mxu1 %v3713_v0 }
  0xa0   : > { %3201 = vmatpush3.bf16.msra.mxu1 %v3200_v33 }
  0xa1   : > { %465 = vmatmul.mubr.f32.gmra.mrb[8].mxu0 %v278_v62  ;;  %3203 = vmatprep.subr.bf16.mxu1 %v3202_v44 }
  0xa2   : > { %626 = vmatmul.mubr.f32.gmra.mrb[8].mxu1 %v278_v62  ;;  %470 = vmatprep.mubr.f32.mxu0 %v3713_v0  ;;  %v358_v62 = vsub.s32 0, %v357_v59 }
  0xa3   : > { %631 = vmatprep.mubr.f32.mxu1 %v3713_v0 }
  0xa4   : > { %3205 = vmatpush3.bf16.msra.mxu1 %v3204_v45 }
  0xa5   : > { %471 = vmatmul.mubr.f32.gmra.mrb[10].mxu0 %v279_v63  ;;  %3207 = vmatprep.subr.bf16.mxu1 %v3206_v53 }
  0xa6   : > { %632 = vmatmul.mubr.f32.gmra.mrb[10].mxu1 %v279_v63  ;;  %476 = vmatprep.mubr.f32.mxu0 %v3713_v0  ;;  %v3178_v63 = vpack.c.bf16 %v2455_v61, %v2454_v60 }
  0xa7   : > { %637 = vmatprep.mubr.f32.mxu1 %v3713_v0 }
  0xa8   : > { %3209 = vmatpush3.bf16.msra.mxu1 %v3208_v57 }
  0xa9   : > { %477 = vmatmul.mubr.f32.gmra.mrb[12].mxu0 %v280_v1 }
  0xaa   : > { %638 = vmatmul.mubr.f32.gmra.mrb[12].mxu1 %v280_v1  ;;  %482 = vmatprep.mubr.f32.mxu0 %v3713_v0  ;;  %v354_v1 = vld [vmem:[%s5798_s2] sm:$0xf] }
  0xab   : > { %643 = vmatprep.mubr.f32.mxu1 %v3713_v0  ;;  %v4020_v34 = vrot.slane %v354_v1, %v370_v25 }
  0xad   : > { %483 = vmatmul.mubr.f32.gmra.mrb[14].mxu0 %v281_v2 }
  0xae   : > { %644 = vmatmul.mubr.f32.gmra.mrb[14].mxu1 %v281_v2  ;;  %488 = vmatprep.mubr.f32.mxu0 %v3713_v0  ;;  %v366_v2 = vsub.s32 2, %v357_v59 }
  0xaf   : > { %649 = vmatprep.mubr.f32.mxu1 %v3713_v0 }
  0xb1   : > { %489 = vmatmul.mubr.f32.gmra.mrb[16].mxu0 %v282_v3 }
  0xb2   : > { %650 = vmatmul.mubr.f32.gmra.mrb[16].mxu1 %v282_v3  ;;  %494 = vmatprep.mubr.f32.mxu0 %v3713_v0  ;;  %v3992_v3 = vrot.slane %v354_v1, %v358_v62 }
  0xb3   : > { %655 = vmatprep.mubr.f32.mxu1 %v3713_v0 }
  0xb5   : > { %495 = vmatmul.mubr.f32.gmra.mrb[18].mxu0 %v283_v4 }
  0xb6   : > { %656 = vmatmul.mubr.f32.gmra.mrb[18].mxu1 %v283_v4  ;;  %500 = vmatprep.mubr.f32.mxu0 %v3713_v0  ;;  %v3994_v4 = vrot.slane %v354_v1, %v366_v2 }
  0xb7   : > { %661 = vmatprep.mubr.f32.mxu1 %v3713_v0 }
  0xb9   : > { %501 = vmatmul.mubr.f32.gmra.mrb[20].mxu0 %v284_v5 }
  0xba   : > { %662 = vmatmul.mubr.f32.gmra.mrb[20].mxu1 %v284_v5  ;;  %506 = vmatprep.mubr.f32.mxu0 %v3713_v0  ;;  %v2486_v5 = vld [vmem:[#allocation7 + $0x1e0] sm:$0xff] }
  0xbb   : > { %667 = vmatprep.mubr.f32.mxu1 %v3713_v0 }
  0xbd   : > { %507 = vmatmul.mubr.f32.gmra.mrb[22].mxu0 %v285_v6 }
  0xbe   : > { %668 = vmatmul.mubr.f32.gmra.mrb[22].mxu1 %v285_v6  ;;  %512 = vmatprep.mubr.f32.mxu0 %v3713_v0  ;;  %v2487_v6 = vld [vmem:[#allocation7 + $0x1e8] sm:$0xff] }
  0xbf   : > { %673 = vmatprep.mubr.f32.mxu1 %v3713_v0 }
  0xc1   : > { %513 = vmatmul.mubr.f32.gmra.mrb[24].mxu0 %v286_v7 }
  0xc2   : > { %674 = vmatmul.mubr.f32.gmra.mrb[24].mxu1 %v286_v7  ;;  %518 = vmatprep.mubr.f32.mxu0 %v3713_v0 }
  0xc3   : > { %679 = vmatprep.mubr.f32.mxu1 %v3713_v0 }
  0xc5   : > { %519 = vmatmul.mubr.f32.gmra.mrb[26].mxu0 %v287_v8 }
  0xc6   : > { %680 = vmatmul.mubr.f32.gmra.mrb[26].mxu1 %v287_v8  ;;  %524 = vmatprep.mubr.f32.mxu0 %v3713_v0  ;;  %v2438_v8 = vld [vmem:[#allocation7 + $0x60] sm:$0xff] }
  0xc7   : > { %685 = vmatprep.mubr.f32.mxu1 %v3713_v0 }
  0xc9   : > { %525 = vmatmul.mubr.f32.gmra.mrb[28].mxu0 %v288_v9 }
  0xca   : > { %686 = vmatmul.mubr.f32.gmra.mrb[28].mxu1 %v288_v9  ;;  %530 = vmatprep.mubr.f32.mxu0 %v3713_v0  ;;  %v2439_v9 = vld [vmem:[#allocation7 + $0x68] sm:$0xff] }
  0xcb   : > { %691 = vmatprep.mubr.f32.mxu1 %v3713_v0  ;;  %v2449_v0 = vld [vmem:[#allocation7 + $0xb8] sm:$0xff]  ;;  %v3180_v15 = vpack.c.bf16 %v2439_v9, %v2438_v8 }
  0xcc   : > { %v3166_v24 = vpack.c.bf16 %v2449_v0, %v2448_v23  ;;  %v362_v0 = vsub.s32 1, %v357_v59 }
  0xcd   : > { %531 = vmatmul.mubr.f32.gmra.mrb[30].mxu0 %v289_v10 }
  0xce   : > { %692 = vmatmul.mubr.f32.gmra.mrb[30].mxu1 %v289_v10  ;;  %3167 = vmatprep.subr.bf16.mxu0 %v3166_v24  ;;  %v3210_v10 = vpack.c.bf16 %v2487_v6, %v2486_v5  ;;  %v4016_v31 = vrot.slane %v354_v1, %v362_v0 }
  0xcf   : > { %3169 = vmatpush3.bf16.msra.mxu0 %v3168_v28 }
  0xd0   : > { %3171 = vmatprep.subr.bf16.mxu0 %v3170_v36  ;;  %3211 = vmatprep.subr.bf16.mxu1 %v3210_v10 }
  0xd1   : > { %3213 = vmatpush3.bf16.msra.mxu1 %v3212_v19 }
  0xd3   : > { %3173 = vmatpush3.bf16.msra.mxu0 %v3172_v40 }
  0xd4   : > { %3175 = vmatprep.subr.bf16.mxu0 %v3174_v48 }
  0xd7   : > { %3177 = vmatpush3.bf16.msra.mxu0 %v3176_v55 }
  0xd8   : > { %3179 = vmatprep.subr.bf16.mxu0 %v3178_v63 }
  0xdb   : > { %3181 = vmatpush3.bf16.msra.mxu0 %v3180_v15 }
 0x164   : > { %v442_v7 = vpop.f32.mrb[0].mxu0 }
 0x165   : > { %v3997_v12 = vadd.f32 %v442_v7, %v3992_v3  ;;  %v603_v13 = vpop.f32.mrb[0].mxu1  ;;  %v444_v14 = vpop.f32.mrb[1].mxu0 }
 0x166   : > { %v4000_v17 = vadd.f32 %v603_v13, %v3994_v4  ;;  %v605_v18 = vpop.f32.mrb[1].mxu1  ;;  %v445_v41 = vadd.f32 %v444_v14, %v4016_v31 }
 0x167   : > { %v4003_v20 = vmul.f32 0.70710677, %v3997_v12  ;;  %v606_v44 = vadd.f32 %v605_v18, %v4020_v34  ;;  %v4090_v25 = vmul.f32 0.5, %v3997_v12 }
 0x168   : > { %v4006_v21 = vmul.f32 0.70710677, %v4000_v17  ;;  %v448_v28 = vpop.f32.mrb[2].mxu0  ;;  %v4046_v48 = vmul.f32 0.70710677, %v445_v41 }
 0x169   : > { %v4009_v22 = vand.u32 2147483647, %v4003_v20  ;;  %v609_v29 = vpop.f32.mrb[2].mxu1  ;;  %v450_v32 = vpop.f32.mrb[3].mxu0  ;;  %v4050_v50 = vmul.f32 0.70710677, %v606_v44  ;;  %v449_v62 = vadd.f32 %v448_v28, %v3992_v3 }
 0x16a   : > { %v4012_v23 = vand.u32 2147483647, %v4006_v21  ;;  %v4018_v33 = vpop.f32.mrb[3].mxu1  ;;  %5975 = vst [vmem:[#allocation12_spill] sm:$0xff] %v4046_v48  ;;  %v827_v57 = vand.u32 2147483647, %v4046_v48  ;;  %v4073_v5 = vadd.f32 %v609_v29, %v3994_v4  ;;  %v451_v0 = vadd.f32 %v450_v32, %v4016_v31 }
 0x16b   : > { %v890_v24 = vmul.f32 0.3275911, %v4009_v22  ;;  %5976 = vst [vmem:[#allocation13_spill] sm:$0xff] %v4050_v50  ;;  %v829_v60 = vand.u32 2147483647, %v4050_v50  ;;  %v1722_v1 = vsub.f32 0.0, %v4009_v22 }
 0x16c   : > { %v892_v26 = vmul.f32 0.3275911, %v4012_v23  ;;  %v4022_v35 = vpop.f32.mrb[4].mxu0  ;;  %v1724_v9 = vsub.f32 0.0, %v4012_v23  ;;  %v1723_v10 = vsub.f32 0.0, %v827_v57  ;;  %vm2106_vm0 = vcmp.lt.f32.partialorder %v4003_v20, 0.0 }
 0x16d   : > { %v954_v27 = vadd.f32 1.0, %v890_v24  ;;  %v4024_v36 = vpop.f32.mrb[4].mxu1  ;;  %v4026_v37 = vpop.f32.mrb[5].mxu0  ;;  %v891_v14 = vmul.f32 0.3275911, %v827_v57  ;;  %v1725_v18 = vsub.f32 0.0, %v829_v60 }
 0x16e   : > { %v956_v30 = vadd.f32 1.0, %v892_v26  ;;  %v4028_v38 = vpop.f32.mrb[5].mxu1  ;;  %v893_v15 = vmul.f32 0.3275911, %v829_v60  ;;  %v4084_v19 = vmul.f32 0.70710677, %v449_v62  ;;  %v1786_v26 = vmul.f32 %v1722_v1, %v4009_v22 }
 0x16f   : > { %3292 = vrcp.f32 %v954_v27  ;;  %v4094_v28 = vmul.f32 0.70710677, %v4073_v5  ;;  %v1787_v32 = vmul.f32 %v1723_v10, %v827_v57  ;;  %vm2108_vm1 = vcmp.lt.f32.partialorder %v4006_v21, 0.0 }
 0x170   : > { %3294 = vrcp.f32 %v956_v30  ;;  %v4030_v39 = vpop.f32.mrb[6].mxu0  ;;  %5977 = vst [vmem:[#allocation14_spill] sm:$0xff] %v4084_v19  ;;  %v4099_v30 = vmul.f32 0.5, %v4000_v17  ;;  %v955_v17 = vadd.f32 1.0, %v891_v14  ;;  %v957_v10 = vadd.f32 1.0, %v893_v15 }
 0x171   : > { %v4032_v40 = vpop.f32.mrb[6].mxu1  ;;  %v4035_v42 = vpop.f32.mrb[7].mxu0  ;;  %5978 = vst [vmem:[#allocation15_spill] sm:$0xff] %v4094_v28 }
 0x172   : > { %v4037_v43 = vpop.f32.mrb[7].mxu1 }
 0x174   : > { %v4040_v45 = vpop.f32.mrb[8].mxu0 }
 0x175   : > { %v4042_v46 = vpop.f32.mrb[8].mxu1  ;;  %v4044_v47 = vpop.f32.mrb[9].mxu0 }
 0x176   : > { %v4048_v49 = vpop.f32.mrb[9].mxu1 }
 0x178   : > { %v4052_v51 = vpop.f32.mrb[10].mxu0 }
 0x179   : > { %v4054_v52 = vpop.eup %3292  ;;  %v4056_v53 = vpop.f32.mrb[10].mxu1 }
 0x17a   : > { %v4058_v54 = vpop.f32.mrb[11].mxu0  ;;  %v4060_v55 = vpop.eup %3294  ;;  %v1146_v56 = vmul.f32 1.0614054, %v4054_v52 }
 0x17b   : > { %v4064_v58 = vpop.f32.mrb[11].mxu1  ;;  %v1148_v59 = vmul.f32 1.0614054, %v4060_v55 }
 0x17c   : > { %v1210_v61 = vadd.f32 -1.4531521, %v1146_v56  ;;  %v4069_v63 = vpop.f32.mrb[12].mxu0  ;;  %v1788_v56 = vmul.f32 %v1724_v9, %v4012_v23  ;;  %v830_v23 = vand.u32 2147483647, %v4084_v19 }
 0x17d   : > { %v1212_v2 = vadd.f32 -1.4531521, %v1148_v59  ;;  %v4075_v6 = vpop.f32.mrb[12].mxu1  ;;  %v4077_v7 = vpop.f32.mrb[13].mxu0  ;;  %v4102_v59 = vmul.f32 0.5, %v445_v41 }
 0x17e   : > { %v1274_v8 = vmul.f32 %v4054_v52, %v1210_v61  ;;  %v4081_v11 = vpop.f32.mrb[13].mxu1  ;;  %v4117_v41 = vmul.f32 0.70710677, %v451_v0  ;;  %v1850_v9 = vmul.f32 1.442695, %v1786_v26  ;;  %v1726_v26 = vsub.f32 0.0, %v830_v23 }
 0x17f   : > { %v1276_v13 = vmul.f32 %v4060_v55, %v1212_v2  ;;  %5979 = vst [vmem:[#allocation16_spill] sm:$0xff] %v4102_v59  ;;  %v4110_v2 = vmul.f32 0.5, %v606_v44  ;;  %v1854_v44 = vmul.f32 1.442695, %v1788_v56  ;;  %v4138_v56 = vadd.f32 %v4024_v36, %v3994_v4 }
 0x180   : > { %v1338_v16 = vadd.f32 1.4214138, %v1274_v8  ;;  %v4087_v24 = vpop.f32.mrb[14].mxu0  ;;  %v4114_v8 = vadd.f32 %v4018_v33, %v4020_v34  ;;  %5981 = vst [vmem:[#allocation18_spill] sm:$0xff] %v4117_v41  ;;  %v4126_v33 = vadd.f32 %v4022_v35, %v3992_v3  ;;  %3296 = vpow2.f32 %v1850_v9 }
 0x181   : > { %v1340_v27 = vadd.f32 1.4214138, %v1276_v13  ;;  %v4096_v29 = vpop.f32.mrb[14].mxu1  ;;  %v4104_v61 = vpop.f32.mrb[15].mxu0  ;;  %5980 = vst [vmem:[#allocation17_spill] sm:$0xff] %v4110_v2  ;;  %v1789_v13 = vmul.f32 %v1725_v18, %v829_v60  ;;  %v4142_v35 = vmul.f32 0.5, %v449_v62  ;;  %3298 = vpow2.f32 %v1854_v44 }
 0x182   : > { %v4106_v12 = vpop.f32.mrb[15].mxu1  ;;  %v1402_v22 = vmul.f32 %v4054_v52, %v1338_v16  ;;  %v832_v16 = vand.u32 2147483647, %v4094_v28  ;;  %v4133_v2 = vmul.f32 0.70710677, %v4114_v8  ;;  %3300 = vrcp.f32 %v955_v17 }
 0x183   : > { %v1404_v1 = vmul.f32 %v4060_v55, %v1340_v27  ;;  %v1852_v27 = vmul.f32 1.442695, %v1787_v32  ;;  %v1856_v15 = vmul.f32 1.442695, %v1789_v13  ;;  %v831_v28 = vand.u32 2147483647, %v4117_v41 }
 0x184   : > { %v4119_v57 = vpop.f32.mrb[16].mxu0  ;;  %v1466_v18 = vadd.f32 -0.28449672, %v1402_v22  ;;  %5985 = vst [vmem:[#allocation22_spill] sm:$0xff] %v4133_v2  ;;  %5987 = vst [vmem:[#allocation24_spill] sm:$0xff] %v4142_v35  ;;  %v1728_v48 = vsub.f32 0.0, %v832_v16  ;;  %v1790_v9 = vmul.f32 %v1726_v26, %v830_v23 }
 0x185   : > { %v4122_v59 = vpop.f32.mrb[16].mxu1  ;;  %v4128_v14 = vpop.f32.mrb[17].mxu0  ;;  %v1468_v19 = vadd.f32 -0.28449672, %v1404_v1  ;;  %v894_v50 = vmul.f32 0.3275911, %v830_v23  ;;  %3302 = vpow2.f32 %v1852_v27 }
 0x186   : > { %5982 = vst [vmem:[#allocation19_spill] sm:$0xff] %v4122_v59  ;;  %5983 = vst [vmem:[#allocation20_spill] sm:$0xff] %v4128_v14  ;;  %v4130_v60 = vpop.f32.mrb[17].mxu1  ;;  %v896_v1 = vmul.f32 0.3275911, %v832_v16  ;;  %v1530_v36 = vmul.f32 %v4054_v52, %v1466_v18  ;;  %v4157_v35 = vmul.f32 0.5, %v4073_v5  ;;  %v1792_v59 = vmul.f32 %v1728_v48, %v832_v16 }
 0x187   : > { %5984 = vst [vmem:[#allocation21_spill] sm:$0xff] %v4130_v60  ;;  %v4147_v13 = vmul.f32 0.70710677, %v4126_v33  ;;  %v833_v62 = vand.u32 2147483647, %v4133_v2  ;;  %v1727_v44 = vsub.f32 0.0, %v831_v28  ;;  %3304 = vrcp.f32 %v957_v10 }
 0x188   : > { %v4140_v32 = vpop.f32.mrb[18].mxu0  ;;  %5992 = vst [vmem:[#allocation29_spill] sm:$0xff] %v4157_v35  ;;  %v960_v5 = vadd.f32 1.0, %v896_v1  ;;  %v895_v18 = vmul.f32 0.3275911, %v831_v28  ;;  %3306 = vpow2.f32 %v1856_v15  ;;  %v4185_v1 = vadd.f32 %v4028_v38, %v4020_v34 }
 0x189   : > { %5986 = vst [vmem:[#allocation23_spill] sm:$0xff] %v4140_v32  ;;  %v4144_v22 = vpop.f32.mrb[18].mxu1  ;;  %5989 = vst [vmem:[#allocation26_spill] sm:$0xff] %v4147_v13  ;;  %v4149_v60 = vpop.f32.mrb[19].mxu0  ;;  %v1532_v32 = vmul.f32 %v4060_v55, %v1468_v19  ;;  %v4168_v19 = vadd.f32 %v4026_v37, %v4016_v31  ;;  %v834_v26 = vand.u32 2147483647, %v4147_v13  ;;  %v1791_v16 = vmul.f32 %v1727_v44, %v831_v28 }
 0x18a   : > { %5988 = vst [vmem:[#allocation25_spill] sm:$0xff] %v4144_v22  ;;  %5990 = vst [vmem:[#allocation27_spill] sm:$0xff] %v4149_v60  ;;  %v4151_v41 = vpop.f32.mrb[19].mxu1  ;;  %v4160_v22 = vmul.f32 0.70710677, %v4138_v56  ;;  %v958_v60 = vadd.f32 1.0, %v894_v50  ;;  %v3297_v44 = vpop.eup %3296  ;;  %v4197_v38 = vadd.f32 %v4030_v39, %v3992_v3 }
 0x18b   : > { %5991 = vst [vmem:[#allocation28_spill] sm:$0xff] %v4151_v41  ;;  %v4164_v41 = vmul.f32 0.5, %v451_v0  ;;  %v1594_v35 = vadd.f32 0.2548296, %v1530_v36  ;;  %v1596_v2 = vadd.f32 0.2548296, %v1532_v32  ;;  %v3299_v13 = vpop.eup %3298 }
 0x18c   : > { %5993 = vst [vmem:[#allocation30_spill] sm:$0xff] %v4160_v22  ;;  %v4162_v14 = vpop.f32.mrb[20].mxu0  ;;  %v1729_v50 = vsub.f32 0.0, %v833_v62  ;;  %v1858_v0 = vmul.f32 1.442695, %v1790_v9  ;;  %3308 = vrcp.f32 %v958_v60  ;;  %v959_v32 = vadd.f32 1.0, %v895_v18 }
 0x18d   : > { %5994 = vst [vmem:[#allocation31_spill] sm:$0xff] %v4164_v41  ;;  %v4170_v17 = vpop.f32.mrb[20].mxu1  ;;  %v4172_v23 = vpop.f32.mrb[21].mxu0  ;;  %v836_v37 = vand.u32 2147483647, %v4160_v22  ;;  %3310 = vrcp.f32 %v960_v5  ;;  %v1730_v36 = vsub.f32 0.0, %v834_v26  ;;  %v1660_v60 = vmul.f32 %v4060_v55, %v1596_v2 }
 0x18e   : > { %5995 = vst [vmem:[#allocation32_spill] sm:$0xff] %v4172_v23  ;;  %v4175_v48 = vpop.f32.mrb[21].mxu1  ;;  %v1862_v23 = vmul.f32 1.442695, %v1792_v59  ;;  %v4181_v27 = vmul.f32 0.70710677, %v4168_v19  ;;  %v1658_v59 = vmul.f32 %v4054_v52, %v1594_v35  ;;  %v1793_v22 = vmul.f32 %v1729_v50, %v833_v62 }
 0x18f   : > { %v897_v15 = vmul.f32 0.3275911, %v833_v62  ;;  %3312 = vpow2.f32 %v1858_v0  ;;  %v1860_v5 = vmul.f32 1.442695, %v1791_v16  ;;  %v898_v18 = vmul.f32 0.3275911, %v834_v26 }
 0x190   : > { %v4178_v41 = vpop.f32.mrb[22].mxu0  ;;  %5997 = vst [vmem:[#allocation34_spill] sm:$0xff] %v4181_v27  ;;  %3314 = vpow2.f32 %v1862_v23  ;;  %v4205_v52 = vmul.f32 0.70710677, %v4185_v1  ;;  %v4212_v39 = vmul.f32 0.5, %v4114_v8  ;;  %v1794_v62 = vmul.f32 %v1730_v36, %v834_v26 }
 0x191   : > { %5996 = vst [vmem:[#allocation33_spill] sm:$0xff] %v4178_v41  ;;  %v4187_v10 = vpop.f32.mrb[22].mxu1  ;;  %v4189_v28 = vpop.f32.mrb[23].mxu0  ;;  %3316 = vrcp.f32 %v959_v32  ;;  %v961_v35 = vadd.f32 1.0, %v897_v15  ;;  %v4216_v0 = vmul.f32 %v3297_v44, %v1658_v59  ;;  %v4218_v23 = vmul.f32 %v3299_v13, %v1660_v60 }
 0x192   : > { %5998 = vst [vmem:[#allocation35_spill] sm:$0xff] %v4187_v10  ;;  %5999 = vst [vmem:[#allocation36_spill] sm:$0xff] %v4189_v28  ;;  %v4191_v9 = vpop.f32.mrb[23].mxu1  ;;  %v1732_v10 = vsub.f32 0.0, %v836_v37  ;;  %v4201_v28 = vpop.eup %3300  ;;  %v1864_v16 = vmul.f32 1.442695, %v1793_v22  ;;  %3318 = vpow2.f32 %v1860_v5  ;;  %v4227_v8 = vadd.f32 %v4032_v40, %v3994_v4 }
 0x193   : > { %6000 = vst [vmem:[#allocation37_spill] sm:$0xff] %v4191_v9  ;;  %6001 = vst [vmem:[#allocation38_spill] sm:$0xff] %v4201_v28  ;;  %v835_v9 = vand.u32 2147483647, %v4181_v27  ;;  %v4221_v27 = vmul.f32 0.70710677, %v4197_v38  ;;  %v4223_v28 = vpop.eup %3302  ;;  %v4231_v26 = vadd.f32 %v4035_v42, %v4016_v31  ;;  %3320 = vrcp.f32 %v961_v35 }
 0x194   : > { %v4199_v41 = vpop.f32.mrb[24].mxu0  ;;  %6002 = vst [vmem:[#allocation39_spill] sm:$0xff] %v4205_v52  ;;  %6004 = vst [vmem:[#allocation41_spill] sm:$0xff] %v4212_v39  ;;  %v4235_v13 = vpop.eup %3304  ;;  %v962_v22 = vadd.f32 1.0, %v898_v18  ;;  %v1796_v15 = vmul.f32 %v1732_v10, %v836_v37  ;;  %v837_v44 = vand.u32 2147483647, %v4205_v52  ;;  %3322 = vpow2.f32 %v1864_v16 }
 0x195   : > { %v4207_v55 = vpop.f32.mrb[24].mxu1  ;;  %v4209_v2 = vpop.f32.mrb[25].mxu0  ;;  %6005 = vst [vmem:[#allocation42_spill] sm:$0xff] %v4221_v27  ;;  %6006 = vst [vmem:[#allocation43_spill] sm:$0xff] %v4223_v28  ;;  %v1731_v36 = vsub.f32 0.0, %v835_v9  ;;  %v4245_v40 = vmul.f32 0.5, %v4126_v33  ;;  %v4262_v35 = vadd.f32 %v4037_v43, %v4020_v34  ;;  %v4273_v43 = vadd.f32 %v4040_v45, %v3992_v3 }
 0x196   : > { %6003 = vst [vmem:[#allocation40_spill] sm:$0xff] %v4209_v2  ;;  %v4214_v50 = vpop.f32.mrb[25].mxu1  ;;  %v900_v2 = vmul.f32 0.3275911, %v836_v37  ;;  %6007 = vst [vmem:[#allocation44_spill] sm:$0xff] %v4235_v13  ;;  %v4240_v60 = vpop.eup %3306  ;;  %v2042_v37 = vsub.f32 1.0, %v4216_v0  ;;  %3324 = vrcp.f32 %v962_v22 }
 0x197   : > { %6009 = vst [vmem:[#allocation46_spill] sm:$0xff] %v4240_v60  ;;  %6010 = vst [vmem:[#allocation47_spill] sm:$0xff] %v4245_v40  ;;  %v1866_v42 = vmul.f32 1.442695, %v1794_v62  ;;  %v899_v5 = vmul.f32 0.3275911, %v835_v9  ;;  %v4247_v39 = vpop.eup %3308  ;;  %v1795_v0 = vmul.f32 %v1731_v36, %v835_v9 }
 0x198   : > { %v4233_v32 = vpop.f32.mrb[26].mxu0  ;;  %6011 = vst [vmem:[#allocation48_spill] sm:$0xff] %v4247_v39  ;;  %v2044_v10 = vsub.f32 1.0, %v4218_v23  ;;  %v838_v18 = vand.u32 2147483647, %v4221_v27  ;;  %v4252_v52 = vpop.eup %3310  ;;  %v964_v60 = vadd.f32 1.0, %v900_v2 }
 0x199   : > { %v4238_v59 = vpop.f32.mrb[26].mxu1  ;;  %6012 = vst [vmem:[#allocation49_spill] sm:$0xff] %v4252_v52  ;;  %v4255_v28 = vmul.f32 0.70710677, %v4227_v8  ;;  %v4258_v33 = vmul.f32 0.70710677, %v4231_v26  ;;  %v4264_v16 = vpop.eup %3312  ;;  %3326 = vpow2.f32 %v1866_v42 }
 0x19a   : > { %6008 = vst [vmem:[#allocation45_spill] sm:$0xff] %v4238_v59  ;;  %v1870_v62 = vmul.f32 1.442695, %v1796_v15  ;;  %v1733_v23 = vsub.f32 0.0, %v837_v44  ;;  %v4267_v40 = vmul.f32 0.5, %v4138_v56  ;;  %v963_v2 = vadd.f32 1.0, %v899_v5  ;;  %v4269_v52 = vpop.eup %3314 }
 0x19b   : > { %6013 = vst [vmem:[#allocation50_spill] sm:$0xff] %v4255_v28  ;;  %6014 = vst [vmem:[#allocation51_spill] sm:$0xff] %v4258_v33  ;;  %v901_v27 = vmul.f32 0.3275911, %v837_v44  ;;  %v2170_v39 = vsub.f32 0.0, %v2042_v37  ;;  %v2172_v13 = vsub.f32 0.0, %v2044_v10  ;;  %v4275_v22 = vpop.eup %3316  ;;  %3328 = vrcp.f32 %v964_v60 }
 0x19c   : > { %6015 = vst [vmem:[#allocation52_spill] sm:$0xff] %v4267_v40  ;;  %6016 = vst [vmem:[#allocation53_spill] sm:$0xff] %v4269_v52  ;;  %v1734_v59 = vsub.f32 0.0, %v838_v18  ;;  %v840_v9 = vand.u32 2147483647, %v4255_v28  ;;  %3330 = vpow2.f32 %v1870_v62  ;;  %v4283_v36 = vmul.f32 0.5, %v4168_v19  ;;  %v4285_v40 = vpop.eup %3318 }
 0x19d   : > { %v839_v15 = vand.u32 2147483647, %v4258_v33  ;;  %v4280_v56 = vmul.f32 0.70710677, %v4262_v35  ;;  %v1868_v42 = vmul.f32 1.442695, %v1795_v0  ;;  %v1797_v5 = vmul.f32 %v1733_v23, %v837_v44  ;;  %v4301_v44 = vpop.eup %3320 }
 0x19e   : > { %6018 = vst [vmem:[#allocation55_spill] sm:$0xff] %v4283_v36  ;;  %3332 = vrcp.f32 %v963_v2  ;;  %v4288_v45 = vmul.f32 0.5, %v4185_v1  ;;  %v965_v60 = vadd.f32 1.0, %v901_v27  ;;  %v902_v52 = vmul.f32 0.3275911, %v838_v18  ;;  %v4304_v2 = vpop.eup %3322 }
 0x19f   : > { %6017 = vst [vmem:[#allocation54_spill] sm:$0xff] %v4280_v56  ;;  %v2234_v28 = vsel %vm2106_vm0, %v2170_v39, %v2042_v37  ;;  %v2236_v33 = vsel %vm2108_vm1, %v2172_v13, %v2044_v10  ;;  %v4295_v62 = vmul.f32 0.70710677, %v4273_v43  ;;  %v4299_v19 = vadd.f32 %v4042_v46, %v3994_v4 }
 0x1a0   : > { %6019 = vst [vmem:[#allocation56_spill] sm:$0xff] %v4288_v45  ;;  %v1798_v0 = vmul.f32 %v1734_v59, %v838_v18  ;;  %v1736_v1 = vsub.f32 0.0, %v840_v9  ;;  %v1735_v23 = vsub.f32 0.0, %v839_v15  ;;  %v841_v27 = vand.u32 2147483647, %v4280_v56  ;;  %v4316_v10 = vpop.eup %3324  ;;  %v4352_v56 = vpop.f32.mrb[27].mxu1 }
 0x1a1   : > { %6020 = vst [vmem:[#allocation57_spill] sm:$0xff] %v4295_v62  ;;  %3334 = vpow2.f32 %v1868_v42  ;;  %v1872_v20 = vmul.f32 1.442695, %v1797_v5  ;;  %v4307_v21 = vmul.f32 0.5, %v4197_v38  ;;  %v4311_v39 = vadd.f32 %v4044_v47, %v4016_v31  ;;  %6023 = vst [vmem:[#allocation60_spill] sm:$0xff] %v4316_v10 }
 0x1a2   : > { %v2298_v46 = vadd.f32 1.0, %v2234_v28  ;;  %v966_v13 = vadd.f32 1.0, %v902_v52  ;;  %v4314_v37 = vmul.f32 0.5, %v4227_v8  ;;  %v904_v59 = vmul.f32 0.3275911, %v840_v9 }
 0x1a3   : > { %6021 = vst [vmem:[#allocation58_spill] sm:$0xff] %v4307_v21  ;;  %v4318_v18 = vadd.f32 1.0, %v2236_v33  ;;  %3336 = vrcp.f32 %v965_v60  ;;  %v842_v42 = vand.u32 2147483647, %v4295_v62  ;;  %v4322_v38 = vmul.f32 0.70710677, %v4299_v19  ;;  %v4324_v5 = vpop.eup %3326 }
 0x1a4   : > { %6022 = vst [vmem:[#allocation59_spill] sm:$0xff] %v4314_v37  ;;  %6025 = vst [vmem:[#allocation62_spill] sm:$0xff] %v4324_v5  ;;  %v1874_v47 = vmul.f32 1.442695, %v1798_v0  ;;  %v1800_v21 = vmul.f32 %v1736_v1, %v840_v9  ;;  %v1799_v28 = vmul.f32 %v1735_v23, %v839_v15  ;;  %v1737_v52 = vsub.f32 0.0, %v841_v27 }
 0x1a5   : > { %6024 = vst [vmem:[#allocation61_spill] sm:$0xff] %v4322_v38  ;;  %3338 = vpow2.f32 %v1872_v20  ;;  %v903_v8 = vmul.f32 0.3275911, %v839_v15  ;;  %v4327_v37 = vmul.f32 0.70710677, %v4311_v39  ;;  %v4331_v33 = vadd.f32 %v4048_v49, %v4020_v34  ;;  %v4333_v60 = vpop.eup %3328 }
 0x1a6   : > { %6027 = vst [vmem:[#allocation64_spill] sm:$0xff] %v4333_v60  ;;  %v4336_v62 = vmul.f32 %v2298_v46, %v4090_v25  ;;  %3340 = vrcp.f32 %v966_v13  ;;  %v968_v5 = vadd.f32 1.0, %v904_v59  ;;  %v4340_v9 = vadd.f32 %v4052_v51, %v3992_v3  ;;  %v4342_v0 = vpop.eup %3330  ;;  %v4350_v59 = vpop.f32.mrb[27].mxu0 }
 0x1a7   : > { %6026 = vst [vmem:[#allocation63_spill] sm:$0xff] %v4327_v37  ;;  %6028 = vst [vmem:[#allocation65_spill] sm:$0xff] %v4342_v0  ;;  %v4345_v15 = vmul.f32 0.5, %v4231_v26  ;;  %v905_v1 = vmul.f32 0.3275911, %v841_v27  ;;  %v1738_v23 = vsub.f32 0.0, %v842_v42  ;;  %3342 = vpow2.f32 %v1874_v47 }
 0x1a8   : > { %v844_v49 = vand.u32 2147483647, %v4322_v38  ;;  %v4348_v20 = vpop.eup %3332  ;;  %v1878_v25 = vmul.f32 1.442695, %v1800_v21  ;;  %v1876_v46 = vmul.f32 1.442695, %v1799_v28  ;;  %v1801_v13 = vmul.f32 %v1737_v52, %v841_v27 }
 0x1a9   : > { %6029 = vst [vmem:[#allocation66_spill] sm:$0xff] %v4345_v15  ;;  %v967_v51 = vadd.f32 1.0, %v903_v8  ;;  %v843_v0 = vand.u32 2147483647, %v4327_v37  ;;  %v4356_v26 = vmul.f32 0.70710677, %v4331_v33  ;;  %v4360_v15 = vadd.f32 %v4056_v53, %v3994_v4 }
 0x1aa   : > { %v4362_v38 = vpop.f32.mrb[28].mxu0  ;;  %3344 = vrcp.f32 %v968_v5  ;;  %v4365_v21 = vmul.f32 0.5, %v4262_v35  ;;  %v906_v27 = vmul.f32 0.3275911, %v842_v42  ;;  %v4368_v47 = vmul.f32 0.70710677, %v4340_v9 }
 0x1ab   : > { %6030 = vst [vmem:[#allocation67_spill] sm:$0xff] %v4356_v26  ;;  %v4370_v28 = vpop.f32.mrb[28].mxu1  ;;  %v4372_v52 = vpop.eup %3334  ;;  %v969_v8 = vadd.f32 1.0, %v905_v1  ;;  %v1802_v37 = vmul.f32 %v1738_v23, %v842_v42  ;;  %v1740_v45 = vsub.f32 0.0, %v844_v49  ;;  %v4376_v53 = vadd.f32 %v4058_v54, %v4016_v31 }
 0x1ac   : > { %6031 = vst [vmem:[#allocation68_spill] sm:$0xff] %v4365_v21  ;;  %6032 = vst [vmem:[#allocation69_spill] sm:$0xff] %v4368_v47  ;;  %3346 = vpow2.f32 %v1878_v25  ;;  %v1880_v5 = vmul.f32 1.442695, %v1801_v13  ;;  %v4379_v35 = vmul.f32 0.5, %v4273_v43  ;;  %v1739_v60 = vsub.f32 0.0, %v843_v0 }
 0x1ad   : > { %6033 = vst [vmem:[#allocation70_spill] sm:$0xff] %v4372_v52  ;;  %v908_v21 = vmul.f32 0.3275911, %v844_v49  ;;  %v4381_v36 = vpop.eup %3336  ;;  %3348 = vrcp.f32 %v967_v51  ;;  %v845_v10 = vand.u32 2147483647, %v4356_v26  ;;  %v970_v42 = vadd.f32 1.0, %v906_v27 }
 0x1ae   : > { %6034 = vst [vmem:[#allocation71_spill] sm:$0xff] %v4379_v35  ;;  %v4385_v1 = vmul.f32 0.70710677, %v4360_v15  ;;  %3350 = vpow2.f32 %v1876_v46  ;;  %v4388_v54 = vmul.f32 0.5, %v4299_v19  ;;  %v846_v23 = vand.u32 2147483647, %v4368_v47 }
 0x1af   : > { %v4391_v25 = vpop.eup %3338  ;;  %3352 = vrcp.f32 %v969_v8  ;;  %v1882_v43 = vmul.f32 1.442695, %v1802_v37  ;;  %v1804_v13 = vmul.f32 %v1740_v45, %v844_v49  ;;  %v4394_v51 = vmul.f32 0.70710677, %v4376_v53 }
 0x1b0   : > { %6035 = vst [vmem:[#allocation72_spill] sm:$0xff] %v4385_v1  ;;  %6036 = vst [vmem:[#allocation73_spill] sm:$0xff] %v4388_v54  ;;  %v4396_v35 = vpop.eup %3340  ;;  %3354 = vpow2.f32 %v1880_v5  ;;  %v972_v26 = vadd.f32 1.0, %v908_v21  ;;  %v907_v52 = vmul.f32 0.3275911, %v843_v0  ;;  %v4400_v46 = vadd.f32 %v4064_v58, %v4020_v34 }
 0x1b1   : > { %6037 = vst [vmem:[#allocation74_spill] sm:$0xff] %v4391_v25  ;;  %6038 = vst [vmem:[#allocation75_spill] sm:$0xff] %v4394_v51  ;;  %v1803_v19 = vmul.f32 %v1739_v60, %v843_v0  ;;  %v1741_v27 = vsub.f32 0.0, %v845_v10  ;;  %v848_v54 = vand.u32 2147483647, %v4385_v1  ;;  %v4405_v37 = vadd.f32 %v4069_v63, %v3992_v3  ;;  %v4407_v45 = vpop.eup %3342 }
 0x1b2   : > { %6039 = vst [vmem:[#allocation76_spill] sm:$0xff] %v4396_v35  ;;  %6040 = vst [vmem:[#allocation77_spill] sm:$0xff] %v4407_v45  ;;  %3356 = vrcp.f32 %v970_v42  ;;  %v4410_v49 = vmul.f32 0.5, %v4311_v39  ;;  %v909_v21 = vmul.f32 0.3275911, %v845_v10  ;;  %v1742_v8 = vsub.f32 0.0, %v846_v23 }
 0x1b3   : > { %3358 = vpow2.f32 %v1882_v43  ;;  %v1886_v5 = vmul.f32 1.442695, %v1804_v13  ;;  %v910_v58 = vmul.f32 0.3275911, %v846_v23  ;;  %v847_v60 = vand.u32 2147483647, %v4394_v51 }
 0x1b4   : > { %6041 = vst [vmem:[#allocation78_spill] sm:$0xff] %v4410_v49  ;;  %v4413_v0 = vpop.eup %3344  ;;  %v971_v1 = vadd.f32 1.0, %v907_v52  ;;  %v4416_v47 = vmul.f32 0.5, %v4331_v33  ;;  %v4419_v63 = vmul.f32 0.70710677, %v4400_v46  ;;  %v4423_v39 = vadd.f32 %v4075_v6, %v3994_v4 }
 0x1b5   : > { %6042 = vst [vmem:[#allocation79_spill] sm:$0xff] %v4413_v0  ;;  %v1884_v42 = vmul.f32 1.442695, %v1803_v19  ;;  %v1805_v49 = vmul.f32 %v1741_v27, %v845_v10  ;;  %v1744_v43 = vsub.f32 0.0, %v848_v54  ;;  %v4426_v13 = vmul.f32 0.70710677, %v4405_v37 }
 0x1b6   : > { %6043 = vst [vmem:[#allocation80_spill] sm:$0xff] %v4416_v47  ;;  %6044 = vst [vmem:[#allocation81_spill] sm:$0xff] %v4419_v63  ;;  %v4428_v51 = vpop.eup %3346  ;;  %3360 = vrcp.f32 %v972_v26  ;;  %v973_v52 = vadd.f32 1.0, %v909_v21  ;;  %v1806_v45 = vmul.f32 %v1742_v8, %v846_v23  ;;  %v4432_v33 = vadd.f32 %v4077_v7, %v4016_v31  ;;  %v4446_v7 = vpop.f32.mrb[29].mxu0 }
 0x1b7   : > { %6045 = vst [vmem:[#allocation82_spill] sm:$0xff] %v4426_v13  ;;  %6046 = vst [vmem:[#allocation83_spill] sm:$0xff] %v4428_v51  ;;  %v4434_v47 = vpop.eup %3348  ;;  %3362 = vpow2.f32 %v1886_v5  ;;  %v974_v6 = vadd.f32 1.0, %v910_v58  ;;  %v912_v0 = vmul.f32 0.3275911, %v848_v54  ;;  %v1743_v19 = vsub.f32 0.0, %v847_v60 }
 0x1b8   : > { %v4436_v10 = vpop.eup %3350  ;;  %v4440_v27 = vmul.f32 %v4318_v18, %v4099_v30  ;;  %3364 = vrcp.f32 %v971_v1  ;;  %v849_v26 = vand.u32 2147483647, %v4419_v63  ;;  %v4444_v23 = vmul.f32 0.70710677, %v4423_v39  ;;  %v4448_v21 = vpop.f32.mrb[29].mxu1 }
 0x1b9   : > { %6047 = vst [vmem:[#allocation84_spill] sm:$0xff] %v4436_v10  ;;  %v4450_v8 = vpop.eup %3352  ;;  %3366 = vpow2.f32 %v1884_v42  ;;  %v1888_v5 = vmul.f32 1.442695, %v1805_v49  ;;  %v1808_v58 = vmul.f32 %v1744_v43, %v848_v54  ;;  %v850_v51 = vand.u32 2147483647, %v4426_v13 }
 0x1ba   : > { %6048 = vst [vmem:[#allocation85_spill] sm:$0xff] %v4444_v23  ;;  %6049 = vst [vmem:[#allocation86_spill] sm:$0xff] %v4450_v8  ;;  %v4453_v10 = vpop.eup %3354  ;;  %3368 = vrcp.f32 %v973_v52  ;;  %v1890_v30 = vmul.f32 1.442695, %v1806_v45  ;;  %v911_v18 = vmul.f32 0.3275911, %v847_v60  ;;  %v1807_v25 = vmul.f32 %v1743_v19, %v847_v60 }
 0x1bb   : > { %6050 = vst [vmem:[#allocation87_spill] sm:$0xff] %v4453_v10  ;;  %v4456_v1 = vmul.f32 0.70710677, %v4432_v33  ;;  %3370 = vrcp.f32 %v974_v6  ;;  %v976_v63 = vadd.f32 1.0, %v912_v0  ;;  %v4460_v35 = vadd.f32 %v4081_v11, %v4020_v34 }
 0x1bc   : > { %v4462_v42 = vpop.eup %3356  ;;  %v913_v54 = vmul.f32 0.3275911, %v849_v26  ;;  %v1745_v49 = vsub.f32 0.0, %v849_v26  ;;  %v852_v43 = vand.u32 2147483647, %v4444_v23  ;;  %v4467_v45 = vadd.f32 %v4087_v24, %v3992_v3 }
 0x1bd   : > { %6051 = vst [vmem:[#allocation88_spill] sm:$0xff] %v4456_v1  ;;  %6052 = vst [vmem:[#allocation89_spill] sm:$0xff] %v4462_v42  ;;  %v4469_v52 = vpop.eup %3358  ;;  %3372 = vpow2.f32 %v1888_v5  ;;  %v1894_v6 = vmul.f32 1.442695, %v1808_v58  ;;  %v914_v0 = vmul.f32 0.3275911, %v850_v51  ;;  %v4480_v24 = vadd.f32 %v4096_v29, %v3994_v4 }
 0x1be   : > { %6053 = vst [vmem:[#allocation90_spill] sm:$0xff] %v4469_v52  ;;  %v1746_v60 = vsub.f32 0.0, %v850_v51  ;;  %v4472_v19 = vmul.f32 0.5, %v4340_v9  ;;  %3374 = vpow2.f32 %v1890_v30  ;;  %v975_v11 = vadd.f32 1.0, %v911_v18 }
 0x1bf   : > { %v851_v13 = vand.u32 2147483647, %v4456_v1  ;;  %3376 = vrcp.f32 %v976_v63  ;;  %v1892_v42 = vmul.f32 1.442695, %v1807_v25  ;;  %v4476_v23 = vmul.f32 0.70710677, %v4460_v35 }
 0x1c0   : > { %6054 = vst [vmem:[#allocation91_spill] sm:$0xff] %v4472_v19  ;;  %v4482_v5 = vpop.eup %3360  ;;  %v977_v58 = vadd.f32 1.0, %v913_v54  ;;  %v1809_v52 = vmul.f32 %v1745_v49, %v849_v26  ;;  %v1748_v10 = vsub.f32 0.0, %v852_v43  ;;  %v4485_v9 = vmul.f32 0.70710677, %v4467_v45 }
 0x1c1   : > { %6055 = vst [vmem:[#allocation92_spill] sm:$0xff] %v4476_v23  ;;  %6056 = vst [vmem:[#allocation93_spill] sm:$0xff] %v4482_v5  ;;  %v4487_v30 = vpop.eup %3362  ;;  %v4490_v63 = vmul.f32 0.5, %v4360_v15  ;;  %3378 = vpow2.f32 %v1894_v6  ;;  %v978_v25 = vadd.f32 1.0, %v914_v0  ;;  %v1810_v18 = vmul.f32 %v1746_v60, %v850_v51 }
 0x1c2   : > { %6057 = vst [vmem:[#allocation94_spill] sm:$0xff] %v4485_v9  ;;  %6058 = vst [vmem:[#allocation95_spill] sm:$0xff] %v4487_v30  ;;  %v4492_v19 = vpop.eup %3364  ;;  %3380 = vrcp.f32 %v975_v11  ;;  %v916_v29 = vmul.f32 0.3275911, %v852_v43  ;;  %v1747_v1 = vsub.f32 0.0, %v851_v13  ;;  %v4496_v26 = vadd.f32 %v4104_v61, %v4016_v31 }
 0x1c3   : > { %6059 = vst [vmem:[#allocation96_spill] sm:$0xff] %v4490_v63  ;;  %6060 = vst [vmem:[#allocation97_spill] sm:$0xff] %v4492_v19  ;;  %v4498_v54 = vpop.eup %3366  ;;  %v4501_v49 = vmul.f32 0.5, %v4376_v53  ;;  %3382 = vpow2.f32 %v1892_v42  ;;  %v853_v15 = vand.u32 2147483647, %v4476_v23  ;;  %v1812_v60 = vmul.f32 %v1748_v10, %v852_v43 }
 0x1c4   : > { %6061 = vst [vmem:[#allocation98_spill] sm:$0xff] %v4498_v54  ;;  %v4505_v6 = vmul.f32 0.70710677, %v4480_v24  ;;  %v4507_v51 = vpop.eup %3368  ;;  %3384 = vrcp.f32 %v977_v58  ;;  %v1896_v0 = vmul.f32 1.442695, %v1809_v52  ;;  %v4513_v63 = vmul.f32 0.5, %v4400_v46 }
 0x1c5   : > { %6062 = vst [vmem:[#allocation99_spill] sm:$0xff] %v4501_v49  ;;  %6064 = vst [vmem:[#allocation101_spill] sm:$0xff] %v4507_v51  ;;  %v854_v11 = vand.u32 2147483647, %v4485_v9  ;;  %v4510_v61 = vpop.eup %3370  ;;  %3386 = vrcp.f32 %v978_v25  ;;  %v1898_v53 = vmul.f32 1.442695, %v1810_v18  ;;  %v1811_v30 = vmul.f32 %v1747_v1, %v851_v13 }
 0x1c6   : > { %6063 = vst [vmem:[#allocation100_spill] sm:$0xff] %v4505_v6  ;;  %6065 = vst [vmem:[#allocation102_spill] sm:$0xff] %v4510_v61  ;;  %v915_v42 = vmul.f32 0.3275911, %v851_v13  ;;  %v4515_v49 = vpop.f32.mrb[30].mxu0  ;;  %v980_v23 = vadd.f32 1.0, %v916_v29  ;;  %v4522_v10 = vadd.f32 %v4106_v12, %v4020_v34  ;;  %v4529_v25 = vadd.f32 %v4119_v57, %v3992_v3 }
 0x1c7   : > { %6066 = vst [vmem:[#allocation103_spill] sm:$0xff] %v4513_v63  ;;  %v4518_v54 = vmul.f32 0.70710677, %v4496_v26  ;;  %v4524_v43 = vpop.eup %3372  ;;  %v917_v52 = vmul.f32 0.3275911, %v853_v15  ;;  %v1749_v58 = vsub.f32 0.0, %v853_v15  ;;  %3388 = vpow2.f32 %v1896_v0 }
 0x1c8   : > { %6068 = vst [vmem:[#allocation105_spill] sm:$0xff] %v4524_v43  ;;  %v856_v46 = vand.u32 2147483647, %v4505_v6  ;;  %v4531_v18 = vpop.f32.mrb[30].mxu1  ;;  %v4533_v13 = vpop.eup %3374  ;;  %v1902_v1 = vmul.f32 1.442695, %v1812_v60  ;;  %3390 = vpow2.f32 %v1898_v53 }
 0x1c9   : > { %6067 = vst [vmem:[#allocation104_spill] sm:$0xff] %v4518_v54  ;;  %6069 = vst [vmem:[#allocation106_spill] sm:$0xff] %v4533_v13  ;;  %v918_v29 = vmul.f32 0.3275911, %v854_v11  ;;  %v1750_v9 = vsub.f32 0.0, %v854_v11  ;;  %v4535_v12 = vpop.eup %3376  ;;  %v4538_v63 = vmul.f32 0.5, %v4405_v37  ;;  %3392 = vrcp.f32 %v980_v23 }
 0x1ca   : > { %6070 = vst [vmem:[#allocation107_spill] sm:$0xff] %v4535_v12  ;;  %v979_v43 = vadd.f32 1.0, %v915_v42  ;;  %v6072_v6 = vld [vmem:[#allocation19_spill] sm:$0xff]  ;;  %v1900_v57 = vmul.f32 1.442695, %v1811_v30  ;;  %v981_v13 = vadd.f32 1.0, %v917_v52  ;;  %v1813_v12 = vmul.f32 %v1749_v58, %v853_v15 }
 0x1cb   : > { %6071 = vst [vmem:[#allocation108_spill] sm:$0xff] %v4538_v63  ;;  %v4542_v61 = vadd.f32 %v6072_v6, %v3994_v4  ;;  %v855_v5 = vand.u32 2147483647, %v4518_v54  ;;  %v4546_v0 = vmul.f32 0.70710677, %v4522_v10  ;;  %v4548_v60 = vpop.eup %3378  ;;  %v1752_v51 = vsub.f32 0.0, %v856_v46 }
 0x1cc   : > { %6074 = vst [vmem:[#allocation109_spill] sm:$0xff] %v4548_v60  ;;  %v4551_v37 = vmul.f32 0.70710677, %v4529_v25  ;;  %v4553_v53 = vpop.eup %3380  ;;  %v4556_v6 = vmul.f32 0.5, %v4423_v39  ;;  %3394 = vpow2.f32 %v1902_v1  ;;  %v982_v23 = vadd.f32 1.0, %v918_v29  ;;  %v6081_v52 = vld [vmem:[#allocation20_spill] sm:$0xff] }
 0x1cd   : > { %6073 = vst [vmem:[#allocation19_spill] sm:$0xff] %v4546_v0  ;;  %6076 = vst [vmem:[#allocation111_spill] sm:$0xff] %v4553_v53  ;;  %v1814_v30 = vmul.f32 %v1750_v9, %v854_v11  ;;  %v4558_v42 = vpop.eup %3382  ;;  %v4561_v63 = vmul.f32 0.5, %v4432_v33  ;;  %3396 = vrcp.f32 %v979_v43  ;;  %v4564_v15 = vmul.f32 0.70710677, %v4542_v61 }
 0x1ce   : > { %6075 = vst [vmem:[#allocation110_spill] sm:$0xff] %v4551_v37  ;;  %6077 = vst [vmem:[#allocation112_spill] sm:$0xff] %v4556_v6  ;;  %v4568_v58 = vadd.f32 %v6081_v52, %v4016_v31  ;;  %v4570_v54 = vpop.eup %3384  ;;  %3398 = vpow2.f32 %v1900_v57  ;;  %v920_v39 = vmul.f32 0.3275911, %v856_v46  ;;  %v1751_v1 = vsub.f32 0.0, %v855_v5 }
 0x1cf   : > { %6078 = vst [vmem:[#allocation113_spill] sm:$0xff] %v4558_v42  ;;  %6079 = vst [vmem:[#allocation114_spill] sm:$0xff] %v4561_v63  ;;  %v857_v9 = vand.u32 2147483647, %v4546_v0  ;;  %v4573_v11 = vpop.eup %3386  ;;  %3400 = vrcp.f32 %v981_v13  ;;  %v1904_v33 = vmul.f32 1.442695, %v1813_v12  ;;  %v1816_v29 = vmul.f32 %v1752_v51, %v856_v46 }
 0x1d0   : > { %6080 = vst [vmem:[#allocation115_spill] sm:$0xff] %v4564_v15  ;;  %6082 = vst [vmem:[#allocation20_spill] sm:$0xff] %v4570_v54  ;;  %v858_v43 = vand.u32 2147483647, %v4551_v37  ;;  %v4577_v6 = vmul.f32 0.5, %v4460_v35  ;;  %v4580_v52 = vmul.f32 0.5, %v4467_v45  ;;  %3402 = vrcp.f32 %v982_v23 }
 0x1d1   : > { %6083 = vst [vmem:[#allocation116_spill] sm:$0xff] %v4573_v11  ;;  %v1906_v63 = vmul.f32 1.442695, %v1814_v30  ;;  %v919_v57 = vmul.f32 0.3275911, %v855_v5  ;;  %v6087_v13 = vld [vmem:[#allocation21_spill] sm:$0xff]  ;;  %v4590_v51 = vpop.eup %3388  ;;  %v1815_v35 = vmul.f32 %v1751_v1, %v855_v5  ;;  %3404 = vpow2.f32 %v1904_v33 }
 0x1d2   : > { %6084 = vst [vmem:[#allocation117_spill] sm:$0xff] %v4577_v6  ;;  %6085 = vst [vmem:[#allocation118_spill] sm:$0xff] %v4580_v52  ;;  %v860_v60 = vand.u32 2147483647, %v4564_v15  ;;  %v4584_v0 = vmul.f32 0.70710677, %v4568_v58  ;;  %v4588_v12 = vadd.f32 %v6087_v13, %v4020_v34  ;;  %v4596_v23 = vpop.eup %3390 }
 0x1d3   : > { %6088 = vst [vmem:[#allocation21_spill] sm:$0xff] %v4590_v51  ;;  %v984_v46 = vadd.f32 1.0, %v920_v39  ;;  %v1753_v37 = vsub.f32 0.0, %v857_v9  ;;  %v6089_v45 = vld [vmem:[#allocation23_spill] sm:$0xff]  ;;  %v1910_v30 = vmul.f32 1.442695, %v1816_v29  ;;  %v4598_v11 = vpop.eup %3392  ;;  %3406 = vpow2.f32 %v1906_v63 }
 0x1d4   : > { %6086 = vst [vmem:[#allocation119_spill] sm:$0xff] %v4584_v0  ;;  %v4594_v52 = vadd.f32 %v6089_v45, %v3992_v3  ;;  %6090 = vst [vmem:[#allocation23_spill] sm:$0xff] %v4596_v23  ;;  %v921_v15 = vmul.f32 0.3275911, %v857_v9  ;;  %v1754_v6 = vsub.f32 0.0, %v858_v43  ;;  %v4601_v13 = vmul.f32 0.5, %v4480_v24 }
 0x1d5   : > { %6091 = vst [vmem:[#allocation120_spill] sm:$0xff] %v4598_v11  ;;  %v922_v51 = vmul.f32 0.3275911, %v858_v43  ;;  %v6093_v5 = vld [vmem:[#allocation25_spill] sm:$0xff]  ;;  %v4607_v1 = vpop.f32.mrb[31].mxu0  ;;  %v4609_v45 = vpop.f32.mrb[31].mxu1  ;;  %3408 = vrcp.f32 %v984_v46 }
 0x1d6   : > { %6092 = vst [vmem:[#allocation121_spill] sm:$0xff] %v4601_v13  ;;  %v4605_v39 = vadd.f32 %v6093_v5, %v3994_v4  ;;  %v983_v23 = vadd.f32 1.0, %v919_v57  ;;  %v1756_v33 = vsub.f32 0.0, %v860_v60  ;;  %v859_v29 = vand.u32 2147483647, %v4584_v0  ;;  %v4615_v63 = vpop.eup %3394 }
 0x1d7   : > { %v4613_v42 = vmul.f32 0.70710677, %v4588_v12  ;;  %6095 = vst [vmem:[#allocation122_spill] sm:$0xff] %v4615_v63  ;;  %v1908_v24 = vmul.f32 1.442695, %v1815_v35  ;;  %v1817_v13 = vmul.f32 %v1753_v37, %v857_v9  ;;  %v4620_v5 = vpop.eup %3396  ;;  %3410 = vpow2.f32 %v1910_v30  ;;  %v6100_v37 = vld [vmem:[#allocation27_spill] sm:$0xff] }
 0x1d8   : > { %v4618_v11 = vmul.f32 0.70710677, %v4594_v52  ;;  %v4623_v54 = vmul.f32 0.5, %v4496_v26  ;;  %v985_v57 = vadd.f32 1.0, %v921_v15  ;;  %v1818_v53 = vmul.f32 %v1754_v6, %v858_v43  ;;  %v4625_v0 = vpop.eup %3398 }
 0x1d9   : > { %6094 = vst [vmem:[#allocation25_spill] sm:$0xff] %v4613_v42  ;;  %6098 = vst [vmem:[#allocation125_spill] sm:$0xff] %v4625_v0  ;;  %v986_v19 = vadd.f32 1.0, %v922_v51  ;;  %v924_v8 = vmul.f32 0.3275911, %v860_v60  ;;  %v4632_v9 = vadd.f32 %v6100_v37, %v4016_v31  ;;  %v4634_v46 = vpop.eup %3400  ;;  %3412 = vrcp.f32 %v983_v23  ;;  %v6104_v0 = vld [vmem:[#allocation28_spill] sm:$0xff] }
 0x1da   : > { %6096 = vst [vmem:[#allocation123_spill] sm:$0xff] %v4618_v11  ;;  %6097 = vst [vmem:[#allocation124_spill] sm:$0xff] %v4623_v54  ;;  %v4628_v63 = vmul.f32 0.70710677, %v4605_v39  ;;  %v1820_v35 = vmul.f32 %v1756_v33, %v860_v60  ;;  %v1755_v30 = vsub.f32 0.0, %v859_v29  ;;  %v4637_v15 = vpop.eup %3402  ;;  %3414 = vpow2.f32 %v1908_v24 }
 0x1db   : > { %6101 = vst [vmem:[#allocation27_spill] sm:$0xff] %v4634_v46  ;;  %v861_v26 = vand.u32 2147483647, %v4613_v42  ;;  %6102 = vst [vmem:[#allocation127_spill] sm:$0xff] %v4637_v15  ;;  %v1912_v6 = vmul.f32 1.442695, %v1817_v13  ;;  %3416 = vrcp.f32 %v985_v57  ;;  %v4645_v46 = vadd.f32 %v6104_v0, %v4020_v34  ;;  %v4652_v13 = vpop.eup %3404 }
 0x1dc   : > { %6099 = vst [vmem:[#allocation126_spill] sm:$0xff] %v4628_v63  ;;  %v862_v43 = vand.u32 2147483647, %v4618_v11  ;;  %v4641_v51 = vmul.f32 0.70710677, %v4632_v9  ;;  %3418 = vrcp.f32 %v986_v19  ;;  %v988_v60 = vadd.f32 1.0, %v924_v8 }
 0x1dd   : > { %v1914_v54 = vmul.f32 1.442695, %v1818_v53  ;;  %v923_v37 = vmul.f32 0.3275911, %v859_v29  ;;  %v864_v23 = vand.u32 2147483647, %v4628_v63  ;;  %v4650_v33 = vadd.f32 %v4162_v14, %v3992_v3  ;;  %v4654_v53 = vpop.eup %3406 }
 0x1de   : > { %6103 = vst [vmem:[#allocation128_spill] sm:$0xff] %v4641_v51  ;;  %6105 = vst [vmem:[#allocation28_spill] sm:$0xff] %v4652_v13  ;;  %v1918_v24 = vmul.f32 1.442695, %v1820_v35  ;;  %v1819_v11 = vmul.f32 %v1755_v30, %v859_v29  ;;  %v925_v42 = vmul.f32 0.3275911, %v861_v26  ;;  %3420 = vpow2.f32 %v1912_v6 }
 0x1df   : > { %v1757_v57 = vsub.f32 0.0, %v861_v26  ;;  %6106 = vst [vmem:[#allocation129_spill] sm:$0xff] %v4654_v53  ;;  %v1758_v15 = vsub.f32 0.0, %v862_v43  ;;  %v863_v0 = vand.u32 2147483647, %v4641_v51  ;;  %v4661_v19 = vmul.f32 0.5, %v4522_v10  ;;  %v4666_v29 = vpop.eup %3408 }
 0x1e0   : > { %v4658_v8 = vmul.f32 0.70710677, %v4645_v46  ;;  %v4664_v14 = vmul.f32 0.5, %v4529_v25  ;;  %3422 = vpow2.f32 %v1914_v54  ;;  %v987_v35 = vadd.f32 1.0, %v923_v37  ;;  %6110 = vst [vmem:[#allocation133_spill] sm:$0xff] %v4666_v29 }
 0x1e1   : > { %6108 = vst [vmem:[#allocation131_spill] sm:$0xff] %v4661_v19  ;;  %3424 = vrcp.f32 %v988_v60  ;;  %v926_v30 = vmul.f32 0.3275911, %v862_v43  ;;  %v1760_v63 = vsub.f32 0.0, %v864_v23  ;;  %v4669_v6 = vmul.f32 0.70710677, %v4650_v33  ;;  %v4671_v51 = vpop.eup %3410 }
 0x1e2   : > { %6107 = vst [vmem:[#allocation130_spill] sm:$0xff] %v4658_v8  ;;  %6109 = vst [vmem:[#allocation132_spill] sm:$0xff] %v4664_v14  ;;  %3426 = vpow2.f32 %v1918_v24  ;;  %v1916_v53 = vmul.f32 1.442695, %v1819_v11  ;;  %v1821_v13 = vmul.f32 %v1757_v57, %v861_v26  ;;  %v4675_v10 = vadd.f32 %v4170_v17, %v3994_v4 }
 0x1e3   : > { %6111 = vst [vmem:[#allocation134_spill] sm:$0xff] %v4669_v6  ;;  %6112 = vst [vmem:[#allocation135_spill] sm:$0xff] %v4671_v51  ;;  %v989_v25 = vadd.f32 1.0, %v925_v42  ;;  %v1822_v54 = vmul.f32 %v1758_v15, %v862_v43  ;;  %v1759_v37 = vsub.f32 0.0, %v863_v0  ;;  %v865_v14 = vand.u32 2147483647, %v4658_v8  ;;  %v4678_v60 = vpop.eup %3412 }
 0x1e4   : > { %v4681_v19 = vmul.f32 0.5, %v4542_v61  ;;  %v4684_v29 = vmul.f32 0.5, %v4568_v58  ;;  %3428 = vrcp.f32 %v987_v35  ;;  %v928_v11 = vmul.f32 0.3275911, %v864_v23  ;;  %v4686_v26 = vpop.eup %3414  ;;  %v6116_v15 = vld [vmem:[#allocation32_spill] sm:$0xff] }
 0x1e5   : > { %6115 = vst [vmem:[#allocation138_spill] sm:$0xff] %v4686_v26  ;;  %v990_v24 = vadd.f32 1.0, %v926_v30  ;;  %v1824_v17 = vmul.f32 %v1760_v63, %v864_v23  ;;  %v866_v42 = vand.u32 2147483647, %v4669_v6  ;;  %v4691_v43 = vadd.f32 %v6116_v15, %v4016_v31  ;;  %v4693_v57 = vpop.eup %3416 }
 0x1e6   : > { %6113 = vst [vmem:[#allocation136_spill] sm:$0xff] %v4681_v19  ;;  %6114 = vst [vmem:[#allocation137_spill] sm:$0xff] %v4684_v29  ;;  %3430 = vpow2.f32 %v1916_v53  ;;  %v1920_v61 = vmul.f32 1.442695, %v1821_v13  ;;  %v927_v19 = vmul.f32 0.3275911, %v863_v0  ;;  %v4698_v35 = vpop.eup %3418  ;;  %v1823_v30 = vmul.f32 %v1759_v37, %v863_v0 }
 0x1e7   : > { %6117 = vst [vmem:[#allocation32_spill] sm:$0xff] %v4693_v57  ;;  %v4696_v58 = vmul.f32 0.70710677, %v4675_v10  ;;  %6119 = vst [vmem:[#allocation140_spill] sm:$0xff] %v4698_v35  ;;  %3432 = vrcp.f32 %v989_v25  ;;  %v1922_v8 = vmul.f32 1.442695, %v1822_v54  ;;  %v4705_v15 = vadd.f32 %v4175_v48, %v4020_v34 }
 0x1e8   : > { %v1761_v63 = vsub.f32 0.0, %v865_v14  ;;  %v992_v23 = vadd.f32 1.0, %v928_v11  ;;  %v929_v6 = vmul.f32 0.3275911, %v865_v14  ;;  %v4701_v29 = vmul.f32 0.70710677, %v4691_v43  ;;  %v4707_v13 = vpop.eup %3420 }
 0x1e9   : > { %6118 = vst [vmem:[#allocation139_spill] sm:$0xff] %v4696_v58  ;;  %6121 = vst [vmem:[#allocation142_spill] sm:$0xff] %v4707_v13  ;;  %3434 = vrcp.f32 %v990_v24  ;;  %v1926_v53 = vmul.f32 1.442695, %v1824_v17  ;;  %v1762_v51 = vsub.f32 0.0, %v866_v42  ;;  %v6122_v35 = vld [vmem:[#allocation33_spill] sm:$0xff] }
 0x1ea   : > { %6120 = vst [vmem:[#allocation141_spill] sm:$0xff] %v4701_v29  ;;  %v4711_v25 = vadd.f32 %v6122_v35, %v3992_v3  ;;  %v4713_v0 = vpop.eup %3422  ;;  %3436 = vpow2.f32 %v1920_v61  ;;  %v991_v54 = vadd.f32 1.0, %v927_v19  ;;  %v930_v37 = vmul.f32 0.3275911, %v866_v42 }
 0x1eb   : > { %6123 = vst [vmem:[#allocation33_spill] sm:$0xff] %v4713_v0  ;;  %v868_v11 = vand.u32 2147483647, %v4696_v58  ;;  %v4716_v26 = vpop.eup %3424  ;;  %v4719_v48 = vmul.f32 0.5, %v4588_v12  ;;  %3438 = vpow2.f32 %v1922_v8  ;;  %v1924_v24 = vmul.f32 1.442695, %v1823_v30 }
 0x1ec   : > { %6124 = vst [vmem:[#allocation143_spill] sm:$0xff] %v4716_v26  ;;  %v1825_v17 = vmul.f32 %v1761_v63, %v865_v14  ;;  %v4721_v13 = vpop.eup %3426  ;;  %3440 = vrcp.f32 %v992_v23  ;;  %v993_v35 = vadd.f32 1.0, %v929_v6  ;;  %v867_v57 = vand.u32 2147483647, %v4701_v29  ;;  %v6129_v12 = vld [vmem:[#allocation35_spill] sm:$0xff]  ;;  %v2456_v63 = vld [vmem:[#allocation7 + $0xf0] sm:$0xff] }
 0x1ed   : > { %6125 = vst [vmem:[#allocation144_spill] sm:$0xff] %v4719_v48  ;;  %6126 = vst [vmem:[#allocation145_spill] sm:$0xff] %v4721_v13  ;;  %v4725_v61 = vmul.f32 0.70710677, %v4705_v15  ;;  %3442 = vpow2.f32 %v1926_v53  ;;  %v1826_v19 = vmul.f32 %v1762_v51, %v866_v42  ;;  %v4728_v58 = vmul.f32 0.70710677, %v4711_v25 }
 0x1ee   : > { %v4732_v0 = vadd.f32 %v6129_v12, %v3994_v4  ;;  %v4734_v8 = vpop.eup %3428  ;;  %v4737_v14 = vmul.f32 0.5, %v4594_v52  ;;  %3444 = vrcp.f32 %v991_v54  ;;  %v994_v6 = vadd.f32 1.0, %v930_v37  ;;  %v2457_v23 = vld [vmem:[#allocation7 + $0xf8] sm:$0xff]  ;;  %v2440_v12 = vld [vmem:[#allocation7 + $0x70] sm:$0xff] }
 0x1ef   : > { %6127 = vst [vmem:[#allocation146_spill] sm:$0xff] %v4725_v61  ;;  %6128 = vst [vmem:[#allocation147_spill] sm:$0xff] %v4728_v58  ;;  %v1764_v30 = vsub.f32 0.0, %v868_v11  ;;  %v4740_v53 = vmul.f32 0.5, %v4605_v39  ;;  %v4743_v51 = vmul.f32 0.5, %v4632_v9  ;;  %3446 = vpow2.f32 %v1924_v24  ;;  %v2441_v37 = vld [vmem:[#allocation7 + $0x78] sm:$0xff] }
 0x1f0   : > { %6130 = vst [vmem:[#allocation35_spill] sm:$0xff] %v4734_v8  ;;  %6131 = vst [vmem:[#allocation148_spill] sm:$0xff] %v4737_v14  ;;  %v1928_v42 = vmul.f32 1.442695, %v1825_v17  ;;  %v4745_v29 = vpop.eup %3430  ;;  %3448 = vrcp.f32 %v993_v35  ;;  %v932_v13 = vmul.f32 0.3275911, %v868_v11  ;;  %v3182_v9 = vpack.c.bf16 %v2457_v23, %v2456_v63 }
 0x1f1   : > { %6132 = vst [vmem:[#allocation149_spill] sm:$0xff] %v4740_v53  ;;  %6133 = vst [vmem:[#allocation150_spill] sm:$0xff] %v4743_v51  ;;  %v1763_v52 = vsub.f32 0.0, %v867_v57  ;;  %v869_v54 = vand.u32 2147483647, %v4725_v61  ;;  %v4748_v14 = vpop.eup %3432  ;;  %v4755_v24 = vmul.f32 0.5, %v4645_v46  ;;  %3450 = vrcp.f32 %v994_v6 }
 0x1f2   : > { %6134 = vst [vmem:[#allocation151_spill] sm:$0xff] %v4745_v29  ;;  %6135 = vst [vmem:[#allocation152_spill] sm:$0xff] %v4748_v14  ;;  %v1930_v48 = vmul.f32 1.442695, %v1826_v19  ;;  %v870_v39 = vand.u32 2147483647, %v4728_v58  ;;  %v1828_v35 = vmul.f32 %v1764_v30, %v868_v11  ;;  %3452 = vpow2.f32 %v1928_v42  ;;  %3183 = vmatprep.subr.bf16.mxu0 %v3182_v9 }
 0x1f3   : > { %v4752_v53 = vmul.f32 0.70710677, %v4732_v0  ;;  %6137 = vst [vmem:[#allocation154_spill] sm:$0xff] %v4755_v24  ;;  %v4758_v17 = vmul.f32 0.5, %v4650_v33  ;;  %v4760_v51 = vpop.eup %3434  ;;  %v931_v61 = vmul.f32 0.3275911, %v867_v57  ;;  %v1827_v6 = vmul.f32 %v1763_v52, %v867_v57 }
 0x1f4   : > { %6139 = vst [vmem:[#allocation156_spill] sm:$0xff] %v4760_v51  ;;  %v6140_v19 = vld [vmem:[#allocation36_spill] sm:$0xff]  ;;  %v6141_v29 = vld [vmem:[#allocation37_spill] sm:$0xff]  ;;  %v2488_v46 = vld [vmem:[#allocation7 + $0x1f0] sm:$0xff]  ;;  %v4770_v24 = vpop.eup %3436  ;;  %v996_v33 = vadd.f32 1.0, %v932_v13  ;;  %v1765_v11 = vsub.f32 0.0, %v869_v54  ;;  %v3184_v30 = vpack.c.bf16 %v2441_v37, %v2440_v12  ;;  %3454 = vpow2.f32 %v1930_v48 }
 0x1f5   : > { %6136 = vst [vmem:[#allocation153_spill] sm:$0xff] %v4752_v53  ;;  %6138 = vst [vmem:[#allocation155_spill] sm:$0xff] %v4758_v17  ;;  %v4764_v58 = vadd.f32 %v6140_v19, %v4016_v31  ;;  %v4768_v63 = vadd.f32 %v6141_v29, %v4020_v34  ;;  %v2489_v23 = vld [vmem:[#allocation7 + $0x1f8] sm:$0xff]  ;;  %v2472_v17 = vld [vmem:[#allocation7 + $0x170] sm:$0xff]  ;;  %v4772_v51 = vpop.eup %3438  ;;  %v1766_v9 = vsub.f32 0.0, %v870_v39  ;;  %v995_v52 = vadd.f32 1.0, %v931_v61 }
 0x1f6   : > { %6142 = vst [vmem:[#allocation36_spill] sm:$0xff] %v4770_v24  ;;  %v2473_v42 = vld [vmem:[#allocation7 + $0x178] sm:$0xff]  ;;  %6143 = vst [vmem:[#allocation37_spill] sm:$0xff] %v4772_v51  ;;  %v872_v19 = vand.u32 2147483647, %v4752_v53  ;;  %v4778_v29 = vpop.eup %3440  ;;  %3185 = vmatpush3.bf16.msra.mxu0 %v3184_v30  ;;  %v3214_v57 = vpack.c.bf16 %v2489_v23, %v2488_v46  ;;  %v4787_v53 = vadd.f32 %v4199_v41, %v3992_v3  ;;  %3456 = vrcp.f32 %v996_v33 }
 0x1f7   : > { %v4776_v26 = vmul.f32 0.70710677, %v4764_v58  ;;  %6145 = vst [vmem:[#allocation158_spill] sm:$0xff] %v4778_v29  ;;  %v1934_v14 = vmul.f32 1.442695, %v1828_v35  ;;  %v4783_v12 = vpop.eup %3442  ;;  %v3216_v48 = vpack.c.bf16 %v2473_v42, %v2472_v17  ;;  %v1829_v29 = vmul.f32 %v1765_v11, %v869_v54 }
 0x1f8   : > { %v933_v8 = vmul.f32 0.3275911, %v869_v54  ;;  %v4781_v13 = vmul.f32 0.70710677, %v4768_v63  ;;  %6147 = vst [vmem:[#allocation160_spill] sm:$0xff] %v4783_v12  ;;  %v4789_v51 = vpop.eup %3444  ;;  %3215 = vmatprep.subr.bf16.mxu1 %v3214_v57  ;;  %v4794_v30 = vadd.f32 %v4207_v55, %v3994_v4  ;;  %v1830_v61 = vmul.f32 %v1766_v9, %v870_v39 }
 0x1f9   : > { %6144 = vst [vmem:[#allocation157_spill] sm:$0xff] %v4776_v26  ;;  %v934_v37 = vmul.f32 0.3275911, %v870_v39  ;;  %v1932_v24 = vmul.f32 1.442695, %v1827_v6  ;;  %v4796_v46 = vpop.eup %3446  ;;  %v1768_v23 = vsub.f32 0.0, %v872_v19  ;;  %3217 = vmatpush3.bf16.msra.mxu1 %v3216_v48  ;;  %3458 = vpow2.f32 %v1934_v14 }
 0x1fa   : > { %6146 = vst [vmem:[#allocation159_spill] sm:$0xff] %v4781_v13  ;;  %v871_v35 = vand.u32 2147483647, %v4776_v26  ;;  %v873_v17 = vand.u32 2147483647, %v4781_v13  ;;  %v4802_v42 = vpop.eup %3448  ;;  %v4805_v54 = vmul.f32 0.5, %v4675_v10  ;;  %3460 = vrcp.f32 %v995_v52 }
 0x1fb   : > { %v4800_v41 = vmul.f32 0.70710677, %v4787_v53  ;;  %v997_v6 = vadd.f32 1.0, %v933_v8  ;;  %v936_v11 = vmul.f32 0.3275911, %v872_v19  ;;  %v4808_v55 = vmul.f32 0.5, %v4691_v43  ;;  %v4813_v57 = vpop.eup %3450 }
 0x1fc   : > { %6149 = vst [vmem:[#allocation162_spill] sm:$0xff] %v4805_v54  ;;  %v998_v39 = vadd.f32 1.0, %v934_v37  ;;  %v4811_v9 = vmul.f32 0.70710677, %v4794_v30  ;;  %6152 = vst [vmem:[#allocation165_spill] sm:$0xff] %v4813_v57  ;;  %v1767_v13 = vsub.f32 0.0, %v871_v35  ;;  %v4816_v10 = vpop.eup %3452  ;;  %3462 = vpow2.f32 %v1932_v24 }
 0x1fd   : > { %6148 = vst [vmem:[#allocation161_spill] sm:$0xff] %v4800_v41  ;;  %6150 = vst [vmem:[#allocation163_spill] sm:$0xff] %v4808_v55  ;;  %v1936_v48 = vmul.f32 1.442695, %v1829_v29  ;;  %v874_v26 = vand.u32 2147483647, %v4800_v41  ;;  %v1832_v33 = vmul.f32 %v1768_v23, %v872_v19  ;;  %3464 = vrcp.f32 %v997_v6 }
 0x1fe   : > { %6151 = vst [vmem:[#allocation164_spill] sm:$0xff] %v4811_v9  ;;  %v1938_v8 = vmul.f32 1.442695, %v1830_v61  ;;  %v1769_v14 = vsub.f32 0.0, %v873_v17  ;;  %v4819_v43 = vmul.f32 0.5, %v4705_v15  ;;  %v1000_v37 = vadd.f32 1.0, %v936_v11  ;;  %v4821_v55 = vpop.eup %3454 }
 0x1ff   : > { %v935_v54 = vmul.f32 0.3275911, %v871_v35  ;;  %6154 = vst [vmem:[#allocation167_spill] sm:$0xff] %v4821_v55  ;;  %3466 = vrcp.f32 %v998_v39  ;;  %v937_v52 = vmul.f32 0.3275911, %v873_v17  ;;  %v6155_v41 = vld [vmem:[#allocation40_spill] sm:$0xff]  ;;  %v1831_v24 = vmul.f32 %v1767_v13, %v871_v35 }
 0x200   : > { %6153 = vst [vmem:[#allocation166_spill] sm:$0xff] %v4819_v43  ;;  %v876_v29 = vand.u32 2147483647, %v4811_v9  ;;  %v4826_v12 = vadd.f32 %v6155_v41, %v4016_v31  ;;  %3468 = vpow2.f32 %v1936_v48  ;;  %v1770_v19 = vsub.f32 0.0, %v874_v26 }
 0x201   : > { %v4830_v15 = vadd.f32 %v4214_v50, %v4020_v34  ;;  %3470 = vpow2.f32 %v1938_v8  ;;  %v1942_v61 = vmul.f32 1.442695, %v1832_v33  ;;  %v1833_v23 = vmul.f32 %v1769_v14, %v873_v17  ;;  %v4842_v50 = vpop.eup %3456  ;;  %v6159_v14 = vld [vmem:[#allocation45_spill] sm:$0xff] }
 0x202   : > { %v4833_v6 = vmul.f32 0.70710677, %v4826_v12  ;;  %3472 = vrcp.f32 %v1000_v37  ;;  %v999_v11 = vadd.f32 1.0, %v935_v54  ;;  %v938_v39 = vmul.f32 0.3275911, %v874_v26  ;;  %6158 = vst [vmem:[#allocation169_spill] sm:$0xff] %v4842_v50 }
 0x203   : > { %v4836_v9 = vmul.f32 0.70710677, %v4830_v15  ;;  %v1001_v41 = vadd.f32 1.0, %v937_v52  ;;  %v940_v48 = vmul.f32 0.3275911, %v876_v29  ;;  %v1772_v13 = vsub.f32 0.0, %v876_v29  ;;  %v4849_v37 = vpop.eup %3458 }
 0x204   : > { %6156 = vst [vmem:[#allocation40_spill] sm:$0xff] %v4833_v6  ;;  %v4840_v35 = vadd.f32 %v4233_v32, %v3992_v3  ;;  %v1940_v8 = vmul.f32 1.442695, %v1831_v24  ;;  %v1834_v17 = vmul.f32 %v1770_v19, %v874_v26  ;;  %v875_v33 = vand.u32 2147483647, %v4833_v6  ;;  %6160 = vst [vmem:[#allocation45_spill] sm:$0xff] %v4849_v37  ;;  %v4855_v32 = vpop.eup %3460 }
 0x205   : > { %6157 = vst [vmem:[#allocation168_spill] sm:$0xff] %v4836_v9  ;;  %v4847_v54 = vadd.f32 %v6159_v14, %v3994_v4  ;;  %3474 = vpow2.f32 %v1942_v61  ;;  %v1944_v52 = vmul.f32 1.442695, %v1833_v23  ;;  %v877_v43 = vand.u32 2147483647, %v4836_v9 }
 0x206   : > { %v4853_v55 = vmul.f32 0.70710677, %v4840_v35  ;;  %v4858_v24 = vmul.f32 0.5, %v4711_v25  ;;  %3476 = vrcp.f32 %v999_v11  ;;  %v1002_v26 = vadd.f32 1.0, %v938_v39  ;;  %v4863_v14 = vpop.eup %3462 }
 0x207   : > { %v4861_v19 = vmul.f32 0.70710677, %v4847_v54  ;;  %6164 = vst [vmem:[#allocation173_spill] sm:$0xff] %v4863_v14  ;;  %v4866_v61 = vmul.f32 0.5, %v4732_v0  ;;  %3478 = vrcp.f32 %v1001_v41  ;;  %v1004_v23 = vadd.f32 1.0, %v940_v48  ;;  %v4868_v6 = vpop.eup %3464 }
 0x208   : > { %6161 = vst [vmem:[#allocation170_spill] sm:$0xff] %v4853_v55  ;;  %6162 = vst [vmem:[#allocation171_spill] sm:$0xff] %v4858_v24  ;;  %v1836_v9 = vmul.f32 %v1772_v13, %v876_v29  ;;  %3480 = vpow2.f32 %v1940_v8  ;;  %v1946_v37 = vmul.f32 1.442695, %v1834_v17  ;;  %v1771_v50 = vsub.f32 0.0, %v875_v33  ;;  %v6172_v17 = vld [vmem:[#allocation38_spill] sm:$0xff] }
 0x209   : > { %6163 = vst [vmem:[#allocation172_spill] sm:$0xff] %v4861_v19  ;;  %6165 = vst [vmem:[#allocation174_spill] sm:$0xff] %v4866_v61  ;;  %v878_v25 = vand.u32 2147483647, %v4853_v55  ;;  %v4871_v11 = vpop.eup %3466  ;;  %v4874_v39 = vmul.f32 0.5, %v4764_v58  ;;  %3482 = vpow2.f32 %v1944_v52  ;;  %v1773_v14 = vsub.f32 0.0, %v877_v43 }
 0x20a   : > { %6166 = vst [vmem:[#allocation175_spill] sm:$0xff] %v4871_v11  ;;  %v939_v24 = vmul.f32 0.3275911, %v875_v33  ;;  %v4876_v0 = vpop.eup %3468  ;;  %v4879_v41 = vmul.f32 0.5, %v4768_v63  ;;  %v4882_v29 = vmul.f32 0.5, %v4787_v53  ;;  %3484 = vrcp.f32 %v1002_v26  ;;  %v6174_v63 = vld [vmem:[#allocation44_spill] sm:$0xff] }
 0x20b   : > { %6167 = vst [vmem:[#allocation176_spill] sm:$0xff] %v4874_v39  ;;  %6168 = vst [vmem:[#allocation177_spill] sm:$0xff] %v4876_v0  ;;  %v880_v48 = vand.u32 2147483647, %v4861_v19  ;;  %v4885_v13 = vpop.eup %3470  ;;  %3486 = vrcp.f32 %v1004_v23  ;;  %v1950_v8 = vmul.f32 1.442695, %v1836_v9  ;;  %v1835_v61 = vmul.f32 %v1771_v50, %v875_v33 }
 0x20c   : > { %6169 = vst [vmem:[#allocation178_spill] sm:$0xff] %v4879_v41  ;;  %6170 = vst [vmem:[#allocation179_spill] sm:$0xff] %v4882_v29  ;;  %v941_v58 = vmul.f32 0.3275911, %v877_v43  ;;  %v1147_v52 = vmul.f32 1.0614054, %v6172_v17  ;;  %v4888_v55 = vpop.eup %3472  ;;  %3488 = vpow2.f32 %v1946_v37  ;;  %v1837_v53 = vmul.f32 %v1773_v14, %v877_v43 }
 0x20d   : > { %6171 = vst [vmem:[#allocation180_spill] sm:$0xff] %v4885_v13  ;;  %6173 = vst [vmem:[#allocation38_spill] sm:$0xff] %v4888_v55  ;;  %v1774_v39 = vsub.f32 0.0, %v878_v25  ;;  %v1149_v41 = vmul.f32 1.0614054, %v6174_v63  ;;  %v1003_v0 = vadd.f32 1.0, %v939_v24  ;;  %v523_v26 = vadd.f32 %v4350_v59, %v4016_v31 }
 0x20e   : > { %v1211_v29 = vadd.f32 -1.4531521, %v1147_v52  ;;  %v942_v19 = vmul.f32 0.3275911, %v878_v25  ;;  %v1776_v13 = vsub.f32 0.0, %v880_v48  ;;  %v684_v9 = vadd.f32 %v4352_v56, %v4020_v34 }
 0x20f   : > { %v1213_v23 = vadd.f32 -1.4531521, %v1149_v41  ;;  %v4895_v11 = vpop.eup %3474  ;;  %3490 = vpow2.f32 %v1950_v8  ;;  %v1005_v37 = vadd.f32 1.0, %v941_v58  ;;  %v944_v50 = vmul.f32 0.3275911, %v880_v48 }
 0x210   : > { %6175 = vst [vmem:[#allocation44_spill] sm:$0xff] %v4895_v11  ;;  %v1275_v33 = vmul.f32 %v6172_v17, %v1211_v29  ;;  %v4898_v55 = vpop.eup %3476  ;;  %v1948_v43 = vmul.f32 1.442695, %v1835_v61  ;;  %v1838_v24 = vmul.f32 %v1774_v39, %v878_v25  ;;  %v4901_v59 = vmul.f32 0.70710677, %v523_v26 }
 0x211   : > { %6176 = vst [vmem:[#allocation181_spill] sm:$0xff] %v4898_v55  ;;  %v1277_v14 = vmul.f32 %v6174_v63, %v1213_v23  ;;  %v4903_v52 = vpop.eup %3478  ;;  %v4906_v41 = vmul.f32 0.5, %v4794_v30  ;;  %3492 = vrcp.f32 %v1003_v0  ;;  %v1952_v56 = vmul.f32 1.442695, %v1837_v53 }
 0x212   : > { %6177 = vst [vmem:[#allocation182_spill] sm:$0xff] %v4901_v59  ;;  %v1339_v8 = vadd.f32 1.4214138, %v1275_v33  ;;  %v4908_v58 = vpop.eup %3480  ;;  %v1006_v11 = vadd.f32 1.0, %v942_v19  ;;  %v1840_v29 = vmul.f32 %v1776_v13, %v880_v48  ;;  %v4910_v55 = vmul.f32 0.70710677, %v684_v9 }
 0x213   : > { %6178 = vst [vmem:[#allocation183_spill] sm:$0xff] %v4906_v41  ;;  %v1341_v57 = vadd.f32 1.4214138, %v1277_v14  ;;  %v4912_v61 = vpop.eup %3482  ;;  %3494 = vrcp.f32 %v1005_v37  ;;  %v1008_v25 = vadd.f32 1.0, %v944_v50  ;;  %v527_v30 = vadd.f32 %v4362_v38, %v3992_v3 }
 0x214   : > { %6179 = vst [vmem:[#allocation184_spill] sm:$0xff] %v4910_v55  ;;  %v1403_v39 = vmul.f32 %v6172_v17, %v1339_v8  ;;  %v4917_v23 = vpop.eup %3484  ;;  %3496 = vpow2.f32 %v1948_v43  ;;  %v1954_v0 = vmul.f32 1.442695, %v1838_v24  ;;  %v879_v19 = vand.u32 2147483647, %v4901_v59 }
 0x215   : > { %v1405_v53 = vmul.f32 %v6174_v63, %v1341_v57  ;;  %v4921_v48 = vpop.eup %3486  ;;  %v4924_v13 = vmul.f32 0.5, %v4826_v12  ;;  %v4927_v37 = vmul.f32 0.5, %v4830_v15  ;;  %3498 = vpow2.f32 %v1952_v56 }
 0x216   : > { %v1467_v50 = vadd.f32 -0.28449672, %v1403_v39  ;;  %v4929_v33 = vpop.eup %3488  ;;  %3500 = vrcp.f32 %v1006_v11  ;;  %v1958_v38 = vmul.f32 1.442695, %v1840_v29  ;;  %v881_v24 = vand.u32 2147483647, %v4910_v55 }
 0x217   : > { %6180 = vst [vmem:[#allocation185_spill] sm:$0xff] %v4924_v13  ;;  %6181 = vst [vmem:[#allocation186_spill] sm:$0xff] %v4927_v37  ;;  %v1469_v43 = vadd.f32 -0.28449672, %v1405_v53  ;;  %v4933_v57 = vmul.f32 0.5, %v4840_v35  ;;  %3502 = vrcp.f32 %v1008_v25  ;;  %v4939_v15 = vmul.f32 0.5, %v4847_v54 }
 0x218   : > { %6182 = vst [vmem:[#allocation187_spill] sm:$0xff] %v4929_v33  ;;  %v1531_v14 = vmul.f32 %v6172_v17, %v1467_v50  ;;  %v4936_v12 = vmul.f32 0.70710677, %v527_v30  ;;  %3504 = vpow2.f32 %v1954_v0  ;;  %v1775_v8 = vsub.f32 0.0, %v879_v19  ;;  %v6188_v25 = vld [vmem:[#allocation12_spill] sm:$0xff] }
 0x219   : > { %6183 = vst [vmem:[#allocation188_spill] sm:$0xff] %v4933_v57  ;;  %6185 = vst [vmem:[#allocation190_spill] sm:$0xff] %v4939_v15  ;;  %v1533_v56 = vmul.f32 %v6174_v63, %v1469_v43  ;;  %v4942_v11 = vpop.eup %3490  ;;  %v4944_v39 = vmul.f32 0.5, %v523_v26  ;;  %v943_v53 = vmul.f32 0.3275911, %v879_v19  ;;  %v4948_v35 = vadd.f32 %v4370_v28, %v3994_v4  ;;  %v6189_v43 = vld [vmem:[#allocation13_spill] sm:$0xff] }
 0x21a   : > { %6184 = vst [vmem:[#allocation189_spill] sm:$0xff] %v4936_v12  ;;  %6186 = vst [vmem:[#allocation191_spill] sm:$0xff] %v4942_v11  ;;  %v1595_v29 = vadd.f32 0.2548296, %v1531_v14  ;;  %vm2107_vm2 = vcmp.lt.f32.partialorder %v6188_v25, 0.0  ;;  %3506 = vpow2.f32 %v1958_v38  ;;  %vm2109_vm3 = vcmp.lt.f32.partialorder %v6189_v43, 0.0 }
 0x21b   : > { %6187 = vst [vmem:[#allocation192_spill] sm:$0xff] %v4944_v39  ;;  %v1597_v0 = vadd.f32 0.2548296, %v1533_v56  ;;  %v945_v50 = vmul.f32 0.3275911, %v881_v24  ;;  %v4952_v15 = vpop.eup %3492  ;;  %v4956_v26 = vmul.f32 0.5, %v684_v9  ;;  %v1839_v41 = vmul.f32 %v1775_v8, %v879_v19 }
 0x21c   : > { %v1151_v54 = vmul.f32 1.0614054, %v4275_v22  ;;  %v1659_v14 = vmul.f32 %v6172_v17, %v1595_v29  ;;  %v1777_v57 = vsub.f32 0.0, %v881_v24  ;;  %v882_v39 = vand.u32 2147483647, %v4936_v12  ;;  %v6191_v11 = vld [vmem:[#allocation43_spill] sm:$0xff] }
 0x21d   : > { %6190 = vst [vmem:[#allocation12_spill] sm:$0xff] %v4956_v26  ;;  %v1661_v28 = vmul.f32 %v6174_v63, %v1597_v0  ;;  %v1153_v38 = vmul.f32 1.0614054, %v4301_v44  ;;  %v4961_v56 = vpop.eup %3494  ;;  %v1007_v33 = vadd.f32 1.0, %v943_v53  ;;  %v4964_v59 = vmul.f32 0.5, %v527_v30  ;;  %v6194_v29 = vld [vmem:[#allocation46_spill] sm:$0xff] }
 0x21e   : > { %v1215_v37 = vadd.f32 -1.4531521, %v1151_v54  ;;  %v1979_v55 = vmul.f32 %v6191_v11, %v1659_v14  ;;  %v4967_v17 = vmul.f32 0.70710677, %v4948_v35  ;;  %v4969_v9 = vpop.eup %3496  ;;  %v1009_v26 = vadd.f32 1.0, %v945_v50  ;;  %v6199_v25 = vld [vmem:[#allocation16_spill] sm:$0xff] }
 0x21f   : > { %6192 = vst [vmem:[#allocation13_spill] sm:$0xff] %v4964_v59  ;;  %v1981_v12 = vmul.f32 %v6194_v29, %v1661_v28  ;;  %v1217_v19 = vadd.f32 -1.4531521, %v1153_v38  ;;  %v4973_v8 = vpop.eup %3498  ;;  %v1841_v54 = vmul.f32 %v1777_v57, %v881_v24  ;;  %v1778_v13 = vsub.f32 0.0, %v882_v39 }
 0x220   : > { %6193 = vst [vmem:[#allocation43_spill] sm:$0xff] %v4967_v17  ;;  %v1279_v63 = vmul.f32 %v4275_v22, %v1215_v37  ;;  %6195 = vst [vmem:[#allocation46_spill] sm:$0xff] %v4973_v8  ;;  %v2043_v0 = vsub.f32 1.0, %v1979_v55  ;;  %v4977_v30 = vadd.f32 %v4446_v7, %v4016_v31  ;;  %v4979_v11 = vpop.eup %3500  ;;  %v1956_v14 = vmul.f32 1.442695, %v1839_v41 }
 0x221   : > { %v2045_v53 = vsub.f32 1.0, %v1981_v12  ;;  %v1281_v28 = vmul.f32 %v4301_v44, %v1217_v19  ;;  %v4982_v50 = vpop.eup %3502  ;;  %3508 = vrcp.f32 %v1007_v33  ;;  %v946_v38 = vmul.f32 0.3275911, %v882_v39 }
 0x222   : > { %v1343_v59 = vadd.f32 1.4214138, %v1279_v63  ;;  %6196 = vst [vmem:[#allocation193_spill] sm:$0xff] %v4982_v50  ;;  %v2171_v37 = vsub.f32 0.0, %v2043_v0  ;;  %v884_v55 = vand.u32 2147483647, %v4967_v17  ;;  %v4985_v24 = vpop.eup %3504  ;;  %3510 = vrcp.f32 %v1009_v26 }
 0x223   : > { %6197 = vst [vmem:[#allocation194_spill] sm:$0xff] %v4985_v24  ;;  %v2173_v57 = vsub.f32 0.0, %v2045_v53  ;;  %v1345_v29 = vadd.f32 1.4214138, %v1281_v28  ;;  %v1960_v12 = vmul.f32 1.442695, %v1841_v54  ;;  %v1842_v63 = vmul.f32 %v1778_v13, %v882_v39 }
 0x224   : > { %v1407_v7 = vmul.f32 %v4275_v22, %v1343_v59  ;;  %v2235_v41 = vsel %vm2107_vm2, %v2171_v37, %v2043_v0  ;;  %v4991_v19 = vmul.f32 0.70710677, %v4977_v30  ;;  %v4993_v50 = vpop.eup %3506  ;;  %3512 = vpow2.f32 %v1956_v14  ;;  %v6200_v37 = vld [vmem:[#allocation17_spill] sm:$0xff] }
 0x225   : > { %6198 = vst [vmem:[#allocation195_spill] sm:$0xff] %v4993_v50  ;;  %v2299_v33 = vadd.f32 1.0, %v2235_v41  ;;  %v2237_v17 = vsel %vm2109_vm3, %v2173_v57, %v2045_v53  ;;  %v1409_v26 = vmul.f32 %v4301_v44, %v1345_v29  ;;  %v1010_v59 = vadd.f32 1.0, %v946_v38  ;;  %v6201_v53 = vld [vmem:[#allocation48_spill] sm:$0xff]  ;;  %v6202_v29 = vld [vmem:[#allocation18_spill] sm:$0xff] }
 0x226   : > { %v1471_v24 = vadd.f32 -0.28449672, %v1407_v7  ;;  %v2301_v8 = vadd.f32 1.0, %v2237_v17  ;;  %v1780_v28 = vsub.f32 0.0, %v884_v55  ;;  %v5002_v54 = vadd.f32 %v4448_v21, %v4020_v34  ;;  %v6250_v50 = vld [vmem:[#allocation42_spill] sm:$0xff] }
 0x227   : > { %v2363_v0 = vmul.f32 %v2299_v33, %v6199_v25  ;;  %v1473_v39 = vadd.f32 -0.28449672, %v1409_v26  ;;  %3514 = vpow2.f32 %v1960_v12  ;;  %v883_v43 = vand.u32 2147483647, %v4991_v19 }
 0x228   : > { %v1535_v13 = vmul.f32 %v4275_v22, %v1471_v24  ;;  %v2365_v41 = vmul.f32 %v2301_v8, %v6200_v37  ;;  %v1150_v57 = vmul.f32 1.0614054, %v6201_v53  ;;  %v1962_v17 = vmul.f32 1.442695, %v1842_v63  ;;  %v6204_v24 = vld [vmem:[#allocation49_spill] sm:$0xff] }
 0x229   : > { %2561 = vmatprep.mubr.f32.mxu0 %v2363_v0  ;;  %v948_v14 = vmul.f32 0.3275911, %v884_v55  ;;  %v1537_v7 = vmul.f32 %v4301_v44, %v1473_v39  ;;  %vm2111_vm4 = vcmp.lt.f32.partialorder %v6202_v29, 0.0  ;;  %3516 = vrcp.f32 %v1010_v59  ;;  %v6212_v29 = vld [vmem:[#allocation31_spill] sm:$0xff] }
 0x22a   : > { %v1599_v38 = vadd.f32 0.2548296, %v1535_v13  ;;  %2706 = vmatprep.mubr.f32.mxu1 %v2365_v41  ;;  %2562 = vmatmul.mubr.f32.vlgmr.msra.gmra.mrb[32].mxu0 %v4336_v62  ;;  %v5011_v21 = vmul.f32 0.5, %v4948_v35  ;;  %v1214_v8 = vadd.f32 -1.4531521, %v1150_v57  ;;  %v1844_v33 = vmul.f32 %v1780_v28, %v884_v55  ;;  %v6206_v13 = vld [vmem:[#allocation22_spill] sm:$0xff] }
 0x22b   : > { %v1152_v12 = vmul.f32 1.0614054, %v6204_v24  ;;  %2707 = vmatmul.mubr.f32.vlgmr.msra.gmra.mrb[32].mxu1 %v4440_v27  ;;  %v1601_v26 = vadd.f32 0.2548296, %v1537_v7  ;;  %v5017_v25 = vmul.f32 0.70710677, %v5002_v54  ;;  %v5019_v0 = vpop.eup %3508  ;;  %v5025_v39 = vadd.f32 %v4515_v49, %v3992_v3 }
 0x22c   : > { %6203 = vst [vmem:[#allocation16_spill] sm:$0xff] %v5011_v21  ;;  %v1663_v63 = vmul.f32 %v4275_v22, %v1599_v38  ;;  %vm2113_vm5 = vcmp.lt.f32.partialorder %v6206_v13, 0.0  ;;  %v1779_v62 = vsub.f32 0.0, %v883_v43  ;;  %v1278_v35 = vmul.f32 %v6201_v53, %v1214_v8  ;;  %v5027_v27 = vpop.eup %3510 }
 0x22d   : > { %6205 = vst [vmem:[#allocation17_spill] sm:$0xff] %v5017_v25  ;;  %v1216_v59 = vadd.f32 -1.4531521, %v1152_v12  ;;  %6207 = vst [vmem:[#allocation48_spill] sm:$0xff] %v5025_v39  ;;  %3518 = vpow2.f32 %v1962_v17  ;;  %v1012_v22 = vadd.f32 1.0, %v948_v14  ;;  %v1665_v28 = vmul.f32 %v4301_v44, %v1601_v26 }
 0x22e   : > { %v1983_v55 = vmul.f32 %v4285_v40, %v1663_v63  ;;  %v947_v37 = vmul.f32 0.3275911, %v883_v43  ;;  %v1342_v41 = vadd.f32 1.4214138, %v1278_v35  ;;  %v5033_v38 = vmul.f32 0.70710677, %v5025_v39  ;;  %v5040_v17 = vpop.eup %3512 }
 0x22f   : > { %v1280_v57 = vmul.f32 %v6204_v24, %v1216_v59  ;;  %v1985_v8 = vmul.f32 %v4304_v2, %v1665_v28  ;;  %v5037_v3 = vmul.f32 0.5, %v4977_v30  ;;  %v885_v49 = vand.u32 2147483647, %v5017_v25 }
 0x230   : > { %6208 = vst [vmem:[#allocation18_spill] sm:$0xff] %v5033_v38  ;;  %v2047_v7 = vsub.f32 1.0, %v1983_v55  ;;  %v1966_v40 = vmul.f32 1.442695, %v1844_v33  ;;  %v1843_v14 = vmul.f32 %v1779_v62, %v883_v43  ;;  %v1406_v44 = vmul.f32 %v6201_v53, %v1342_v41 }
 0x231   : > { %6209 = vst [vmem:[#allocation49_spill] sm:$0xff] %v5037_v3  ;;  %v1344_v12 = vadd.f32 1.4214138, %v1280_v57  ;;  %v2049_v26 = vsub.f32 1.0, %v1985_v8  ;;  %v886_v35 = vand.u32 2147483647, %v5033_v38  ;;  %v5046_v59 = vadd.f32 %v4531_v18, %v3994_v4  ;;  %v5048_v2 = vpop.eup %3514 }
 0x232   : > { %v2175_v63 = vsub.f32 0.0, %v2047_v7  ;;  %3520 = vrcp.f32 %v1012_v22  ;;  %v1011_v30 = vadd.f32 1.0, %v947_v37  ;;  %v1470_v55 = vadd.f32 -0.28449672, %v1406_v44 }
 0x233   : > { %6210 = vst [vmem:[#allocation22_spill] sm:$0xff] %v5046_v59  ;;  %v1408_v28 = vmul.f32 %v6204_v24, %v1344_v12  ;;  %v2177_v33 = vsub.f32 0.0, %v2049_v26  ;;  %v949_v62 = vmul.f32 0.3275911, %v885_v49  ;;  %v1781_v41 = vsub.f32 0.0, %v885_v49  ;;  %v5053_v57 = vpop.eup %3516 }
 0x234   : > { %v2239_v43 = vsel %vm2111_vm4, %v2175_v63, %v2047_v7  ;;  %3522 = vpow2.f32 %v1966_v40  ;;  %v1534_v4 = vmul.f32 %v6201_v53, %v1470_v55  ;;  %v1964_v37 = vmul.f32 1.442695, %v1843_v14  ;;  %v6214_v40 = vld [vmem:[#allocation14_spill] sm:$0xff]  ;;  %v6215_v14 = vld [vmem:[#allocation41_spill] sm:$0xff] }
 0x235   : > { %v2303_v8 = vadd.f32 1.0, %v2239_v43  ;;  %v1472_v18 = vadd.f32 -0.28449672, %v1408_v28  ;;  %v2241_v22 = vsel %vm2113_vm5, %v2177_v33, %v2049_v26  ;;  %v1782_v44 = vsub.f32 0.0, %v886_v35 }
 0x236   : > { %v5059_v12 = vmul.f32 0.70710677, %v5046_v59  ;;  %v2305_v63 = vadd.f32 1.0, %v2241_v22  ;;  %v1598_v39 = vadd.f32 0.2548296, %v1534_v4  ;;  %vm2110_vm6 = vcmp.lt.f32.partialorder %v6214_v40, 0.0 }
 0x237   : > { %v2367_v7 = vmul.f32 %v2303_v8, %v6212_v29  ;;  %v1536_v38 = vmul.f32 %v6204_v24, %v1472_v18  ;;  %v5063_v21 = vpop.eup %3518  ;;  %3524 = vrcp.f32 %v1011_v30  ;;  %v1013_v55 = vadd.f32 1.0, %v949_v62  ;;  %v6216_v22 = vld [vmem:[#allocation15_spill] sm:$0xff] }
 0x238   : > { %6211 = vst [vmem:[#allocation196_spill] sm:$0xff] %v5059_v12  ;;  %6213 = vst [vmem:[#allocation31_spill] sm:$0xff] %v5063_v21  ;;  %v1845_v28 = vmul.f32 %v1781_v41, %v885_v49  ;;  %v950_v13 = vmul.f32 0.3275911, %v886_v35  ;;  %v2369_v26 = vmul.f32 %v2305_v63, %v6215_v14  ;;  %v1662_v43 = vmul.f32 %v6201_v53, %v1598_v39 }
 0x239   : > { %2566 = vmatprep.mubr.f32.mxu0 %v2367_v7  ;;  %v1600_v33 = vadd.f32 0.2548296, %v1536_v38  ;;  %v1155_v8 = vmul.f32 1.0614054, %v4348_v20  ;;  %vm2112_vm7 = vcmp.lt.f32.partialorder %v6216_v22, 0.0  ;;  %3526 = vpow2.f32 %v1964_v37  ;;  %v6226_v22 = vld [vmem:[#allocation29_spill] sm:$0xff] }
 0x23a   : > { %v1846_v4 = vmul.f32 %v1782_v44, %v886_v35  ;;  %v888_v18 = vand.u32 2147483647, %v5059_v12  ;;  %v1157_v29 = vmul.f32 1.0614054, %v4381_v36  ;;  %2711 = vmatprep.mubr.f32.mxu1 %v2369_v26  ;;  %v1982_v49 = vmul.f32 %v4264_v16, %v1662_v43  ;;  %v6219_v44 = vld [vmem:[#allocation53_spill] sm:$0xff] }
 0x23b   : > { %v1664_v30 = vmul.f32 %v6204_v24, %v1600_v33  ;;  %v1219_v62 = vadd.f32 -1.4531521, %v1155_v8  ;;  %v5076_v53 = vadd.f32 %v4607_v1, %v4016_v31  ;;  %3528 = vrcp.f32 %v1013_v55 }
 0x23c   : > { %v1968_v39 = vmul.f32 1.442695, %v1845_v28  ;;  %v1221_v38 = vadd.f32 -1.4531521, %v1157_v29  ;;  %v5080_v35 = vadd.f32 %v4609_v45, %v4020_v34  ;;  %v5082_v41 = vpop.eup %3520  ;;  %v2046_v37 = vsub.f32 1.0, %v1982_v49 }
 0x23d   : > { %6217 = vst [vmem:[#allocation14_spill] sm:$0xff] %v5076_v53  ;;  %v1984_v7 = vmul.f32 %v6219_v44, %v1664_v30  ;;  %v1014_v16 = vadd.f32 1.0, %v950_v13  ;;  %v1283_v24 = vmul.f32 %v4348_v20, %v1219_v62  ;;  %v1970_v63 = vmul.f32 1.442695, %v1846_v4 }
 0x23e   : > { %6218 = vst [vmem:[#allocation41_spill] sm:$0xff] %v5080_v35  ;;  %v1784_v14 = vsub.f32 0.0, %v888_v18  ;;  %v1285_v31 = vmul.f32 %v4381_v36, %v1221_v38  ;;  %v5088_v1 = vmul.f32 0.70710677, %v5076_v53  ;;  %v5090_v55 = vpop.eup %3522  ;;  %v2174_v28 = vsub.f32 0.0, %v2046_v37 }
 0x23f   : > { %6221 = vst [vmem:[#allocation53_spill] sm:$0xff] %v5090_v55  ;;  %v2048_v34 = vsub.f32 1.0, %v1984_v7  ;;  %v1347_v45 = vadd.f32 1.4214138, %v1283_v24  ;;  %v5093_v26 = vmul.f32 0.70710677, %v5080_v35  ;;  %3530 = vpow2.f32 %v1968_v39 }
 0x240   : > { %6220 = vst [vmem:[#allocation15_spill] sm:$0xff] %v5088_v1  ;;  %v952_v43 = vmul.f32 0.3275911, %v888_v18  ;;  %v1349_v13 = vadd.f32 1.4214138, %v1285_v31  ;;  %v2238_v8 = vsel %vm2110_vm6, %v2174_v28, %v2046_v37  ;;  %v1848_v38 = vmul.f32 %v1784_v14, %v888_v18  ;;  %v6224_v37 = vld [vmem:[#allocation24_spill] sm:$0xff] }
 0x241   : > { %6222 = vst [vmem:[#allocation197_spill] sm:$0xff] %v5093_v26  ;;  %v887_v33 = vand.u32 2147483647, %v5088_v1  ;;  %v2176_v4 = vsub.f32 0.0, %v2048_v34  ;;  %v1411_v29 = vmul.f32 %v4348_v20, %v1347_v45  ;;  %v889_v49 = vand.u32 2147483647, %v5093_v26  ;;  %v5100_v30 = vpop.eup %3524 }
 0x242   : > { %v2302_v62 = vadd.f32 1.0, %v2238_v8  ;;  %v1413_v44 = vmul.f32 %v4381_v36, %v1349_v13  ;;  %v1016_v12 = vadd.f32 1.0, %v952_v43  ;;  %v5109_v26 = vmul.f32 0.5, %v5002_v54  ;;  %v6236_v1 = vld [vmem:[#allocation79_spill] sm:$0xff] }
 0x243   : > { %v1783_v7 = vsub.f32 0.0, %v887_v33  ;;  %v2240_v39 = vsel %vm2112_vm7, %v2176_v4, %v2048_v34  ;;  %v1475_v24 = vadd.f32 -0.28449672, %v1411_v29  ;;  %v951_v31 = vmul.f32 0.3275911, %v887_v33  ;;  %v5105_v40 = vpop.eup %3526 }
 0x244   : > { %v1785_v59 = vsub.f32 0.0, %v889_v49  ;;  %6223 = vst [vmem:[#allocation198_spill] sm:$0xff] %v5105_v40  ;;  %v2366_v28 = vmul.f32 %v2302_v62, %v6224_v37  ;;  %v2304_v45 = vadd.f32 1.0, %v2240_v39  ;;  %v1477_v35 = vadd.f32 -0.28449672, %v1413_v44  ;;  %6225 = vst [vmem:[#allocation24_spill] sm:$0xff] %v5109_v26 }
 0x245   : > { %3532 = vrcp.f32 %v1014_v16  ;;  %v1539_v18 = vmul.f32 %v4348_v20, %v1475_v24  ;;  %v1847_v14 = vmul.f32 %v1783_v7, %v887_v33  ;;  %v5112_v13 = vpop.eup %3528  ;;  %v5115_v8 = vmul.f32 1.442695, %v1848_v38  ;;  %v6227_v44 = vld [vmem:[#allocation34_spill] sm:$0xff]  ;;  %v6228_v33 = vld [vmem:[#allocation60_spill] sm:$0xff]  ;;  %v6230_v37 = vld [vmem:[#allocation39_spill] sm:$0xff] }
 0x246   : > { %2567 = vmatmul.mubr.f32.gmra.mrb[34].mxu0 %v2366_v28  ;;  %v2368_v34 = vmul.f32 %v2304_v45, %v6226_v22  ;;  %v1541_v4 = vmul.f32 %v4381_v36, %v1477_v35  ;;  %v1849_v29 = vmul.f32 %v1785_v59, %v889_v49  ;;  %3534 = vpow2.f32 %v1970_v63  ;;  %v6229_v39 = vld [vmem:[#allocation64_spill] sm:$0xff]  ;;  %v6231_v63 = vld [vmem:[#allocation86_spill] sm:$0xff] }
 0x247   : > { %v1603_v43 = vadd.f32 0.2548296, %v1539_v18  ;;  %v5118_v62 = vadd.f32 1.0, %v951_v31  ;;  %v953_v54 = vmul.f32 0.3275911, %v889_v49  ;;  %vm2115_vm8 = vcmp.lt.f32.partialorder %v6227_v44, 0.0 }
 0x248   : > { %2712 = vmatmul.mubr.f32.gmra.mrb[34].mxu1 %v2368_v34  ;;  %3536 = vrcp.f32 %v1016_v12  ;;  %v1605_v16 = vadd.f32 0.2548296, %v1541_v4  ;;  %v1154_v7 = vmul.f32 1.0614054, %v6228_v33  ;;  %v1156_v24 = vmul.f32 1.0614054, %v6229_v39 }
 0x249   : > { %vm2117_vm9 = vcmp.lt.f32.partialorder %v6230_v37, 0.0  ;;  %v1667_v38 = vmul.f32 %v4348_v20, %v1603_v43  ;;  %v5125_v35 = vmul.f32 1.442695, %v1847_v14  ;;  %v1159_v59 = vmul.f32 1.0614054, %v4434_v47  ;;  %v5129_v49 = vpop.eup %3530  ;;  %v6233_v22 = vld [vmem:[#allocation70_spill] sm:$0xff] }
 0x24a   : > { %v1161_v31 = vmul.f32 1.0614054, %v6231_v63  ;;  %6232 = vst [vmem:[#allocation29_spill] sm:$0xff] %v5129_v49  ;;  %v1669_v28 = vmul.f32 %v4381_v36, %v1605_v16  ;;  %v5132_v12 = vmul.f32 1.442695, %v1849_v29  ;;  %v6234_v26 = vld [vmem:[#allocation76_spill] sm:$0xff]  ;;  %3538 = vpow2.f32 %v5115_v8 }
 0x24b   : > { %v1218_v45 = vadd.f32 -1.4531521, %v1154_v7  ;;  %v1220_v18 = vadd.f32 -1.4531521, %v1156_v24  ;;  %v1987_v34 = vmul.f32 %v6233_v22, %v1667_v38  ;;  %v1223_v4 = vadd.f32 -1.4531521, %v1159_v59 }
 0x24c   : > { %v1225_v53 = vadd.f32 -1.4531521, %v1161_v31  ;;  %v1158_v20 = vmul.f32 1.0614054, %v6234_v26  ;;  %v6235_v14 = vld [vmem:[#allocation74_spill] sm:$0xff]  ;;  %v5142_v24 = vadd.f32 1.0, %v953_v54  ;;  %3540 = vrcp.f32 %v5118_v62 }
 0x24d   : > { %v1989_v43 = vmul.f32 %v6235_v14, %v1669_v28  ;;  %v1282_v55 = vmul.f32 %v6228_v33, %v1218_v45  ;;  %v1284_v21 = vmul.f32 %v6229_v39, %v1220_v18  ;;  %v1160_v3 = vmul.f32 1.0614054, %v6236_v1  ;;  %v6240_v44 = vld [vmem:[#allocation55_spill] sm:$0xff] }
 0x24e   : > { %v2051_v49 = vsub.f32 1.0, %v1987_v34  ;;  %v1287_v36 = vmul.f32 %v4434_v47, %v1223_v4  ;;  %v1289_v29 = vmul.f32 %v6231_v63, %v1225_v53  ;;  %v1222_v16 = vadd.f32 -1.4531521, %v1158_v20 }
 0x24f   : > { %v2053_v7 = vsub.f32 1.0, %v1989_v43  ;;  %v1346_v38 = vadd.f32 1.4214138, %v1282_v55  ;;  %v1348_v59 = vadd.f32 1.4214138, %v1284_v21  ;;  %v5144_v31 = vpop.eup %3532  ;;  %vm2118_vm14 = vcmp.lt.f32.partialorder %v6250_v50, 0.0 }
 0x250   : > { %6237 = vst [vmem:[#allocation34_spill] sm:$0xff] %v5144_v31  ;;  %v2179_v28 = vsub.f32 0.0, %v2051_v49  ;;  %v1351_v22 = vadd.f32 1.4214138, %v1287_v36  ;;  %v1353_v45 = vadd.f32 1.4214138, %v1289_v29  ;;  %v1286_v18 = vmul.f32 %v6234_v26, %v1222_v16  ;;  %v5149_v53 = vpop.eup %3534 }
 0x251   : > { %v2181_v14 = vsub.f32 0.0, %v2053_v7  ;;  %v1410_v34 = vmul.f32 %v6228_v33, %v1346_v38  ;;  %v1412_v4 = vmul.f32 %v6229_v39, %v1348_v59  ;;  %v1224_v25 = vadd.f32 -1.4531521, %v1160_v3  ;;  %6238 = vst [vmem:[#allocation60_spill] sm:$0xff] %v5149_v53 }
 0x252   : > { %v2243_v54 = vsel %vm2115_vm8, %v2179_v28, %v2051_v49  ;;  %v1415_v21 = vmul.f32 %v4434_v47, %v1351_v22  ;;  %v1417_v55 = vmul.f32 %v6231_v63, %v1353_v45  ;;  %v1350_v20 = vadd.f32 1.4214138, %v1286_v18  ;;  %v5155_v43 = vpop.eup %3536  ;;  %v6241_v18 = vld [vmem:[#allocation56_spill] sm:$0xff] }
 0x253   : > { %6239 = vst [vmem:[#allocation64_spill] sm:$0xff] %v5155_v43  ;;  %v2307_v36 = vadd.f32 1.0, %v2243_v54  ;;  %v2245_v29 = vsel %vm2117_vm9, %v2181_v14, %v2053_v7  ;;  %v1474_v16 = vadd.f32 -0.28449672, %v1410_v34  ;;  %v1476_v38 = vadd.f32 -0.28449672, %v1412_v4 }
 0x254   : > { %v2309_v59 = vadd.f32 1.0, %v2245_v29  ;;  %v1479_v3 = vadd.f32 -0.28449672, %v1415_v21  ;;  %v1481_v31 = vadd.f32 -0.28449672, %v1417_v55  ;;  %v1414_v53 = vmul.f32 %v6234_v26, %v1350_v20  ;;  %v6242_v55 = vld [vmem:[#allocation26_spill] sm:$0xff] }
 0x255   : > { %v2371_v49 = vmul.f32 %v2307_v36, %v6240_v44  ;;  %v1538_v28 = vmul.f32 %v6228_v33, %v1474_v16  ;;  %v1540_v22 = vmul.f32 %v6229_v39, %v1476_v38  ;;  %v1288_v45 = vmul.f32 %v6236_v1, %v1224_v25  ;;  %v6243_v20 = vld [vmem:[#allocation30_spill] sm:$0xff]  ;;  %v6244_v16 = vld [vmem:[#allocation97_spill] sm:$0xff] }
 0x256   : > { %v2373_v54 = vmul.f32 %v2309_v59, %v6241_v18  ;;  %v1543_v37 = vmul.f32 %v4434_v47, %v1479_v3  ;;  %v1545_v7 = vmul.f32 %v6231_v63, %v1481_v31  ;;  %v1478_v14 = vadd.f32 -0.28449672, %v1414_v53  ;;  %v6245_v59 = vld [vmem:[#allocation51_spill] sm:$0xff]  ;;  %v6246_v31 = vld [vmem:[#allocation54_spill] sm:$0xff]  ;;  %v6247_v44 = vld [vmem:[#allocation101_spill] sm:$0xff] }
 0x257   : > { %2571 = vmatprep.mubr.f32.mxu0 %v2371_v49  ;;  %v1602_v34 = vadd.f32 0.2548296, %v1538_v28  ;;  %v1604_v4 = vadd.f32 0.2548296, %v1540_v22  ;;  %v1352_v21 = vadd.f32 1.4214138, %v1288_v45  ;;  %3542 = vrcp.f32 %v5142_v24 }
 0x258   : > { %vm2114_vm10 = vcmp.lt.f32.partialorder %v6242_v55, 0.0  ;;  %vm2116_vm11 = vcmp.lt.f32.partialorder %v6243_v20, 0.0  ;;  %2716 = vmatprep.mubr.f32.mxu1 %v2373_v54  ;;  %v1607_v36 = vadd.f32 0.2548296, %v1543_v37  ;;  %v1609_v25 = vadd.f32 0.2548296, %v1545_v7 }
 0x259   : > { %v1542_v29 = vmul.f32 %v6234_v26, %v1478_v14  ;;  %v1163_v38 = vmul.f32 1.0614054, %v6244_v16  ;;  %vm2119_vm12 = vcmp.lt.f32.partialorder %v6245_v59, 0.0  ;;  %vm2121_vm13 = vcmp.lt.f32.partialorder %v6246_v31, 0.0  ;;  %v6248_v54 = vld [vmem:[#allocation62_spill] sm:$0xff]  ;;  %v6249_v7 = vld [vmem:[#allocation65_spill] sm:$0xff] }
 0x25a   : > { %v1666_v8 = vmul.f32 %v6228_v33, %v1602_v34  ;;  %v1668_v53 = vmul.f32 %v6229_v39, %v1604_v4  ;;  %v1416_v3 = vmul.f32 %v6236_v1, %v1352_v21  ;;  %v1165_v49 = vmul.f32 1.0614054, %v6247_v44  ;;  %v6251_v33 = vld [vmem:[#allocation84_spill] sm:$0xff]  ;;  %v6252_v34 = vld [vmem:[#allocation87_spill] sm:$0xff] }
 0x25b   : > { %v1671_v28 = vmul.f32 %v4434_v47, %v1607_v36  ;;  %v1673_v22 = vmul.f32 %v6231_v63, %v1609_v25  ;;  %v1606_v45 = vadd.f32 0.2548296, %v1542_v29  ;;  %v1227_v18 = vadd.f32 -1.4531521, %v1163_v38  ;;  %v6255_v55 = vld [vmem:[#allocation83_spill] sm:$0xff] }
 0x25c   : > { %v1986_v37 = vmul.f32 %v6248_v54, %v1666_v8  ;;  %v1988_v14 = vmul.f32 %v6249_v7, %v1668_v53  ;;  %v1480_v43 = vadd.f32 -0.28449672, %v1416_v3  ;;  %v1229_v40 = vadd.f32 -1.4531521, %v1165_v49  ;;  %v6253_v53 = vld [vmem:[#allocation77_spill] sm:$0xff] }
 0x25d   : > { %v1991_v39 = vmul.f32 %v6251_v33, %v1671_v28  ;;  %v1993_v4 = vmul.f32 %v6252_v34, %v1673_v22  ;;  %v1670_v21 = vmul.f32 %v6234_v26, %v1606_v45  ;;  %v1291_v47 = vmul.f32 %v6244_v16, %v1227_v18  ;;  %v6254_v22 = vld [vmem:[#allocation50_spill] sm:$0xff] }
 0x25e   : > { %v2050_v36 = vsub.f32 1.0, %v1986_v37  ;;  %v2052_v63 = vsub.f32 1.0, %v1988_v14  ;;  %v1544_v25 = vmul.f32 %v6236_v1, %v1480_v43  ;;  %v1293_v29 = vmul.f32 %v6247_v44, %v1229_v40  ;;  %v5192_v14 = vpop.eup %3538 }
 0x25f   : > { %v2055_v38 = vsub.f32 1.0, %v1991_v39  ;;  %v2057_v8 = vsub.f32 1.0, %v1993_v4  ;;  %v1990_v3 = vmul.f32 %v6253_v53, %v1670_v21  ;;  %v1355_v49 = vadd.f32 1.4214138, %v1291_v47 }
 0x260   : > { %v2178_v54 = vsub.f32 0.0, %v2050_v36  ;;  %v2180_v7 = vsub.f32 0.0, %v2052_v63  ;;  %v1608_v28 = vadd.f32 0.2548296, %v1544_v25  ;;  %v1357_v33 = vadd.f32 1.4214138, %v1293_v29 }
 0x261   : > { %vm2120_vm15 = vcmp.lt.f32.partialorder %v6254_v22, 0.0  ;;  %v2183_v26 = vsub.f32 0.0, %v2055_v38  ;;  %v2185_v45 = vsub.f32 0.0, %v2057_v8  ;;  %v2054_v18 = vsub.f32 1.0, %v1990_v3 }
 0x262   : > { %v1419_v37 = vmul.f32 %v6244_v16, %v1355_v49  ;;  %v2242_v40 = vsel %vm2114_vm10, %v2178_v54, %v2050_v36  ;;  %v2244_v43 = vsel %vm2116_vm11, %v2180_v7, %v2052_v63  ;;  %v1672_v39 = vmul.f32 %v6236_v1, %v1608_v28  ;;  %v6256_v49 = vld [vmem:[#allocation47_spill] sm:$0xff]  ;;  %v6257_v63 = vld [vmem:[#allocation52_spill] sm:$0xff]  ;;  %v6258_v28 = vld [vmem:[#allocation66_spill] sm:$0xff] }
 0x263   : > { %v1421_v34 = vmul.f32 %v6247_v44, %v1357_v33  ;;  %v2306_v4 = vadd.f32 1.0, %v2242_v40  ;;  %v2308_v21 = vadd.f32 1.0, %v2244_v43  ;;  %v2247_v47 = vsel %vm2119_vm12, %v2183_v26, %v2055_v38  ;;  %v6259_v40 = vld [vmem:[#allocation68_spill] sm:$0xff] }
 0x264   : > { %v2249_v25 = vsel %vm2121_vm13, %v2185_v45, %v2057_v8  ;;  %v2311_v29 = vadd.f32 1.0, %v2247_v47  ;;  %v2182_v3 = vsub.f32 0.0, %v2054_v18  ;;  %v1992_v36 = vmul.f32 %v6255_v55, %v1672_v39  ;;  %v6260_v45 = vld [vmem:[#allocation89_spill] sm:$0xff]  ;;  %v6265_v55 = vld [vmem:[#allocation67_spill] sm:$0xff] }
 0x265   : > { %v2313_v53 = vadd.f32 1.0, %v2249_v25  ;;  %v2370_v20 = vmul.f32 %v2306_v4, %v6256_v49  ;;  %v2372_v54 = vmul.f32 %v2308_v21, %v6257_v63  ;;  %v1483_v1 = vadd.f32 -0.28449672, %v1419_v37  ;;  %v6262_v21 = vld [vmem:[#allocation111_spill] sm:$0xff] }
 0x266   : > { %v1485_v7 = vadd.f32 -0.28449672, %v1421_v34  ;;  %v2375_v33 = vmul.f32 %v2311_v29, %v6258_v28  ;;  %v2246_v59 = vsel %vm2118_vm14, %v2182_v3, %v2054_v18  ;;  %v2056_v31 = vsub.f32 1.0, %v1992_v36  ;;  %v6261_v34 = vld [vmem:[#allocation93_spill] sm:$0xff]  ;;  %v6263_v18 = vld [vmem:[#allocation58_spill] sm:$0xff]  ;;  %v6264_v3 = vld [vmem:[#allocation63_spill] sm:$0xff] }
 0x267   : > { %v2377_v43 = vmul.f32 %v2313_v53, %v6259_v40  ;;  %2572 = vmatmul.mubr.f32.gmra.mrb[36].mxu0 %v2370_v20  ;;  %2717 = vmatmul.mubr.f32.gmra.mrb[36].mxu1 %v2372_v54  ;;  %v2310_v38 = vadd.f32 1.0, %v2246_v59  ;;  %v1547_v8 = vmul.f32 %v6244_v16, %v1483_v1  ;;  %v1162_v39 = vmul.f32 1.0614054, %v6260_v45  ;;  %v6266_v20 = vld [vmem:[#allocation20_spill] sm:$0xff]  ;;  %v6267_v59 = vld [vmem:[#allocation102_spill] sm:$0xff] }
 0x268   : > { %v1549_v26 = vmul.f32 %v6247_v44, %v1485_v7  ;;  %2576 = vmatprep.mubr.f32.mxu0 %v2375_v33  ;;  %v2184_v37 = vsub.f32 0.0, %v2056_v31  ;;  %v1164_v4 = vmul.f32 1.0614054, %v6261_v34  ;;  %v1167_v50 = vmul.f32 1.0614054, %v6262_v21 }
 0x269   : > { %2721 = vmatprep.mubr.f32.mxu1 %v2377_v43  ;;  %v2374_v47 = vmul.f32 %v2310_v38, %v6263_v18  ;;  %v1611_v25 = vadd.f32 0.2548296, %v1547_v8  ;;  %v1226_v53 = vadd.f32 -1.4531521, %v1162_v39  ;;  %vm2123_vm0 = vcmp.lt.f32.partialorder %v6264_v3, 0.0  ;;  %v6269_v8 = vld [vmem:[#allocation98_spill] sm:$0xff] }
 0x26a   : > { %v1613_v29 = vadd.f32 0.2548296, %v1549_v26  ;;  %vm2125_vm1 = vcmp.lt.f32.partialorder %v6265_v55, 0.0  ;;  %v2248_v36 = vsel %vm2120_vm15, %v2184_v37, %v2056_v31  ;;  %v1228_v62 = vadd.f32 -1.4531521, %v1164_v4  ;;  %v6268_v31 = vld [vmem:[#allocation59_spill] sm:$0xff] }
 0x26b   : > { %v1231_v49 = vadd.f32 -1.4531521, %v1167_v50  ;;  %v1169_v63 = vmul.f32 1.0614054, %v6266_v20  ;;  %2577 = vmatmul.mubr.f32.gmra.mrb[38].mxu0 %v2374_v47  ;;  %v2312_v54 = vadd.f32 1.0, %v2248_v36  ;;  %v1675_v1 = vmul.f32 %v6244_v16, %v1611_v25  ;;  %v6270_v39 = vld [vmem:[#allocation105_spill] sm:$0xff] }
 0x26c   : > { %v1677_v7 = vmul.f32 %v6247_v44, %v1613_v29  ;;  %v1290_v28 = vmul.f32 %v6260_v45, %v1226_v53  ;;  %v1292_v33 = vmul.f32 %v6261_v34, %v1228_v62  ;;  %v1166_v22 = vmul.f32 1.0614054, %v6267_v59  ;;  %v6271_v53 = vld [vmem:[#allocation107_spill] sm:$0xff]  ;;  %v6272_v3 = vld [vmem:[#allocation57_spill] sm:$0xff] }
 0x26d   : > { %v1295_v40 = vmul.f32 %v6262_v21, %v1231_v49  ;;  %v1233_v43 = vadd.f32 -1.4531521, %v1169_v63  ;;  %v2376_v38 = vmul.f32 %v2312_v54, %v6268_v31  ;;  %v1995_v26 = vmul.f32 %v6269_v8, %v1675_v1 }
 0x26e   : > { %v1997_v37 = vmul.f32 %v6270_v39, %v1677_v7  ;;  %v1354_v4 = vadd.f32 1.4214138, %v1290_v28  ;;  %v1356_v50 = vadd.f32 1.4214138, %v1292_v33  ;;  %v1230_v18 = vadd.f32 -1.4531521, %v1166_v22 }
 0x26f   : > { %v1359_v16 = vadd.f32 1.4214138, %v1295_v40  ;;  %v1297_v44 = vmul.f32 %v6266_v20, %v1233_v43  ;;  %2722 = vmatmul.mubr.f32.gmra.mrb[38].mxu1 %v2376_v38  ;;  %v2059_v47 = vsub.f32 1.0, %v1995_v26  ;;  %v1168_v36 = vmul.f32 1.0614054, %v6271_v53  ;;  %v5238_v40 = vpop.eup %3540 }
 0x270   : > { %v2061_v25 = vsub.f32 1.0, %v1997_v37  ;;  %v1418_v29 = vmul.f32 %v6260_v45, %v1354_v4  ;;  %v1420_v62 = vmul.f32 %v6261_v34, %v1356_v50  ;;  %v1294_v54 = vmul.f32 %v6267_v59, %v1230_v18 }
 0x271   : > { %v1423_v49 = vmul.f32 %v6262_v21, %v1359_v16  ;;  %v1361_v63 = vadd.f32 1.4214138, %v1297_v44  ;;  %v2187_v1 = vsub.f32 0.0, %v2059_v47  ;;  %v1232_v33 = vadd.f32 -1.4531521, %v1168_v36 }
 0x272   : > { %v2189_v7 = vsub.f32 0.0, %v2061_v25  ;;  %v1482_v28 = vadd.f32 -0.28449672, %v1418_v29  ;;  %v1484_v43 = vadd.f32 -0.28449672, %v1420_v62  ;;  %vm2122_vm2 = vcmp.lt.f32.partialorder %v6272_v3, 0.0 }
 0x273   : > { %v1487_v22 = vadd.f32 -0.28449672, %v1423_v49  ;;  %v1425_v31 = vmul.f32 %v6266_v20, %v1361_v63  ;;  %v1358_v38 = vadd.f32 1.4214138, %v1294_v54  ;;  %v2251_v8 = vsel %vm2123_vm0, %v2187_v1, %v2059_v47  ;;  %v6273_v47 = vld [vmem:[#allocation78_spill] sm:$0xff]  ;;  %v6275_v1 = vld [vmem:[#allocation61_spill] sm:$0xff] }
 0x274   : > { %v2253_v26 = vsel %vm2125_vm1, %v2189_v7, %v2061_v25  ;;  %v1546_v39 = vmul.f32 %v6260_v45, %v1482_v28  ;;  %v1296_v37 = vmul.f32 %v6271_v53, %v1232_v33  ;;  %v2315_v4 = vadd.f32 1.0, %v2251_v8  ;;  %v6274_v25 = vld [vmem:[#allocation80_spill] sm:$0xff]  ;;  %v6276_v7 = vld [vmem:[#allocation75_spill] sm:$0xff] }
 0x275   : > { %v2317_v50 = vadd.f32 1.0, %v2253_v26  ;;  %v1548_v16 = vmul.f32 %v6261_v34, %v1484_v43  ;;  %v1551_v44 = vmul.f32 %v6262_v21, %v1487_v22  ;;  %v1489_v29 = vadd.f32 -0.28449672, %v1425_v31  ;;  %v6277_v26 = vld [vmem:[#allocation27_spill] sm:$0xff] }
 0x276   : > { %v1610_v18 = vadd.f32 0.2548296, %v1546_v39  ;;  %v1422_v36 = vmul.f32 %v6267_v59, %v1358_v38  ;;  %v1360_v62 = vadd.f32 1.4214138, %v1296_v37  ;;  %v2379_v55 = vmul.f32 %v2315_v4, %v6273_v47  ;;  %v6278_v37 = vld [vmem:[#allocation90_spill] sm:$0xff]  ;;  %v6286_v3 = vld [vmem:[#allocation71_spill] sm:$0xff] }
 0x277   : > { %v2381_v49 = vmul.f32 %v2317_v50, %v6274_v25  ;;  %v1612_v63 = vadd.f32 0.2548296, %v1548_v16  ;;  %v1615_v54 = vadd.f32 0.2548296, %v1551_v44  ;;  %vm2124_vm3 = vcmp.lt.f32.partialorder %v6275_v1, 0.0  ;;  %v6279_v44 = vld [vmem:[#allocation81_spill] sm:$0xff] }
 0x278   : > { %vm2127_vm4 = vcmp.lt.f32.partialorder %v6276_v7, 0.0  ;;  %v1674_v28 = vmul.f32 %v6260_v45, %v1610_v18  ;;  %v1553_v33 = vmul.f32 %v6266_v20, %v1489_v29  ;;  %v1486_v43 = vadd.f32 -0.28449672, %v1422_v36  ;;  %2581 = vmatprep.mubr.f32.mxu0 %v2379_v55  ;;  %v6280_v18 = vld [vmem:[#allocation95_spill] sm:$0xff]  ;;  %v6281_v36 = vld [vmem:[#allocation113_spill] sm:$0xff] }
 0x279   : > { %v1424_v22 = vmul.f32 %v6271_v53, %v1360_v62  ;;  %2726 = vmatprep.mubr.f32.mxu1 %v2381_v49  ;;  %v1676_v31 = vmul.f32 %v6261_v34, %v1612_v63  ;;  %v1679_v38 = vmul.f32 %v6262_v21, %v1615_v54  ;;  %v1171_v8 = vmul.f32 1.0614054, %v4620_v5  ;;  %v6282_v63 = vld [vmem:[#allocation69_spill] sm:$0xff]  ;;  %v6289_v1 = vld [vmem:[#allocation99_spill] sm:$0xff] }
 0x27a   : > { %v1173_v39 = vmul.f32 1.0614054, %v6277_v26  ;;  %v1994_v4 = vmul.f32 %v6278_v37, %v1674_v28  ;;  %v1617_v50 = vadd.f32 0.2548296, %v1553_v33  ;;  %v1550_v45 = vmul.f32 %v6267_v59, %v1486_v43 }
 0x27b   : > { %v1488_v16 = vadd.f32 -0.28449672, %v1424_v22  ;;  %vm2129_vm5 = vcmp.lt.f32.partialorder %v6279_v44, 0.0  ;;  %v1996_v29 = vmul.f32 %v6280_v18, %v1676_v31  ;;  %v1999_v62 = vmul.f32 %v6281_v36, %v1679_v38  ;;  %v6283_v31 = vld [vmem:[#allocation21_spill] sm:$0xff]  ;;  %v6292_v44 = vld [vmem:[#allocation103_spill] sm:$0xff] }
 0x27c   : > { %v1235_v47 = vadd.f32 -1.4531521, %v1171_v8  ;;  %v1237_v34 = vadd.f32 -1.4531521, %v1173_v39  ;;  %v2058_v55 = vsub.f32 1.0, %v1994_v4  ;;  %v1681_v21 = vmul.f32 %v6266_v20, %v1617_v50 }
 0x27d   : > { %v1614_v25 = vadd.f32 0.2548296, %v1550_v45  ;;  %v1552_v49 = vmul.f32 %v6271_v53, %v1488_v16  ;;  %vm2126_vm6 = vcmp.lt.f32.partialorder %v6282_v63, 0.0  ;;  %v2060_v54 = vsub.f32 1.0, %v1996_v29  ;;  %v6284_v45 = vld [vmem:[#allocation72_spill] sm:$0xff]  ;;  %v6285_v29 = vld [vmem:[#allocation106_spill] sm:$0xff] }
 0x27e   : > { %v2063_v28 = vsub.f32 1.0, %v1999_v62  ;;  %v1299_v33 = vmul.f32 %v4620_v5, %v1235_v47  ;;  %v1301_v43 = vmul.f32 %v6277_v26, %v1237_v34  ;;  %v2186_v22 = vsub.f32 0.0, %v2058_v55  ;;  %v6294_v63 = vld [vmem:[#allocation91_spill] sm:$0xff] }
 0x27f   : > { %v2001_v37 = vmul.f32 %v6283_v31, %v1681_v21  ;;  %v1678_v38 = vmul.f32 %v6267_v59, %v1614_v25  ;;  %v1616_v8 = vadd.f32 0.2548296, %v1552_v49  ;;  %v2188_v39 = vsub.f32 0.0, %v2060_v54 }
 0x280   : > { %v2191_v4 = vsub.f32 0.0, %v2063_v28  ;;  %v1363_v20 = vadd.f32 1.4214138, %v1299_v33  ;;  %v1365_v50 = vadd.f32 1.4214138, %v1301_v43  ;;  %vm2128_vm7 = vcmp.lt.f32.partialorder %v6284_v45, 0.0 }
 0x281   : > { %v2250_v16 = vsel %vm2122_vm2, %v2186_v22, %v2058_v55  ;;  %v2065_v18 = vsub.f32 1.0, %v2001_v37  ;;  %v1998_v36 = vmul.f32 %v6285_v29, %v1678_v38  ;;  %v1680_v62 = vmul.f32 %v6271_v53, %v1616_v8  ;;  %v6287_v22 = vld [vmem:[#allocation109_spill] sm:$0xff]  ;;  %v6298_v45 = vld [vmem:[#allocation127_spill] sm:$0xff] }
 0x282   : > { %v2314_v47 = vadd.f32 1.0, %v2250_v16  ;;  %v2252_v34 = vsel %vm2124_vm3, %v2188_v39, %v2060_v54  ;;  %v2255_v59 = vsel %vm2127_vm4, %v2191_v4, %v2063_v28  ;;  %v1427_v21 = vmul.f32 %v4620_v5, %v1363_v20  ;;  %v6288_v38 = vld [vmem:[#allocation73_spill] sm:$0xff] }
 0x283   : > { %v2316_v25 = vadd.f32 1.0, %v2252_v34  ;;  %v2319_v49 = vadd.f32 1.0, %v2255_v59  ;;  %v2193_v33 = vsub.f32 0.0, %v2065_v18  ;;  %v2062_v43 = vsub.f32 1.0, %v1998_v36 }
 0x284   : > { %v2378_v55 = vmul.f32 %v2314_v47, %v6286_v3  ;;  %v2000_v31 = vmul.f32 %v6287_v22, %v1680_v62  ;;  %v1491_v37 = vadd.f32 -0.28449672, %v1427_v21  ;;  %v1429_v53 = vmul.f32 %v6277_v26, %v1365_v50  ;;  %v6290_v50 = vld [vmem:[#allocation116_spill] sm:$0xff] }
 0x285   : > { %v2380_v8 = vmul.f32 %v2316_v25, %v6288_v38  ;;  %v2383_v54 = vmul.f32 %v2319_v49, %v6289_v1  ;;  %v2257_v7 = vsel %vm2129_vm5, %v2193_v33, %v2065_v18  ;;  %v2190_v28 = vsub.f32 0.0, %v2062_v43  ;;  %v6291_v62 = vld [vmem:[#allocation120_spill] sm:$0xff] }
 0x286   : > { %2582 = vmatmul.mubr.f32.gmra.mrb[40].mxu0 %v2378_v55  ;;  %v2321_v39 = vadd.f32 1.0, %v2257_v7  ;;  %v2064_v4 = vsub.f32 1.0, %v2000_v31  ;;  %v1555_v20 = vmul.f32 %v4620_v5, %v1491_v37  ;;  %v1493_v16 = vadd.f32 -0.28449672, %v1429_v53  ;;  %v6293_v49 = vld [vmem:[#allocation88_spill] sm:$0xff] }
 0x287   : > { %2727 = vmatmul.mubr.f32.gmra.mrb[40].mxu1 %v2380_v8  ;;  %2586 = vmatprep.mubr.f32.mxu0 %v2383_v54  ;;  %v2254_v29 = vsel %vm2126_vm6, %v2190_v28, %v2062_v43  ;;  %v1170_v36 = vmul.f32 1.0614054, %v6290_v50  ;;  %v1172_v47 = vmul.f32 1.0614054, %v6291_v62  ;;  %v1175_v34 = vmul.f32 1.0614054, %v4678_v60 }
 0x288   : > { %v2385_v18 = vmul.f32 %v2321_v39, %v6292_v44  ;;  %v2318_v59 = vadd.f32 1.0, %v2254_v29  ;;  %v2192_v21 = vsub.f32 0.0, %v2064_v4  ;;  %v1619_v25 = vadd.f32 0.2548296, %v1555_v20  ;;  %v6295_v53 = vld [vmem:[#allocation32_spill] sm:$0xff]  ;;  %v6297_v39 = vld [vmem:[#allocation125_spill] sm:$0xff] }
 0x289   : > { %vm2131_vm8 = vcmp.lt.f32.partialorder %v6293_v49, 0.0  ;;  %v1557_v33 = vmul.f32 %v6277_v26, %v1493_v16  ;;  %v1234_v3 = vadd.f32 -1.4531521, %v1170_v36  ;;  %v1236_v55 = vadd.f32 -1.4531521, %v1172_v47  ;;  %v6296_v28 = vld [vmem:[#allocation92_spill] sm:$0xff] }
 0x28a   : > { %v1239_v22 = vadd.f32 -1.4531521, %v1175_v34  ;;  %2731 = vmatprep.mubr.f32.mxu1 %v2385_v18  ;;  %v2382_v43 = vmul.f32 %v2318_v59, %v6294_v63  ;;  %v2256_v31 = vsel %vm2128_vm7, %v2192_v21, %v2064_v4  ;;  %v1683_v37 = vmul.f32 %v4620_v5, %v1619_v25  ;;  %v6299_v36 = vld [vmem:[#allocation96_spill] sm:$0xff]  ;;  %v6301_v63 = vld [vmem:[#allocation133_spill] sm:$0xff] }
 0x28b   : > { %v1177_v38 = vmul.f32 1.0614054, %v6295_v53  ;;  %v2320_v8 = vadd.f32 1.0, %v2256_v31  ;;  %v1621_v1 = vadd.f32 0.2548296, %v1557_v33  ;;  %v1298_v54 = vmul.f32 %v6290_v50, %v1234_v3  ;;  %v6300_v33 = vld [vmem:[#allocation28_spill] sm:$0xff] }
 0x28c   : > { %v1300_v7 = vmul.f32 %v6291_v62, %v1236_v55  ;;  %vm2133_vm9 = vcmp.lt.f32.partialorder %v6296_v28, 0.0  ;;  %2587 = vmatmul.mubr.f32.gmra.mrb[42].mxu0 %v2382_v43  ;;  %v2003_v20 = vmul.f32 %v6297_v39, %v1683_v37  ;;  %v1303_v16 = vmul.f32 %v4678_v60, %v1239_v22 }
 0x28d   : > { %v1241_v29 = vadd.f32 -1.4531521, %v1177_v38  ;;  %v1174_v4 = vmul.f32 1.0614054, %v6298_v45  ;;  %v2384_v5 = vmul.f32 %v2320_v8, %v6299_v36  ;;  %v1685_v47 = vmul.f32 %v6277_v26, %v1621_v1 }
 0x28e   : > { %v1362_v34 = vadd.f32 1.4214138, %v1298_v54  ;;  %v1364_v44 = vadd.f32 1.4214138, %v1300_v7  ;;  %v2067_v18 = vsub.f32 1.0, %v2003_v20  ;;  %3544 = vpow2.f32 %v5125_v35 }
 0x28f   : > { %v1367_v59 = vadd.f32 1.4214138, %v1303_v16  ;;  %v1305_v21 = vmul.f32 %v6295_v53, %v1241_v29  ;;  %v1238_v25 = vadd.f32 -1.4531521, %v1174_v4  ;;  %2732 = vmatmul.mubr.f32.gmra.mrb[42].mxu1 %v2384_v5  ;;  %v2005_v3 = vmul.f32 %v6300_v33, %v1685_v47  ;;  %v6303_v33 = vld [vmem:[#allocation82_spill] sm:$0xff] }
 0x290   : > { %v1426_v55 = vmul.f32 %v6290_v50, %v1362_v34  ;;  %v1428_v22 = vmul.f32 %v6291_v62, %v1364_v44  ;;  %v1176_v43 = vmul.f32 1.0614054, %v6301_v63  ;;  %v2195_v31 = vsub.f32 0.0, %v2067_v18 }
 0x291   : > { %v1431_v37 = vmul.f32 %v4678_v60, %v1367_v59  ;;  %v1369_v26 = vadd.f32 1.4214138, %v1305_v21  ;;  %v1302_v38 = vmul.f32 %v6298_v45, %v1238_v25  ;;  %v2069_v8 = vsub.f32 1.0, %v2005_v3  ;;  %v6302_v59 = vld [vmem:[#allocation114_spill] sm:$0xff]  ;;  %v6304_v3 = vld [vmem:[#allocation85_spill] sm:$0xff] }
 0x292   : > { %v1490_v1 = vadd.f32 -0.28449672, %v1426_v55  ;;  %v1492_v54 = vadd.f32 -0.28449672, %v1428_v22  ;;  %v2259_v7 = vsel %vm2131_vm8, %v2195_v31, %v2067_v18  ;;  %v1240_v44 = vadd.f32 -1.4531521, %v1176_v43 }
 0x293   : > { %v1495_v39 = vadd.f32 -0.28449672, %v1431_v37  ;;  %v1433_v20 = vmul.f32 %v6295_v53, %v1369_v26  ;;  %v1366_v16 = vadd.f32 1.4214138, %v1302_v38  ;;  %v2323_v29 = vadd.f32 1.0, %v2259_v7  ;;  %v6305_v26 = vld [vmem:[#allocation104_spill] sm:$0xff] }
 0x294   : > { %v2197_v4 = vsub.f32 0.0, %v2069_v8  ;;  %v1554_v36 = vmul.f32 %v6290_v50, %v1490_v1  ;;  %v1556_v5 = vmul.f32 %v6291_v62, %v1492_v54  ;;  %vm2130_vm10 = vcmp.lt.f32.partialorder %v6303_v33, 0.0  ;;  %v6307_v54 = vld [vmem:[#allocation117_spill] sm:$0xff]  ;;  %v6317_v33 = vld [vmem:[#allocation108_spill] sm:$0xff] }
 0x295   : > { %v1559_v47 = vmul.f32 %v4678_v60, %v1495_v39  ;;  %v1497_v34 = vadd.f32 -0.28449672, %v1433_v20  ;;  %v1430_v24 = vmul.f32 %v6298_v45, %v1366_v16  ;;  %v2387_v21 = vmul.f32 %v2323_v29, %v6302_v59  ;;  %v6308_v29 = vld [vmem:[#allocation19_spill] sm:$0xff] }
 0x296   : > { %v2261_v49 = vsel %vm2133_vm9, %v2197_v4, %v2069_v8  ;;  %v1618_v18 = vadd.f32 0.2548296, %v1554_v36  ;;  %v1620_v25 = vadd.f32 0.2548296, %v1556_v5  ;;  %vm2132_vm11 = vcmp.lt.f32.partialorder %v6304_v3, 0.0  ;;  %v6306_v8 = vld [vmem:[#allocation35_spill] sm:$0xff] }
 0x297   : > { %v2325_v55 = vadd.f32 1.0, %v2261_v49  ;;  %v1623_v22 = vadd.f32 0.2548296, %v1559_v47  ;;  %v1561_v31 = vmul.f32 %v6295_v53, %v1497_v34  ;;  %v1494_v37 = vadd.f32 -0.28449672, %v1430_v24  ;;  %2591 = vmatprep.mubr.f32.mxu0 %v2387_v21  ;;  %v6309_v4 = vld [vmem:[#allocation23_spill] sm:$0xff] }
 0x298   : > { %vm2135_vm12 = vcmp.lt.f32.partialorder %v6305_v26, 0.0  ;;  %v1682_v43 = vmul.f32 %v6290_v50, %v1618_v18  ;;  %v1684_v38 = vmul.f32 %v6291_v62, %v1620_v25  ;;  %v1304_v28 = vmul.f32 %v6301_v63, %v1240_v44  ;;  %v6310_v5 = vld [vmem:[#allocation122_spill] sm:$0xff]  ;;  %v6312_v21 = vld [vmem:[#allocation152_spill] sm:$0xff] }
 0x299   : > { %v1179_v1 = vmul.f32 1.0614054, %v6306_v8  ;;  %v2389_v7 = vmul.f32 %v2325_v55, %v6307_v54  ;;  %v1687_v39 = vmul.f32 %v4678_v60, %v1623_v22  ;;  %v1625_v20 = vadd.f32 0.2548296, %v1561_v31  ;;  %v6311_v62 = vld [vmem:[#allocation138_spill] sm:$0xff]  ;;  %v5348_v60 = vpop.eup %3542  ;;  %v6318_v3 = vld [vmem:[#allocation112_spill] sm:$0xff] }
 0x29a   : > { %v1558_v16 = vmul.f32 %v6298_v45, %v1494_v37  ;;  %vm2137_vm13 = vcmp.lt.f32.partialorder %v6308_v29, 0.0  ;;  %v2002_v36 = vmul.f32 %v6309_v4, %v1682_v43  ;;  %v2004_v47 = vmul.f32 %v6310_v5, %v1684_v38  ;;  %v6313_v31 = vld [vmem:[#allocation94_spill] sm:$0xff]  ;;  %v6315_v4 = vld [vmem:[#allocation129_spill] sm:$0xff]  ;;  %v6322_v29 = vld [vmem:[#allocation131_spill] sm:$0xff] }
 0x29b   : > { %v1368_v50 = vadd.f32 1.4214138, %v1304_v28  ;;  %v1243_v34 = vadd.f32 -1.4531521, %v1179_v1  ;;  %2736 = vmatprep.mubr.f32.mxu1 %v2389_v7  ;;  %v2007_v24 = vmul.f32 %v6311_v62, %v1687_v39  ;;  %v1689_v44 = vmul.f32 %v6295_v53, %v1625_v20  ;;  %v6314_v43 = vld [vmem:[#allocation142_spill] sm:$0xff] }
 0x29c   : > { %v1622_v59 = vadd.f32 0.2548296, %v1558_v16  ;;  %v1181_v49 = vmul.f32 1.0614054, %v6312_v21  ;;  %v2066_v18 = vsub.f32 1.0, %v2002_v36  ;;  %v2068_v25 = vsub.f32 1.0, %v2004_v47 }
 0x29d   : > { %v1432_v55 = vmul.f32 %v6301_v63, %v1368_v50  ;;  %v1307_v22 = vmul.f32 %v6306_v8, %v1243_v34  ;;  %vm2134_vm14 = vcmp.lt.f32.partialorder %v6313_v31, 0.0  ;;  %v2071_v37 = vsub.f32 1.0, %v2007_v24 }
 0x29e   : > { %v2009_v38 = vmul.f32 %v6314_v43, %v1689_v44  ;;  %v1686_v28 = vmul.f32 %v6298_v45, %v1622_v59  ;;  %v1245_v1 = vadd.f32 -1.4531521, %v1181_v49  ;;  %v2194_v53 = vsub.f32 0.0, %v2066_v18 }
 0x29f   : > { %v2196_v54 = vsub.f32 0.0, %v2068_v25  ;;  %v1496_v7 = vadd.f32 -0.28449672, %v1432_v55  ;;  %v1371_v39 = vadd.f32 1.4214138, %v1307_v22  ;;  %v2199_v20 = vsub.f32 0.0, %v2071_v37 }
 0x2a0   : > { %v2073_v16 = vsub.f32 1.0, %v2009_v38  ;;  %v2006_v36 = vmul.f32 %v6315_v4, %v1686_v28  ;;  %v1309_v5 = vmul.f32 %v6312_v21, %v1245_v1  ;;  %v2258_v47 = vsel %vm2130_vm10, %v2194_v53, %v2066_v18  ;;  %v6316_v38 = vld [vmem:[#allocation100_spill] sm:$0xff] }
 0x2a1   : > { %v2260_v50 = vsel %vm2132_vm11, %v2196_v54, %v2068_v25  ;;  %v1560_v34 = vmul.f32 %v6301_v63, %v1496_v7  ;;  %v1435_v45 = vmul.f32 %v6306_v8, %v1371_v39  ;;  %v2322_v62 = vadd.f32 1.0, %v2258_v47  ;;  %v6319_v53 = vld [vmem:[#allocation124_spill] sm:$0xff]  ;;  %v6321_v47 = vld [vmem:[#allocation143_spill] sm:$0xff] }
 0x2a2   : > { %v2324_v24 = vadd.f32 1.0, %v2260_v50  ;;  %v2263_v44 = vsel %vm2135_vm12, %v2199_v20, %v2071_v37  ;;  %v2201_v59 = vsub.f32 0.0, %v2073_v16  ;;  %v2070_v55 = vsub.f32 1.0, %v2006_v36  ;;  %v6320_v4 = vld [vmem:[#allocation140_spill] sm:$0xff] }
 0x2a3   : > { %v2327_v49 = vadd.f32 1.0, %v2263_v44  ;;  %v1624_v22 = vadd.f32 0.2548296, %v1560_v34  ;;  %v1499_v43 = vadd.f32 -0.28449672, %v1435_v45  ;;  %vm2136_vm15 = vcmp.lt.f32.partialorder %v6316_v38, 0.0 }
 0x2a4   : > { %v2386_v18 = vmul.f32 %v2322_v62, %v6317_v33  ;;  %v2388_v25 = vmul.f32 %v2324_v24, %v6318_v3  ;;  %v2265_v28 = vsel %vm2137_vm13, %v2201_v59, %v2073_v16  ;;  %v1373_v1 = vadd.f32 1.4214138, %v1309_v5  ;;  %v6323_v34 = vld [vmem:[#allocation135_spill] sm:$0xff]  ;;  %v6325_v33 = vld [vmem:[#allocation118_spill] sm:$0xff]  ;;  %v6330_v38 = vld [vmem:[#allocation36_spill] sm:$0xff] }
 0x2a5   : > { %v2391_v54 = vmul.f32 %v2327_v49, %v6319_v53  ;;  %v2329_v7 = vadd.f32 1.0, %v2265_v28  ;;  %v2198_v26 = vsub.f32 0.0, %v2070_v55  ;;  %v1688_v37 = vmul.f32 %v6301_v63, %v1624_v22  ;;  %v6324_v59 = vld [vmem:[#allocation119_spill] sm:$0xff] }
 0x2a6   : > { %2592 = vmatmul.mubr.f32.gmra.mrb[44].mxu0 %v2386_v18  ;;  %2737 = vmatmul.mubr.f32.gmra.mrb[44].mxu1 %v2388_v25  ;;  %v1563_v39 = vmul.f32 %v6306_v8, %v1499_v43  ;;  %v1437_v20 = vmul.f32 %v6312_v21, %v1373_v1  ;;  %v1178_v36 = vmul.f32 1.0614054, %v6320_v4  ;;  %v1180_v50 = vmul.f32 1.0614054, %v6321_v47 }
 0x2a7   : > { %2596 = vmatprep.mubr.f32.mxu0 %v2391_v54  ;;  %v2393_v16 = vmul.f32 %v2329_v7, %v6322_v29  ;;  %v2262_v5 = vsel %vm2134_vm14, %v2198_v26, %v2070_v55  ;;  %v2008_v45 = vmul.f32 %v6323_v34, %v1688_v37  ;;  %v1183_v63 = vmul.f32 1.0614054, %v4789_v51  ;;  %v6327_v26 = vld [vmem:[#allocation156_spill] sm:$0xff] }
 0x2a8   : > { %v2326_v62 = vadd.f32 1.0, %v2262_v5  ;;  %v1627_v24 = vadd.f32 0.2548296, %v1563_v39  ;;  %v1501_v44 = vadd.f32 -0.28449672, %v1437_v20  ;;  %vm2139_vm0 = vcmp.lt.f32.partialorder %v6324_v59, 0.0 }
 0x2a9   : > { %3546 = vpow2.f32 %v5132_v12  ;;  %2741 = vmatprep.mubr.f32.mxu1 %v2393_v16  ;;  %v2072_v49 = vsub.f32 1.0, %v2008_v45  ;;  %v1242_v22 = vadd.f32 -1.4531521, %v1178_v36  ;;  %v1244_v43 = vadd.f32 -1.4531521, %v1180_v50  ;;  %v6326_v12 = vld [vmem:[#allocation151_spill] sm:$0xff] }
 0x2aa   : > { %v2390_v31 = vmul.f32 %v2326_v62, %v6325_v33  ;;  %v1691_v55 = vmul.f32 %v6306_v8, %v1627_v24  ;;  %v1565_v18 = vmul.f32 %v6312_v21, %v1501_v44  ;;  %v1247_v3 = vadd.f32 -1.4531521, %v1183_v63  ;;  %v6328_v39 = vld [vmem:[#allocation25_spill] sm:$0xff] }
 0x2ab   : > { %v2200_v25 = vsub.f32 0.0, %v2072_v49  ;;  %v1306_v35 = vmul.f32 %v6320_v4, %v1242_v22  ;;  %v1308_v28 = vmul.f32 %v6321_v47, %v1244_v43  ;;  %v1185_v1 = vmul.f32 1.0614054, %v4802_v42  ;;  %v6329_v44 = vld [vmem:[#allocation121_spill] sm:$0xff] }
 0x2ac   : > { %2597 = vmatmul.mubr.f32.gmra.mrb[46].mxu0 %v2390_v31  ;;  %v2011_v53 = vmul.f32 %v6326_v12, %v1691_v55  ;;  %v1629_v54 = vadd.f32 0.2548296, %v1565_v18  ;;  %v1311_v7 = vmul.f32 %v4789_v51, %v1247_v3  ;;  %v1182_v37 = vmul.f32 1.0614054, %v6327_v26  ;;  %v5404_v3 = vpop.eup %3544  ;;  %v6332_v59 = vld [vmem:[#allocation137_spill] sm:$0xff] }
 0x2ad   : > { %vm2141_vm1 = vcmp.lt.f32.partialorder %v6328_v39, 0.0  ;;  %v2264_v8 = vsel %vm2136_vm15, %v2200_v25, %v2072_v49  ;;  %v1370_v20 = vadd.f32 1.4214138, %v1306_v35  ;;  %v1372_v36 = vadd.f32 1.4214138, %v1308_v28 }
 0x2ae   : > { %v1249_v50 = vadd.f32 -1.4531521, %v1185_v1  ;;  %v2328_v29 = vadd.f32 1.0, %v2264_v8  ;;  %v2075_v16 = vsub.f32 1.0, %v2011_v53  ;;  %v1693_v5 = vmul.f32 %v6312_v21, %v1629_v54  ;;  %v6331_v1 = vld [vmem:[#allocation158_spill] sm:$0xff] }
 0x2af   : > { %v1375_v34 = vadd.f32 1.4214138, %v1311_v7  ;;  %v1434_v45 = vmul.f32 %v6320_v4, %v1370_v20  ;;  %v1436_v63 = vmul.f32 %v6321_v47, %v1372_v36  ;;  %v1246_v24 = vadd.f32 -1.4531521, %v1182_v37 }
 0x2b0   : > { %v1313_v62 = vmul.f32 %v4802_v42, %v1249_v50  ;;  %v2392_v22 = vmul.f32 %v2328_v29, %v6329_v44  ;;  %v2203_v43 = vsub.f32 0.0, %v2075_v16  ;;  %v2013_v49 = vmul.f32 %v6330_v38, %v1693_v5  ;;  %v6335_v38 = vld [vmem:[#allocation128_spill] sm:$0xff] }
 0x2b1   : > { %v1439_v33 = vmul.f32 %v4789_v51, %v1375_v34  ;;  %v1498_v31 = vadd.f32 -0.28449672, %v1434_v45  ;;  %v1500_v55 = vadd.f32 -0.28449672, %v1436_v63  ;;  %v1310_v21 = vmul.f32 %v6327_v26, %v1246_v24  ;;  %v6333_v63 = vld [vmem:[#allocation110_spill] sm:$0xff] }
 0x2b2   : > { %v1377_v18 = vadd.f32 1.4214138, %v1313_v62  ;;  %2742 = vmatmul.mubr.f32.gmra.mrb[46].mxu1 %v2392_v22  ;;  %v2267_v25 = vsel %vm2139_vm0, %v2203_v43, %v2075_v16  ;;  %v2077_v35 = vsub.f32 1.0, %v2013_v49  ;;  %v1184_v12 = vmul.f32 1.0614054, %v6331_v1  ;;  %v6334_v62 = vld [vmem:[#allocation115_spill] sm:$0xff] }
 0x2b3   : > { %v1503_v28 = vadd.f32 -0.28449672, %v1439_v33  ;;  %v5409_v53 = vpop.eup %3546  ;;  %v2331_v54 = vadd.f32 1.0, %v2267_v25  ;;  %v1562_v7 = vmul.f32 %v6320_v4, %v1498_v31  ;;  %v1564_v37 = vmul.f32 %v6321_v47, %v1500_v55 }
 0x2b4   : > { %v1441_v8 = vmul.f32 %v4802_v42, %v1377_v18  ;;  %v2205_v20 = vsub.f32 0.0, %v2077_v35  ;;  %v1374_v50 = vadd.f32 1.4214138, %v1310_v21  ;;  %v1248_v29 = vadd.f32 -1.4531521, %v1184_v12  ;;  %v6337_v12 = vld [vmem:[#allocation33_spill] sm:$0xff] }
 0x2b5   : > { %v1567_v36 = vmul.f32 %v4789_v51, %v1503_v28  ;;  %v2395_v16 = vmul.f32 %v2331_v54, %v6332_v59  ;;  %v1626_v5 = vadd.f32 0.2548296, %v1562_v7  ;;  %v1628_v34 = vadd.f32 0.2548296, %v1564_v37  ;;  %v6338_v7 = vld [vmem:[#allocation145_spill] sm:$0xff] }
 0x2b6   : > { %v1505_v45 = vadd.f32 -0.28449672, %v1441_v8  ;;  %vm2138_vm2 = vcmp.lt.f32.partialorder %v6333_v63, 0.0  ;;  %vm2140_vm3 = vcmp.lt.f32.partialorder %v6334_v62, 0.0  ;;  %v2269_v24 = vsel %vm2141_vm1, %v2205_v20, %v2077_v35  ;;  %v6336_v35 = vld [vmem:[#allocation144_spill] sm:$0xff]  ;;  %v6339_v20 = vld [vmem:[#allocation130_spill] sm:$0xff] }
 0x2b7   : > { %v1631_v44 = vadd.f32 0.2548296, %v1567_v36  ;;  %v1438_v22 = vmul.f32 %v6327_v26, %v1374_v50  ;;  %v1312_v43 = vmul.f32 %v6331_v1, %v1248_v29  ;;  %vm2143_vm4 = vcmp.lt.f32.partialorder %v6335_v38, 0.0  ;;  %2601 = vmatprep.mubr.f32.mxu0 %v2395_v16  ;;  %v6342_v63 = vld [vmem:[#allocation126_spill] sm:$0xff] }
 0x2b8   : > { %v2333_v49 = vadd.f32 1.0, %v2269_v24  ;;  %v1690_v33 = vmul.f32 %v6320_v4, %v1626_v5  ;;  %v1692_v31 = vmul.f32 %v6321_v47, %v1628_v34  ;;  %v1569_v55 = vmul.f32 %v4802_v42, %v1505_v45 }
 0x2b9   : > { %v1695_v18 = vmul.f32 %v4789_v51, %v1631_v44  ;;  %v1502_v21 = vadd.f32 -0.28449672, %v1438_v22  ;;  %v1376_v39 = vadd.f32 1.4214138, %v1312_v43  ;;  %v1187_v25 = vmul.f32 1.0614054, %v4855_v32 }
 0x2ba   : > { %v2397_v28 = vmul.f32 %v2333_v49, %v6336_v35  ;;  %v2010_v54 = vmul.f32 %v6337_v12, %v1690_v33  ;;  %v2012_v37 = vmul.f32 %v6338_v7, %v1692_v31  ;;  %v1633_v8 = vadd.f32 0.2548296, %v1569_v55  ;;  %v6340_v44 = vld [vmem:[#allocation123_spill] sm:$0xff]  ;;  %v6341_v12 = vld [vmem:[#allocation37_spill] sm:$0xff] }
 0x2bb   : > { %vm2145_vm5 = vcmp.lt.f32.partialorder %v6339_v20, 0.0  ;;  %v2015_v4 = vmul.f32 %v4796_v46, %v1695_v18  ;;  %v1566_v47 = vmul.f32 %v6327_v26, %v1502_v21  ;;  %v1440_v36 = vmul.f32 %v6331_v1, %v1376_v39  ;;  %v6349_v20 = vld [vmem:[#allocation181_spill] sm:$0xff] }
 0x2bc   : > { %v1251_v51 = vadd.f32 -1.4531521, %v1187_v25  ;;  %2746 = vmatprep.mubr.f32.mxu1 %v2397_v28  ;;  %v2074_v50 = vsub.f32 1.0, %v2010_v54  ;;  %v2076_v29 = vsub.f32 1.0, %v2012_v37  ;;  %v1697_v59 = vmul.f32 %v4802_v42, %v1633_v8 }
 0x2bd   : > { %v1189_v16 = vmul.f32 1.0614054, %v4868_v6  ;;  %v2079_v5 = vsub.f32 1.0, %v2015_v4  ;;  %v1630_v34 = vadd.f32 0.2548296, %v1566_v47  ;;  %vm2142_vm6 = vcmp.lt.f32.partialorder %v6340_v44, 0.0 }
 0x2be   : > { %v1504_v45 = vadd.f32 -0.28449672, %v1440_v36  ;;  %v1315_v24 = vmul.f32 %v4855_v32, %v1251_v51  ;;  %v2202_v46 = vsub.f32 0.0, %v2074_v50  ;;  %v2204_v22 = vsub.f32 0.0, %v2076_v29  ;;  %v6343_v4 = vld [vmem:[#allocation132_spill] sm:$0xff] }
 0x2bf   : > { %v2017_v43 = vmul.f32 %v4816_v10, %v1697_v59  ;;  %v1253_v49 = vadd.f32 -1.4531521, %v1189_v16  ;;  %v2207_v33 = vsub.f32 0.0, %v2079_v5  ;;  %v1694_v31 = vmul.f32 %v6327_v26, %v1630_v34  ;;  %v6344_v47 = vld [vmem:[#allocation136_spill] sm:$0xff] }
 0x2c0   : > { %v1568_v55 = vmul.f32 %v6331_v1, %v1504_v45  ;;  %v1379_v42 = vadd.f32 1.4214138, %v1315_v24  ;;  %v2266_v18 = vsel %vm2138_vm2, %v2202_v46, %v2074_v50  ;;  %v2268_v21 = vsel %vm2140_vm3, %v2204_v22, %v2076_v29  ;;  %v6345_v29 = vld [vmem:[#allocation150_spill] sm:$0xff]  ;;  %v6346_v46 = vld [vmem:[#allocation165_spill] sm:$0xff] }
 0x2c1   : > { %v2081_v39 = vsub.f32 1.0, %v2017_v43  ;;  %v1317_v25 = vmul.f32 %v4868_v6, %v1253_v49  ;;  %v2330_v35 = vadd.f32 1.0, %v2266_v18  ;;  %v2332_v28 = vadd.f32 1.0, %v2268_v21  ;;  %v6347_v43 = vld [vmem:[#allocation160_spill] sm:$0xff]  ;;  %v6350_v18 = vld [vmem:[#allocation154_spill] sm:$0xff] }
 0x2c2   : > { %v2271_v10 = vsel %vm2143_vm4, %v2207_v33, %v2079_v5  ;;  %v2014_v54 = vmul.f32 %v6341_v12, %v1694_v31  ;;  %v1632_v37 = vadd.f32 0.2548296, %v1568_v55  ;;  %v1443_v8 = vmul.f32 %v4855_v32, %v1379_v42  ;;  %v6348_v31 = vld [vmem:[#allocation169_spill] sm:$0xff] }
 0x2c3   : > { %v2335_v26 = vadd.f32 1.0, %v2271_v10  ;;  %v2209_v7 = vsub.f32 0.0, %v2081_v39  ;;  %vm2144_vm7 = vcmp.lt.f32.partialorder %v6342_v63, 0.0  ;;  %v2394_v62 = vmul.f32 %v2330_v35, %v6343_v4  ;;  %v6352_v4 = vld [vmem:[#allocation148_spill] sm:$0xff] }
 0x2c4   : > { %v2396_v36 = vmul.f32 %v2332_v28, %v6344_v47  ;;  %v2078_v51 = vsub.f32 1.0, %v2014_v54  ;;  %v1381_v50 = vadd.f32 1.4214138, %v1317_v25  ;;  %v1696_v16 = vmul.f32 %v6331_v1, %v1632_v37  ;;  %v6351_v54 = vld [vmem:[#allocation141_spill] sm:$0xff] }
 0x2c5   : > { %v2399_v59 = vmul.f32 %v2335_v26, %v6345_v29  ;;  %v2273_v38 = vsel %vm2145_vm5, %v2209_v7, %v2081_v39  ;;  %v1507_v5 = vadd.f32 -0.28449672, %v1443_v8  ;;  %2602 = vmatmul.mubr.f32.gmra.mrb[48].mxu0 %v2394_v62  ;;  %v1186_v22 = vmul.f32 1.0614054, %v6346_v46 }
 0x2c6   : > { %2747 = vmatmul.mubr.f32.gmra.mrb[48].mxu1 %v2396_v36  ;;  %v2337_v34 = vadd.f32 1.0, %v2273_v38  ;;  %v2206_v45 = vsub.f32 0.0, %v2078_v51  ;;  %v1445_v24 = vmul.f32 %v4868_v6, %v1381_v50  ;;  %v2016_v49 = vmul.f32 %v6347_v43, %v1696_v16  ;;  %v6353_v38 = vld [vmem:[#allocation146_spill] sm:$0xff] }
 0x2c7   : > { %2606 = vmatprep.mubr.f32.mxu0 %v2399_v59  ;;  %v1571_v33 = vmul.f32 %v4855_v32, %v1507_v5  ;;  %v1188_v55 = vmul.f32 1.0614054, %v6348_v31  ;;  %v1191_v42 = vmul.f32 1.0614054, %v6349_v20  ;;  %v1250_v25 = vadd.f32 -1.4531521, %v1186_v22 }
 0x2c8   : > { %v2401_v1 = vmul.f32 %v2337_v34, %v6350_v18  ;;  %v2270_v21 = vsel %vm2142_vm6, %v2206_v45, %v2078_v51  ;;  %v1509_v39 = vadd.f32 -0.28449672, %v1445_v24  ;;  %v2080_v28 = vsub.f32 1.0, %v2016_v49  ;;  %v6354_v5 = vld [vmem:[#allocation173_spill] sm:$0xff]  ;;  %v6355_v24 = vld [vmem:[#allocation175_spill] sm:$0xff] }
 0x2c9   : > { %v2334_v35 = vadd.f32 1.0, %v2270_v21  ;;  %v1635_v10 = vadd.f32 0.2548296, %v1571_v33  ;;  %v1252_v12 = vadd.f32 -1.4531521, %v1188_v55  ;;  %vm2147_vm8 = vcmp.lt.f32.partialorder %v6351_v54, 0.0 }
 0x2ca   : > { %2751 = vmatprep.mubr.f32.mxu1 %v2401_v1  ;;  %v1573_v26 = vmul.f32 %v4868_v6, %v1509_v39  ;;  %v1314_v7 = vmul.f32 %v6346_v46, %v1250_v25  ;;  %v1255_v37 = vadd.f32 -1.4531521, %v1191_v42  ;;  %v1193_v8 = vmul.f32 1.0614054, %v4903_v52  ;;  %v6356_v21 = vld [vmem:[#allocation149_spill] sm:$0xff]  ;;  %v6361_v54 = vld [vmem:[#allocation163_spill] sm:$0xff] }
 0x2cb   : > { %v2398_v62 = vmul.f32 %v2334_v35, %v6352_v4  ;;  %v2208_v44 = vsub.f32 0.0, %v2080_v28  ;;  %v1699_v47 = vmul.f32 %v4855_v32, %v1635_v10  ;;  %v1316_v36 = vmul.f32 %v6348_v31, %v1252_v12  ;;  %v6357_v39 = vld [vmem:[#allocation177_spill] sm:$0xff]  ;;  %v6358_v4 = vld [vmem:[#allocation38_spill] sm:$0xff] }
 0x2cc   : > { %v1637_v51 = vadd.f32 0.2548296, %v1573_v26  ;;  %v1378_v50 = vadd.f32 1.4214138, %v1314_v7  ;;  %v1319_v29 = vmul.f32 %v6349_v20, %v1255_v37  ;;  %v1257_v59 = vadd.f32 -1.4531521, %v1193_v8 }
 0x2cd   : > { %vm2149_vm9 = vcmp.lt.f32.partialorder %v6353_v38, 0.0  ;;  %2607 = vmatmul.mubr.f32.gmra.mrb[50].mxu0 %v2398_v62  ;;  %v2272_v16 = vsel %vm2144_vm7, %v2208_v44, %v2080_v28  ;;  %v2019_v34 = vmul.f32 %v6354_v5, %v1699_v47  ;;  %v1380_v45 = vadd.f32 1.4214138, %v1316_v36  ;;  %v6359_v5 = vld [vmem:[#allocation134_spill] sm:$0xff] }
 0x2ce   : > { %v1190_v22 = vmul.f32 1.0614054, %v6355_v24  ;;  %v2336_v43 = vadd.f32 1.0, %v2272_v16  ;;  %v1701_v32 = vmul.f32 %v4868_v6, %v1637_v51  ;;  %v1442_v49 = vmul.f32 %v6346_v46, %v1378_v50 }
 0x2cf   : > { %v1383_v33 = vadd.f32 1.4214138, %v1319_v29  ;;  %v2083_v55 = vsub.f32 1.0, %v2019_v34  ;;  %v1444_v42 = vmul.f32 %v6348_v31, %v1380_v45  ;;  %v1321_v18 = vmul.f32 %v4903_v52, %v1257_v59 }
 0x2d0   : > { %v1254_v1 = vadd.f32 -1.4531521, %v1190_v22  ;;  %v2400_v63 = vmul.f32 %v2336_v43, %v6356_v21  ;;  %v2021_v25 = vmul.f32 %v6357_v39, %v1701_v32  ;;  %v1506_v35 = vadd.f32 -0.28449672, %v1442_v49  ;;  %v6360_v32 = vld [vmem:[#allocation139_spill] sm:$0xff] }
 0x2d1   : > { %v1447_v28 = vmul.f32 %v6349_v20, %v1383_v33  ;;  %v2211_v10 = vsub.f32 0.0, %v2083_v55  ;;  %v1508_v12 = vadd.f32 -0.28449672, %v1444_v42  ;;  %v1385_v26 = vadd.f32 1.4214138, %v1321_v18  ;;  %v6362_v18 = vld [vmem:[#allocation157_spill] sm:$0xff] }
 0x2d2   : > { %v1318_v6 = vmul.f32 %v6355_v24, %v1254_v1  ;;  %2752 = vmatmul.mubr.f32.gmra.mrb[50].mxu1 %v2400_v63  ;;  %v2085_v7 = vsub.f32 1.0, %v2021_v25  ;;  %v1570_v37 = vmul.f32 %v6346_v46, %v1506_v35  ;;  %v1192_v62 = vmul.f32 1.0614054, %v6358_v4  ;;  %v6363_v25 = vld [vmem:[#allocation167_spill] sm:$0xff] }
 0x2d3   : > { %v1511_v8 = vadd.f32 -0.28449672, %v1447_v28  ;;  %v2275_v44 = vsel %vm2147_vm8, %v2211_v10, %v2083_v55  ;;  %v1572_v47 = vmul.f32 %v6348_v31, %v1508_v12  ;;  %v1449_v36 = vmul.f32 %v4903_v52, %v1385_v26  ;;  %v6364_v12 = vld [vmem:[#allocation166_spill] sm:$0xff]  ;;  %v6365_v26 = vld [vmem:[#allocation45_spill] sm:$0xff] }
 0x2d4   : > { %v1382_v51 = vadd.f32 1.4214138, %v1318_v6  ;;  %v2339_v50 = vadd.f32 1.0, %v2275_v44  ;;  %v2213_v29 = vsub.f32 0.0, %v2085_v7  ;;  %v1634_v59 = vadd.f32 0.2548296, %v1570_v37 }
 0x2d5   : > { %v1575_v16 = vmul.f32 %v6349_v20, %v1511_v8  ;;  %vm2146_vm10 = vcmp.lt.f32.partialorder %v6359_v5, 0.0  ;;  %v1636_v34 = vadd.f32 0.2548296, %v1572_v47  ;;  %v1513_v45 = vadd.f32 -0.28449672, %v1449_v36  ;;  %v6369_v5 = vld [vmem:[#allocation155_spill] sm:$0xff] }
 0x2d6   : > { %v1446_v22 = vmul.f32 %v6355_v24, %v1382_v51  ;;  %v1256_v43 = vadd.f32 -1.4531521, %v1192_v62  ;;  %vm2148_vm11 = vcmp.lt.f32.partialorder %v6360_v32, 0.0  ;;  %v2403_v49 = vmul.f32 %v2339_v50, %v6361_v54 }
 0x2d7   : > { %v2277_v33 = vsel %vm2149_vm9, %v2213_v29, %v2085_v7  ;;  %v1698_v55 = vmul.f32 %v6346_v46, %v1634_v59  ;;  %v1639_v42 = vadd.f32 0.2548296, %v1575_v16  ;;  %vm2151_vm12 = vcmp.lt.f32.partialorder %v6362_v18, 0.0  ;;  %v6367_v29 = vld [vmem:[#allocation147_spill] sm:$0xff]  ;;  %v6372_v18 = vld [vmem:[#allocation176_spill] sm:$0xff] }
 0x2d8   : > { %v2341_v1 = vadd.f32 1.0, %v2277_v33  ;;  %v1700_v21 = vmul.f32 %v6348_v31, %v1636_v34  ;;  %v1577_v63 = vmul.f32 %v4903_v52, %v1513_v45  ;;  %v1510_v39 = vadd.f32 -0.28449672, %v1446_v22  ;;  %2611 = vmatprep.mubr.f32.mxu0 %v2403_v49  ;;  %v6366_v31 = vld [vmem:[#allocation159_spill] sm:$0xff] }
 0x2d9   : > { %v2018_v35 = vmul.f32 %v6363_v25, %v1698_v55  ;;  %v1703_v28 = vmul.f32 %v6349_v20, %v1639_v42  ;;  %v1320_v10 = vmul.f32 %v6358_v4, %v1256_v43  ;;  %v1195_v38 = vmul.f32 1.0614054, %v4952_v15 }
 0x2da   : > { %v2405_v46 = vmul.f32 %v2341_v1, %v6364_v12  ;;  %v2020_v6 = vmul.f32 %v6365_v26, %v1700_v21  ;;  %v1641_v7 = vadd.f32 0.2548296, %v1577_v63  ;;  %v1574_v37 = vmul.f32 %v6355_v24, %v1510_v39  ;;  %v6368_v63 = vld [vmem:[#allocation180_spill] sm:$0xff] }
 0x2db   : > { %vm2153_vm13 = vcmp.lt.f32.partialorder %v6366_v31, 0.0  ;;  %v2082_v8 = vsub.f32 1.0, %v2018_v35  ;;  %v2023_v62 = vmul.f32 %v4908_v58, %v1703_v28  ;;  %v1384_v44 = vadd.f32 1.4214138, %v1320_v10 }
 0x2dc   : > { %v1259_v47 = vadd.f32 -1.4531521, %v1195_v38  ;;  %2756 = vmatprep.mubr.f32.mxu1 %v2405_v46  ;;  %v2084_v20 = vsub.f32 1.0, %v2020_v6  ;;  %v1705_v36 = vmul.f32 %v4903_v52, %v1641_v7  ;;  %v1638_v51 = vadd.f32 0.2548296, %v1574_v37  ;;  %v6370_v46 = vld [vmem:[#allocation162_spill] sm:$0xff] }
 0x2dd   : > { %v1197_v50 = vmul.f32 1.0614054, %v4961_v56  ;;  %vm2150_vm14 = vcmp.lt.f32.partialorder %v6367_v29, 0.0  ;;  %v2210_v59 = vsub.f32 0.0, %v2082_v8  ;;  %v2087_v16 = vsub.f32 1.0, %v2023_v62  ;;  %v6371_v37 = vld [vmem:[#allocation153_spill] sm:$0xff] }
 0x2de   : > { %v1448_v34 = vmul.f32 %v6358_v4, %v1384_v44  ;;  %v1323_v45 = vmul.f32 %v4952_v15, %v1259_v47  ;;  %v2212_v22 = vsub.f32 0.0, %v2084_v20  ;;  %v2025_v58 = vmul.f32 %v4912_v61, %v1705_v36 }
 0x2df   : > { %v1702_v43 = vmul.f32 %v6355_v24, %v1638_v51  ;;  %v1261_v54 = vadd.f32 -1.4531521, %v1197_v50  ;;  %v2274_v52 = vsel %vm2146_vm10, %v2210_v59, %v2082_v8  ;;  %v2215_v49 = vsub.f32 0.0, %v2087_v16 }
 0x2e0   : > { %v1512_v33 = vadd.f32 -0.28449672, %v1448_v34  ;;  %v1387_v55 = vadd.f32 1.4214138, %v1323_v45  ;;  %v2338_v42 = vadd.f32 1.0, %v2274_v52  ;;  %v2276_v1 = vsel %vm2148_vm11, %v2212_v22, %v2084_v20  ;;  %v6373_v45 = vld [vmem:[#allocation178_spill] sm:$0xff] }
 0x2e1   : > { %v2089_v21 = vsub.f32 1.0, %v2025_v58  ;;  %v2022_v39 = vmul.f32 %v6368_v63, %v1702_v43  ;;  %v2340_v25 = vadd.f32 1.0, %v2276_v1  ;;  %v2279_v61 = vsel %vm2151_vm12, %v2215_v49, %v2087_v16  ;;  %v6374_v43 = vld [vmem:[#allocation44_spill] sm:$0xff] }
 0x2e2   : > { %v1576_v24 = vmul.f32 %v6358_v4, %v1512_v33  ;;  %v1451_v35 = vmul.f32 %v4952_v15, %v1387_v55  ;;  %v2402_v28 = vmul.f32 %v2338_v42, %v6369_v5  ;;  %v2343_v10 = vadd.f32 1.0, %v2279_v61  ;;  %v6375_v49 = vld [vmem:[#allocation40_spill] sm:$0xff]  ;;  %v6376_v42 = vld [vmem:[#allocation171_spill] sm:$0xff] }
 0x2e3   : > { %v2217_v38 = vsub.f32 0.0, %v2089_v21  ;;  %v2086_v12 = vsub.f32 1.0, %v2022_v39  ;;  %v2404_v26 = vmul.f32 %v2340_v25, %v6370_v46  ;;  %v1325_v7 = vmul.f32 %v4961_v56, %v1261_v54 }
 0x2e4   : > { %v1640_v32 = vadd.f32 0.2548296, %v1576_v24  ;;  %v1515_v6 = vadd.f32 -0.28449672, %v1451_v35  ;;  %vm2152_vm15 = vcmp.lt.f32.partialorder %v6371_v37, 0.0  ;;  %2612 = vmatmul.mubr.f32.gmra.mrb[52].mxu0 %v2402_v28  ;;  %v2407_v8 = vmul.f32 %v2343_v10, %v6372_v18 }
 0x2e5   : > { %v2281_v62 = vsel %vm2153_vm13, %v2217_v38, %v2089_v21  ;;  %v2214_v44 = vsub.f32 0.0, %v2086_v12  ;;  %v1194_v47 = vmul.f32 1.0614054, %v4917_v23  ;;  %2757 = vmatmul.mubr.f32.gmra.mrb[52].mxu1 %v2404_v26  ;;  %v1389_v50 = vadd.f32 1.4214138, %v1325_v7 }
 0x2e6   : > { %v2345_v20 = vadd.f32 1.0, %v2281_v62  ;;  %v1704_v36 = vmul.f32 %v6358_v4, %v1640_v32  ;;  %v1579_v51 = vmul.f32 %v4952_v15, %v1515_v6  ;;  %2616 = vmatprep.mubr.f32.mxu0 %v2407_v8  ;;  %v1196_v34 = vmul.f32 1.0614054, %v4921_v48 }
 0x2e7   : > { %v2278_v59 = vsel %vm2150_vm14, %v2214_v44, %v2086_v12  ;;  %v1258_v16 = vadd.f32 -1.4531521, %v1194_v47  ;;  %v1199_v31 = vmul.f32 1.0614054, %v5019_v0  ;;  %vm2155_vm0 = vcmp.lt.f32.partialorder %v6375_v49, 0.0  ;;  %v6377_v47 = vld [vmem:[#allocation168_spill] sm:$0xff] }
 0x2e8   : > { %v2409_v22 = vmul.f32 %v2345_v20, %v6373_v45  ;;  %v2342_v58 = vadd.f32 1.0, %v2278_v59  ;;  %v2024_v54 = vmul.f32 %v6374_v43, %v1704_v36  ;;  %v1643_v52 = vadd.f32 0.2548296, %v1579_v51  ;;  %v6378_v59 = vld [vmem:[#allocation174_spill] sm:$0xff]  ;;  %v6381_v49 = vld [vmem:[#allocation193_spill] sm:$0xff] }
 0x2e9   : > { %v1453_v4 = vmul.f32 %v4961_v56, %v1389_v50  ;;  %v1322_v33 = vmul.f32 %v4917_v23, %v1258_v16  ;;  %v1260_v55 = vadd.f32 -1.4531521, %v1196_v34  ;;  %v1263_v29 = vadd.f32 -1.4531521, %v1199_v31 }
 0x2ea   : > { %2761 = vmatprep.mubr.f32.mxu1 %v2409_v22  ;;  %v2406_v1 = vmul.f32 %v2342_v58, %v6376_v42  ;;  %v2088_v21 = vsub.f32 1.0, %v2024_v54  ;;  %v1707_v63 = vmul.f32 %v4952_v15, %v1643_v52  ;;  %v1201_v39 = vmul.f32 1.0614054, %v5027_v27  ;;  %v6379_v52 = vld [vmem:[#allocation46_spill] sm:$0xff] }
 0x2eb   : > { %v1517_v25 = vadd.f32 -0.28449672, %v1453_v4  ;;  %v1386_v61 = vadd.f32 1.4214138, %v1322_v33  ;;  %v1324_v24 = vmul.f32 %v4921_v48, %v1260_v55  ;;  %v1327_v35 = vmul.f32 %v5019_v0, %v1263_v29  ;;  %v6380_v29 = vld [vmem:[#allocation161_spill] sm:$0xff] }
 0x2ec   : > { %2617 = vmatmul.mubr.f32.gmra.mrb[54].mxu0 %v2406_v1  ;;  %v2216_v5 = vsub.f32 0.0, %v2088_v21  ;;  %v2027_v28 = vmul.f32 %v4969_v9, %v1707_v63  ;;  %v1265_v10 = vadd.f32 -1.4531521, %v1201_v39  ;;  %v1198_v38 = vmul.f32 1.0614054, %v4979_v11  ;;  %v6382_v63 = vld [vmem:[#allocation185_spill] sm:$0xff] }
 0x2ed   : > { %v1581_v12 = vmul.f32 %v4961_v56, %v1517_v25  ;;  %v1450_v46 = vmul.f32 %v4917_v23, %v1386_v61  ;;  %v1388_v15 = vadd.f32 1.4214138, %v1324_v24  ;;  %v1391_v26 = vadd.f32 1.4214138, %v1327_v35  ;;  %v6383_v35 = vld [vmem:[#allocation164_spill] sm:$0xff] }
 0x2ee   : > { %v2280_v32 = vsel %vm2152_vm15, %v2216_v5, %v2088_v21  ;;  %v2091_v6 = vsub.f32 1.0, %v2027_v28  ;;  %v1329_v7 = vmul.f32 %v5027_v27, %v1265_v10  ;;  %v1262_v18 = vadd.f32 -1.4531521, %v1198_v38 }
 0x2ef   : > { %v2344_v8 = vadd.f32 1.0, %v2280_v32  ;;  %v1645_v62 = vadd.f32 0.2548296, %v1581_v12  ;;  %v1514_v44 = vadd.f32 -0.28449672, %v1450_v46  ;;  %v1452_v9 = vmul.f32 %v4921_v48, %v1388_v15  ;;  %v6384_v12 = vld [vmem:[#allocation182_spill] sm:$0xff] }
 0x2f0   : > { %vm2157_vm1 = vcmp.lt.f32.partialorder %v6377_v47, 0.0  ;;  %v2219_v20 = vsub.f32 0.0, %v2091_v6  ;;  %v1455_v36 = vmul.f32 %v5019_v0, %v1391_v26  ;;  %v1393_v51 = vadd.f32 1.4214138, %v1329_v7  ;;  %v6385_v15 = vld [vmem:[#allocation187_spill] sm:$0xff] }
 0x2f1   : > { %v1326_v50 = vmul.f32 %v4979_v11, %v1262_v18  ;;  %v2408_v37 = vmul.f32 %v2344_v8, %v6378_v59  ;;  %v1709_v16 = vmul.f32 %v4961_v56, %v1645_v62  ;;  %v1578_v34 = vmul.f32 %v4917_v23, %v1514_v44  ;;  %v6386_v62 = vld [vmem:[#allocation184_spill] sm:$0xff] }
 0x2f2   : > { %v1516_v31 = vadd.f32 -0.28449672, %v1452_v9  ;;  %v2283_v45 = vsel %vm2155_vm0, %v2219_v20, %v2091_v6  ;;  %v1519_v22 = vadd.f32 -0.28449672, %v1455_v36  ;;  %v1457_v58 = vmul.f32 %v5027_v27, %v1393_v51  ;;  %v6387_v20 = vld [vmem:[#allocation191_spill] sm:$0xff] }
 0x2f3   : > { %v1390_v43 = vadd.f32 1.4214138, %v1326_v50  ;;  %2762 = vmatmul.mubr.f32.gmra.mrb[54].mxu1 %v2408_v37  ;;  %v2347_v54 = vadd.f32 1.0, %v2283_v45  ;;  %v2029_v4 = vmul.f32 %v6379_v52, %v1709_v16  ;;  %v1642_v33 = vadd.f32 0.2548296, %v1578_v34  ;;  %v6388_v45 = vld [vmem:[#allocation170_spill] sm:$0xff] }
 0x2f4   : > { %v1580_v55 = vmul.f32 %v4921_v48, %v1516_v31  ;;  %vm2154_vm2 = vcmp.lt.f32.partialorder %v6380_v29, 0.0  ;;  %v1583_v56 = vmul.f32 %v5019_v0, %v1519_v22  ;;  %v1521_v42 = vadd.f32 -0.28449672, %v1457_v58  ;;  %v6389_v22 = vld [vmem:[#allocation186_spill] sm:$0xff]  ;;  %v6391_v29 = vld [vmem:[#allocation179_spill] sm:$0xff] }
 0x2f5   : > { %v1454_v1 = vmul.f32 %v4979_v11, %v1390_v43  ;;  %v1200_v21 = vmul.f32 1.0614054, %v6381_v49  ;;  %v2411_v39 = vmul.f32 %v2347_v54, %v6382_v63  ;;  %v2093_v25 = vsub.f32 1.0, %v2029_v4 }
 0x2f6   : > { %v1706_v61 = vmul.f32 %v4917_v23, %v1642_v33  ;;  %v1644_v24 = vadd.f32 0.2548296, %v1580_v55  ;;  %vm2156_vm3 = vcmp.lt.f32.partialorder %v6383_v35, 0.0  ;;  %v1647_v5 = vadd.f32 0.2548296, %v1583_v56  ;;  %v6392_v35 = vld [vmem:[#allocation183_spill] sm:$0xff] }
 0x2f7   : > { %v1585_v28 = vmul.f32 %v5027_v27, %v1521_v42  ;;  %v1518_v10 = vadd.f32 -0.28449672, %v1454_v1  ;;  %v1264_v38 = vadd.f32 -1.4531521, %v1200_v21  ;;  %vm2159_vm4 = vcmp.lt.f32.partialorder %v6384_v12, 0.0  ;;  %2621 = vmatprep.mubr.f32.mxu0 %v2411_v39  ;;  %v6390_v42 = vld [vmem:[#allocation194_spill] sm:$0xff] }
 0x2f8   : > { %v2221_v46 = vsub.f32 0.0, %v2093_v25  ;;  %v2026_v26 = vmul.f32 %v6385_v15, %v1706_v61  ;;  %v1708_v32 = vmul.f32 %v4921_v48, %v1644_v24  ;;  %v1203_v6 = vmul.f32 1.0614054, %v5100_v30 }
 0x2f9   : > { %v1711_v23 = vmul.f32 %v5019_v0, %v1647_v5  ;;  %v1649_v7 = vadd.f32 0.2548296, %v1585_v28  ;;  %v1582_v18 = vmul.f32 %v4979_v11, %v1518_v10  ;;  %v1328_v8 = vmul.f32 %v6381_v49, %v1264_v38 }
 0x2fa   : > { %vm2161_vm5 = vcmp.lt.f32.partialorder %v6386_v62, 0.0  ;;  %v2285_v44 = vsel %vm2157_vm1, %v2221_v46, %v2093_v25  ;;  %v2090_v9 = vsub.f32 1.0, %v2026_v26  ;;  %v2028_v36 = vmul.f32 %v6387_v20, %v1708_v32  ;;  %v6395_v62 = vld [vmem:[#allocation12_spill] sm:$0xff] }
 0x2fb   : > { %v1267_v51 = vadd.f32 -1.4531521, %v1203_v6  ;;  %v2349_v50 = vadd.f32 1.0, %v2285_v44  ;;  %v2031_v48 = vmul.f32 %v5040_v17, %v1711_v23  ;;  %v1713_v59 = vmul.f32 %v5027_v27, %v1649_v7  ;;  %v6393_v6 = vld [vmem:[#allocation192_spill] sm:$0xff] }
 0x2fc   : > { %v1646_v0 = vadd.f32 0.2548296, %v1582_v18  ;;  %v2218_v37 = vsub.f32 0.0, %v2090_v9  ;;  %v2092_v16 = vsub.f32 1.0, %v2028_v36  ;;  %v1392_v34 = vadd.f32 1.4214138, %v1328_v8 }
 0x2fd   : > { %v1331_v31 = vmul.f32 %v5100_v30, %v1267_v51  ;;  %vm2158_vm6 = vcmp.lt.f32.partialorder %v6388_v45, 0.0  ;;  %v2413_v47 = vmul.f32 %v2349_v50, %v6389_v22  ;;  %v2095_v58 = vsub.f32 1.0, %v2031_v48  ;;  %v6394_v8 = vld [vmem:[#allocation172_spill] sm:$0xff] }
 0x2fe   : > { %v2033_v43 = vmul.f32 %v5048_v2, %v1713_v59  ;;  %v1710_v54 = vmul.f32 %v4979_v11, %v1646_v0  ;;  %v2282_v17 = vsel %vm2154_vm2, %v2218_v37, %v2090_v9  ;;  %v2220_v52 = vsub.f32 0.0, %v2092_v16  ;;  %v6397_v45 = vld [vmem:[#allocation188_spill] sm:$0xff] }
 0x2ff   : > { %v1456_v27 = vmul.f32 %v6381_v49, %v1392_v34  ;;  %v1395_v4 = vadd.f32 1.4214138, %v1331_v31  ;;  %2766 = vmatprep.mubr.f32.mxu1 %v2413_v47  ;;  %v2346_v33 = vadd.f32 1.0, %v2282_v17  ;;  %v2223_v55 = vsub.f32 0.0, %v2095_v58  ;;  %v6396_v31 = vld [vmem:[#allocation195_spill] sm:$0xff] }
 0x300   : > { %v2097_v56 = vsub.f32 1.0, %v2033_v43  ;;  %v2030_v1 = vmul.f32 %v6390_v42, %v1710_v54  ;;  %v2284_v21 = vsel %vm2156_vm3, %v2220_v52, %v2092_v16  ;;  %v1205_v11 = vmul.f32 1.0614054, %v5112_v13  ;;  %v5636_v42 = vpop.f32.mrb[32].mxu1 }
 0x301   : > { %v1520_v63 = vadd.f32 -0.28449672, %v1456_v27  ;;  %v1459_v2 = vmul.f32 %v5100_v30, %v1395_v4  ;;  %v2410_v39 = vmul.f32 %v2346_v33, %v6391_v29  ;;  %v2348_v25 = vadd.f32 1.0, %v2284_v21  ;;  %v5632_v27 = vpop.f32.mrb[32].mxu0  ;;  %v6398_v21 = vld [vmem:[#allocation198_spill] sm:$0xff] }
 0x302   : > { %v2287_v61 = vsel %vm2159_vm4, %v2223_v55, %v2095_v58  ;;  %v2225_v24 = vsub.f32 0.0, %v2097_v56  ;;  %v2094_v28 = vsub.f32 1.0, %v2030_v1  ;;  %v1269_v26 = vadd.f32 -1.4531521, %v1205_v11  ;;  %v2963_v1 = vpop.f32.mrb[33].mxu0  ;;  %v6399_v11 = vld [vmem:[#allocation34_spill] sm:$0xff] }
 0x303   : > { %v2351_v5 = vadd.f32 1.0, %v2287_v61  ;;  %v1584_v10 = vmul.f32 %v6381_v49, %v1520_v63  ;;  %v1523_v38 = vadd.f32 -0.28449672, %v1459_v2  ;;  %2622 = vmatmul.mubr.f32.gmra.mrb[56].mxu0 %v2410_v39  ;;  %v2412_v46 = vmul.f32 %v2348_v25, %v6392_v35  ;;  %v5641_v39 = vpop.f32.mrb[33].mxu1 }
 0x304   : > { %v2289_v15 = vsel %vm2161_vm5, %v2225_v24, %v2097_v56  ;;  %v1202_v32 = vmul.f32 1.0614054, %v5053_v57  ;;  %v2222_v12 = vsub.f32 0.0, %v2094_v28  ;;  %vm2160_vm7 = vcmp.lt.f32.partialorder %v6394_v8, 0.0  ;;  %v6401_v8 = vld [vmem:[#allocation190_spill] sm:$0xff] }
 0x305   : > { %v2415_v23 = vmul.f32 %v2351_v5, %v6393_v6  ;;  %v2353_v7 = vadd.f32 1.0, %v2289_v15  ;;  %v1648_v18 = vadd.f32 0.2548296, %v1584_v10  ;;  %2767 = vmatmul.mubr.f32.gmra.mrb[56].mxu1 %v2412_v46  ;;  %v1587_v44 = vmul.f32 %v5100_v30, %v1523_v38 }
 0x306   : > { %v1333_v9 = vmul.f32 %v5112_v13, %v1269_v26  ;;  %v1266_v20 = vadd.f32 -1.4531521, %v1202_v32  ;;  %v1204_v36 = vmul.f32 1.0614054, %v5082_v41  ;;  %v2286_v50 = vsel %vm2158_vm6, %v2222_v12, %v2094_v28 }
 0x307   : > { %2626 = vmatprep.mubr.f32.mxu0 %v2415_v23  ;;  %v2417_v51 = vmul.f32 %v2353_v7, %v6395_v62  ;;  %v1712_v48 = vmul.f32 %v6381_v49, %v1648_v18  ;;  %v1207_v59 = vmul.f32 1.0614054, %v5238_v40  ;;  %v2350_v0 = vadd.f32 1.0, %v2286_v50  ;;  %v6400_v18 = vld [vmem:[#allocation17_spill] sm:$0xff] }
 0x308   : > { %v1651_v37 = vadd.f32 0.2548296, %v1587_v44  ;;  %v1397_v16 = vadd.f32 1.4214138, %v1333_v9  ;;  %v1330_v34 = vmul.f32 %v5053_v57, %v1266_v20  ;;  %vm2163_vm8 = vcmp.lt.f32.partialorder %v4991_v19, 0.0 }
 0x309   : > { %2771 = vmatprep.mubr.f32.mxu1 %v2417_v51  ;;  %v2032_v22 = vmul.f32 %v6396_v31, %v1712_v48  ;;  %v1268_v47 = vadd.f32 -1.4531521, %v1204_v36  ;;  %v1271_v58 = vadd.f32 -1.4531521, %v1207_v59  ;;  %v1209_v43 = vmul.f32 1.0614054, %v5348_v60 }
 0x30a   : > { %v2414_v54 = vmul.f32 %v2350_v0, %v6397_v45  ;;  %v1715_v49 = vmul.f32 %v5100_v30, %v1651_v37  ;;  %v1461_v17 = vmul.f32 %v5112_v13, %v1397_v16  ;;  %v1394_v52 = vadd.f32 1.4214138, %v1330_v34  ;;  %v6402_v59 = vld [vmem:[#allocation189_spill] sm:$0xff] }
 0x30b   : > { %v2096_v4 = vsub.f32 1.0, %v2032_v22  ;;  %v1332_v33 = vmul.f32 %v5082_v41, %v1268_v47  ;;  %v1335_v55 = vmul.f32 %v5238_v40, %v1271_v58  ;;  %v1273_v56 = vadd.f32 -1.4531521, %v1209_v43  ;;  %v6403_v31 = vld [vmem:[#allocation29_spill] sm:$0xff]  ;;  %v6404_v43 = vld [vmem:[#allocation64_spill] sm:$0xff] }
 0x30c   : > { %2627 = vmatmul.mubr.f32.gmra.mrb[58].mxu0 %v2414_v54  ;;  %v2035_v63 = vmul.f32 %v6398_v21, %v1715_v49  ;;  %v1525_v2 = vadd.f32 -0.28449672, %v1461_v17  ;;  %v1458_v30 = vmul.f32 %v5053_v57, %v1394_v52  ;;  %v1206_v29 = vmul.f32 1.0614054, %v6399_v11  ;;  %v6405_v45 = vld [vmem:[#allocation49_spill] sm:$0xff]  ;;  %v6406_v52 = vld [vmem:[#allocation43_spill] sm:$0xff] }
 0x30d   : > { %v2224_v25 = vsub.f32 0.0, %v2096_v4  ;;  %v1396_v61 = vadd.f32 1.4214138, %v1332_v33  ;;  %v1399_v24 = vadd.f32 1.4214138, %v1335_v55  ;;  %v1337_v5 = vmul.f32 %v5348_v60, %v1273_v56  ;;  %v6408_v55 = vld [vmem:[#allocation31_spill] sm:$0xff] }
 0x30e   : > { %v2099_v28 = vsub.f32 1.0, %v2035_v63  ;;  %v1589_v10 = vmul.f32 %v5112_v13, %v1525_v2  ;;  %v1522_v38 = vadd.f32 -0.28449672, %v1458_v30  ;;  %v1270_v35 = vadd.f32 -1.4531521, %v1206_v29 }
 0x30f   : > { %v2288_v46 = vsel %vm2160_vm7, %v2224_v25, %v2096_v4  ;;  %v1460_v15 = vmul.f32 %v5082_v41, %v1396_v61  ;;  %v1463_v26 = vmul.f32 %v5238_v40, %v1399_v24  ;;  %v1401_v32 = vadd.f32 1.4214138, %v1337_v5  ;;  %v6407_v4 = vld [vmem:[#allocation15_spill] sm:$0xff] }
 0x310   : > { %v2352_v6 = vadd.f32 1.0, %v2288_v46  ;;  %v2227_v23 = vsub.f32 0.0, %v2099_v28  ;;  %v1653_v7 = vadd.f32 0.2548296, %v1589_v10  ;;  %v1586_v12 = vmul.f32 %v5053_v57, %v1522_v38  ;;  %v6409_v10 = vld [vmem:[#allocation53_spill] sm:$0xff] }
 0x311   : > { %vm2165_vm9 = vcmp.lt.f32.partialorder %v6400_v18, 0.0  ;;  %v1524_v44 = vadd.f32 -0.28449672, %v1460_v15  ;;  %v1527_v9 = vadd.f32 -0.28449672, %v1463_v26  ;;  %v1465_v20 = vmul.f32 %v5348_v60, %v1401_v32  ;;  %v6410_v18 = vld [vmem:[#allocation24_spill] sm:$0xff] }
 0x312   : > { %v1334_v36 = vmul.f32 %v6399_v11, %v1270_v35  ;;  %v2416_v62 = vmul.f32 %v2352_v6, %v6401_v8  ;;  %v2291_v51 = vsel %vm2163_vm8, %v2227_v23, %v2099_v28  ;;  %v1717_v50 = vmul.f32 %v5112_v13, %v1653_v7 }
 0x313   : > { %v1650_v48 = vadd.f32 0.2548296, %v1586_v12  ;;  %vm2162_vm10 = vcmp.lt.f32.partialorder %v6402_v59, 0.0  ;;  %v2355_v0 = vadd.f32 1.0, %v2291_v51  ;;  %v1588_v37 = vmul.f32 %v5082_v41, %v1524_v44  ;;  %v6412_v59 = vld [vmem:[#allocation13_spill] sm:$0xff] }
 0x314   : > { %v1591_v16 = vmul.f32 %v5238_v40, %v1527_v9  ;;  %v1529_v34 = vadd.f32 -0.28449672, %v1465_v20  ;;  %2772 = vmatmul.mubr.f32.gmra.mrb[58].mxu1 %v2416_v62  ;;  %v2037_v22 = vmul.f32 %v6403_v31, %v1717_v50  ;;  %v1398_v58 = vadd.f32 1.4214138, %v1334_v36  ;;  %v6411_v50 = vld [vmem:[#allocation14_spill] sm:$0xff]  ;;  %v6413_v31 = vld [vmem:[#allocation60_spill] sm:$0xff] }
 0x315   : > { %v1714_v47 = vmul.f32 %v5053_v57, %v1650_v48  ;;  %v1208_v19 = vmul.f32 1.0614054, %v6404_v43  ;;  %v2419_v54 = vmul.f32 %v2355_v0, %v6405_v45  ;;  %v1652_v13 = vadd.f32 0.2548296, %v1588_v37  ;;  %v5672_v57 = vld [vmem:[%s5800_s4] ss:$0 sm:$0xff] }
 0x316   : > { %v1655_v49 = vadd.f32 0.2548296, %v1591_v16  ;;  %v1593_v17 = vmul.f32 %v5348_v60, %v1529_v34  ;;  %vm2164_vm11 = vcmp.lt.f32.partialorder %v6406_v52, 0.0  ;;  %vm2167_vm12 = vcmp.lt.f32.partialorder %v6407_v4, 0.0 }
 0x317   : > { %v2101_v33 = vsub.f32 1.0, %v2037_v22  ;;  %v2034_v56 = vmul.f32 %v6408_v55, %v1714_v47  ;;  %v1462_v21 = vmul.f32 %v6399_v11, %v1398_v58  ;;  %v1272_v63 = vadd.f32 -1.4531521, %v1208_v19  ;;  %2631 = vmatprep.mubr.f32.mxu0 %v2419_v54  ;;  %v6415_v58 = vld [vmem:[#allocation16_spill] sm:$0xff]  ;;  %v6417_v55 = vld [vmem:[#allocation18_spill] sm:$0xff] }
 0x318   : > { %v1716_v2 = vmul.f32 %v5082_v41, %v1652_v13  ;;  %v1719_v30 = vmul.f32 %v5238_v40, %v1655_v49  ;;  %v1657_v29 = vadd.f32 0.2548296, %v1593_v17  ;;  %v2964_v25 = vadd.f32 %v2963_v1, %v5632_v27  ;;  %v6416_v49 = vld [vmem:[#allocation41_spill] sm:$0xff] }
 0x319   : > { %v2229_v61 = vsub.f32 0.0, %v2101_v33  ;;  %v2098_v24 = vsub.f32 1.0, %v2034_v56  ;;  %v1526_v5 = vadd.f32 -0.28449672, %v1462_v21  ;;  %v1336_v28 = vmul.f32 %v6404_v43, %v1272_v63  ;;  %v2965_v63 = vpop.f32.mrb[34].mxu0 }
 0x31a   : > { %v2036_v38 = vmul.f32 %v6409_v10, %v1716_v2  ;;  %v2039_v35 = vmul.f32 %v5404_v3, %v1719_v30  ;;  %v1721_v46 = vmul.f32 %v5348_v60, %v1657_v29  ;;  %v2564_v15 = vadd.f32 %v2964_v25, %v5672_v57  ;;  %v2966_v30 = vpop.f32.mrb[35].mxu0  ;;  %v6418_v29 = vld [vmem:[#allocation48_spill] sm:$0xff] }
 0x31b   : > { %v2293_v41 = vsel %vm2165_vm9, %v2229_v61, %v2101_v33  ;;  %v2226_v40 = vsub.f32 0.0, %v2098_v24  ;;  %v1590_v26 = vmul.f32 %v6399_v11, %v1526_v5  ;;  %v1400_v27 = vadd.f32 1.4214138, %v1336_v28  ;;  %v3045_v5 = vpop.f32.mrb[34].mxu1 }
 0x31c   : > { %v2357_v1 = vadd.f32 1.0, %v2293_v41  ;;  %v2100_v32 = vsub.f32 1.0, %v2036_v38  ;;  %v2103_v6 = vsub.f32 1.0, %v2039_v35  ;;  %v2041_v23 = vmul.f32 %v5409_v53, %v1721_v46  ;;  %v3046_v10 = vpop.f32.mrb[35].mxu1 }
 0x31d   : > { %v2290_v7 = vsel %vm2162_vm10, %v2226_v40, %v2098_v24  ;;  %v1654_v3 = vadd.f32 0.2548296, %v1590_v26  ;;  %v1464_v60 = vmul.f32 %v6404_v43, %v1400_v27  ;;  %v3044_v12 = vadd.f32 %v5641_v39, %v5636_v42  ;;  %v6419_v40 = vld [vmem:[#allocation196_spill] sm:$0xff]  ;;  %v6420_v27 = vld [vmem:[#allocation22_spill] sm:$0xff] }
 0x31e   : > { %v2421_v44 = vmul.f32 %v2357_v1, %v6410_v18  ;;  %v2354_v9 = vadd.f32 1.0, %v2290_v7  ;;  %v2228_v20 = vsub.f32 0.0, %v2100_v32  ;;  %v2231_v36 = vsub.f32 0.0, %v2103_v6 }
 0x31f   : > { %v2105_v8 = vsub.f32 1.0, %v2041_v23  ;;  %v1718_v62 = vmul.f32 %v6399_v11, %v1654_v3  ;;  %v1528_v51 = vadd.f32 -0.28449672, %v1464_v60  ;;  %v2709_v53 = vadd.f32 %v3044_v12, %v2564_v15  ;;  %v6414_v11 = vld [vmem:[#allocation197_spill] sm:$0xff] }
 0x320   : > { %v759_v48 = vmul.f32 0.5, %v6411_v50  ;;  %2776 = vmatprep.mubr.f32.mxu1 %v2421_v44  ;;  %v2418_v0 = vmul.f32 %v2354_v9, %v6412_v59  ;;  %v2292_v37 = vsel %vm2164_vm11, %v2228_v20, %v2100_v32  ;;  %v2295_v42 = vsel %vm2167_vm12, %v2231_v36, %v2103_v6 }
 0x321   : > { %v2356_v39 = vadd.f32 1.0, %v2292_v37  ;;  %v2359_v16 = vadd.f32 1.0, %v2295_v42  ;;  %v2233_v34 = vsub.f32 0.0, %v2105_v8  ;;  %v2038_v22 = vmul.f32 %v6413_v31, %v1718_v62  ;;  %2787 = vst [vmem:[%s5702_s10] sm:$0xff] %v2709_v53 }
 0x322   : > { %vm2169_vm13 = vcmp.lt.f32.partialorder %v6414_v11, 0.0  ;;  %2632 = vmatmul.mubr.f32.gmra.mrb[60].mxu0 %v2418_v0  ;;  %v1592_v47 = vmul.f32 %v6404_v43, %v1528_v51  ;;  %v761_v17 = vmul.f32 0.5, %v6416_v49  ;;  %vm2166_vm14 = vcmp.lt.f32.partialorder %v6417_v55, 0.0 }
 0x323   : > { %v2420_v19 = vmul.f32 %v2356_v39, %v6415_v58  ;;  %v2423_v45 = vmul.f32 %v2359_v16, %v759_v48  ;;  %v2297_v54 = vsel %vm2169_vm13, %v2233_v34, %v2105_v8  ;;  %v2102_v13 = vsub.f32 1.0, %v2038_v22 }
 0x324   : > { %v2361_v52 = vadd.f32 1.0, %v2297_v54  ;;  %v1656_v4 = vadd.f32 0.2548296, %v1592_v47  ;;  %v758_v25 = vmul.f32 0.5, %v6418_v29  ;;  %v2967_v28 = vadd.f32 %v2966_v30, %v2965_v63 }
 0x325   : > { %2777 = vmatmul.mubr.f32.gmra.mrb[60].mxu1 %v2420_v19  ;;  %2636 = vmatprep.mubr.f32.mxu0 %v2423_v45  ;;  %v2230_v33 = vsub.f32 0.0, %v2102_v13  ;;  %v3047_v15 = vadd.f32 %v3046_v10, %v3045_v5  ;;  %vm2168_vm15 = vcmp.lt.f32.partialorder %v6419_v40, 0.0  ;;  %v760_v1 = vmul.f32 0.5, %v6420_v27 }
 0x326   : > { %v2425_v56 = vmul.f32 %v2361_v52, %v761_v17  ;;  %v1720_v21 = vmul.f32 %v6404_v43, %v1656_v4  ;;  %v2569_v46 = vadd.f32 %v2967_v28, %v5672_v57 }
 0x327   : > { %v2294_v2 = vsel %vm2166_vm14, %v2230_v33, %v2102_v13 }
 0x328   : > { %2781 = vmatprep.mubr.f32.mxu1 %v2425_v56  ;;  %v2358_v61 = vadd.f32 1.0, %v2294_v2  ;;  %v2040_v24 = vmul.f32 %v5192_v14, %v1720_v21  ;;  %v2714_v41 = vadd.f32 %v3047_v15, %v2569_v46 }
 0x32a   : > { %v2422_v38 = vmul.f32 %v2358_v61, %v758_v25  ;;  %v2104_v35 = vsub.f32 1.0, %v2040_v24  ;;  %2788 = vst [vmem:[%s5702_s10 + $0x8] sm:$0xff] %v2714_v41 }
 0x32c   : > { %2637 = vmatmul.mubr.f32.gmra.mrb[62].mxu0 %v2422_v38  ;;  %v2232_v43 = vsub.f32 0.0, %v2104_v35 }
 0x32e   : > { %v2296_v26 = vsel %vm2168_vm15, %v2232_v43, %v2104_v35 }
 0x32f   : > { %v2360_v32 = vadd.f32 1.0, %v2296_v26 }
 0x331   : > { %v2424_v14 = vmul.f32 %v2360_v32, %v760_v1 }
 0x333   : > { %2782 = vmatmul.mubr.f32.gmra.mrb[62].mxu1 %v2424_v14 }
 0x33a   : > { %v2968_v6 = vpop.f32.mrb[36].mxu0  ;;  %v3048_v23 = vpop.f32.mrb[36].mxu1 }
 0x33b   : > { %v2969_v7 = vpop.f32.mrb[37].mxu0  ;;  %v3049_v3 = vpop.f32.mrb[37].mxu1 }
 0x33c   : > { %v2970_v60 = vadd.f32 %v2969_v7, %v2968_v6  ;;  %v3050_v12 = vadd.f32 %v3049_v3, %v3048_v23 }
 0x33e   : > { %v2574_v18 = vadd.f32 %v2970_v60, %v5672_v57  ;;  %v2971_v44 = vpop.f32.mrb[38].mxu0 }
 0x33f   : > { %v2972_v9 = vpop.f32.mrb[39].mxu0 }
 0x340   : > { %v2719_v20 = vadd.f32 %v3050_v12, %v2574_v18  ;;  %v2973_v36 = vadd.f32 %v2972_v9, %v2971_v44 }
 0x342   : > { %2789 = vst [vmem:[%s5702_s10 + $0x10] sm:$0xff] %v2719_v20  ;;  %v3051_v8 = vpop.f32.mrb[38].mxu1  ;;  %v2579_v62 = vadd.f32 %v2973_v36, %v5672_v57 }
 0x343   : > { %v3052_v51 = vpop.f32.mrb[39].mxu1 }
 0x344   : > { %v3053_v53 = vadd.f32 %v3052_v51, %v3051_v8 }
 0x346   : > { %v2724_v50 = vadd.f32 %v3053_v53, %v2579_v62 }
 0x348   : > { %2790 = vst [vmem:[%s5702_s10 + $0x18] sm:$0xff] %v2724_v50 }
 0x359   : > { %v2974_v48 = vpop.f32.mrb[40].mxu0 }
 0x35a   : > { %v3054_v59 = vpop.f32.mrb[40].mxu1  ;;  %v2975_v0 = vpop.f32.mrb[41].mxu0 }
 0x35b   : > { %v2976_v37 = vadd.f32 %v2975_v0, %v2974_v48  ;;  %v3055_v42 = vpop.f32.mrb[41].mxu1 }
 0x35c   : > { %v3056_v39 = vadd.f32 %v3055_v42, %v3054_v59 }
 0x35d   : > { %v2584_v16 = vadd.f32 %v2976_v37, %v5672_v57 }
 0x35f   : > { %v2729_v34 = vadd.f32 %v3056_v39, %v2584_v16  ;;  %v2977_v31 = vpop.f32.mrb[42].mxu0 }
 0x360   : > { %v2978_v22 = vpop.f32.mrb[43].mxu0 }
 0x361   : > { %2791 = vst [vmem:[%s5702_s10 + $0x20] sm:$0xff] %v2729_v34  ;;  %v2979_v11 = vadd.f32 %v2978_v22, %v2977_v31 }
 0x362   : > { %v3057_v47 = vpop.f32.mrb[42].mxu1 }
 0x363   : > { %v2589_v58 = vadd.f32 %v2979_v11, %v5672_v57  ;;  %v3058_v19 = vpop.f32.mrb[43].mxu1 }
 0x364   : > { %v3059_v45 = vadd.f32 %v3058_v19, %v3057_v47 }
 0x366   : > { %v2734_v54 = vadd.f32 %v3059_v45, %v2589_v58 }
 0x368   : > { %2792 = vst [vmem:[%s5702_s10 + $0x28] sm:$0xff] %v2734_v54 }
 0x379   : > { %v2980_v13 = vpop.f32.mrb[44].mxu0  ;;  %v3060_v49 = vpop.f32.mrb[44].mxu1 }
 0x37a   : > { %v2981_v17 = vpop.f32.mrb[45].mxu0  ;;  %v3061_v52 = vpop.f32.mrb[45].mxu1 }
 0x37b   : > { %v2982_v4 = vadd.f32 %v2981_v17, %v2980_v13  ;;  %v3062_v33 = vadd.f32 %v3061_v52, %v3060_v49 }
 0x37d   : > { %v2594_v55 = vadd.f32 %v2982_v4, %v5672_v57 }
 0x37f   : > { %v2739_v56 = vadd.f32 %v3062_v33, %v2594_v55  ;;  %v2983_v21 = vpop.f32.mrb[46].mxu0 }
 0x380   : > { %v2984_v63 = vpop.f32.mrb[47].mxu0 }
 0x381   : > { %2793 = vst [vmem:[%s5702_s10 + $0x30] sm:$0xff] %v2739_v56  ;;  %v2985_v2 = vadd.f32 %v2984_v63, %v2983_v21 }
 0x383   : > { %v2599_v29 = vadd.f32 %v2985_v2, %v5672_v57 }
 0x385   : > { %v3063_v30 = vpop.f32.mrb[46].mxu1 }
 0x386   : > { %v3064_v25 = vpop.f32.mrb[47].mxu1 }
 0x387   : > { %v3065_v61 = vadd.f32 %v3064_v25, %v3063_v30 }
 0x389   : > { %v2744_v24 = vadd.f32 %v3065_v61, %v2599_v29 }
 0x38b   : > { %2794 = vst [vmem:[%s5702_s10 + $0x38] sm:$0xff] %v2744_v24 }
 0x398   : > { %v2986_v5 = vpop.f32.mrb[48].mxu0 }
 0x399   : > { %v3066_v28 = vpop.f32.mrb[48].mxu1  ;;  %v2987_v10 = vpop.f32.mrb[49].mxu0 }
 0x39a   : > { %v3067_v38 = vpop.f32.mrb[49].mxu1  ;;  %v2988_v35 = vadd.f32 %v2987_v10, %v2986_v5 }
 0x39b   : > { %v3068_v46 = vadd.f32 %v3067_v38, %v3066_v28 }
 0x39c   : > { %v2604_v15 = vadd.f32 %v2988_v35, %v5672_v57 }
 0x39e   : > { %v2749_v43 = vadd.f32 %v3068_v46, %v2604_v15 }
 0x3a0   : > { %v2989_v41 = vpop.f32.mrb[50].mxu0  ;;  %2795 = vst [vmem:[%s5702_s10 + $0x40] sm:$0xff] %v2749_v43 }
 0x3a1   : > { %v2990_v40 = vpop.f32.mrb[51].mxu0 }
 0x3a2   : > { %v2991_v26 = vadd.f32 %v2990_v40, %v2989_v41 }
 0x3a4   : > { %v2609_v1 = vadd.f32 %v2991_v26, %v5672_v57 }
 0x3a5   : > { %v3069_v27 = vpop.f32.mrb[50].mxu1 }
 0x3a6   : > { %v3070_v32 = vpop.f32.mrb[51].mxu1 }
 0x3a7   : > { %v3071_v14 = vadd.f32 %v3070_v32, %v3069_v27 }
 0x3a9   : > { %v2754_v6 = vadd.f32 %v3071_v14, %v2609_v1 }
 0x3ab   : > { %2796 = vst [vmem:[%s5702_s10 + $0x48] sm:$0xff] %v2754_v6 }
 0x3b7   : > { %v2992_v23 = vpop.f32.mrb[52].mxu0 }
 0x3b8   : > { %v3072_v7 = vpop.f32.mrb[52].mxu1  ;;  %v2993_v3 = vpop.f32.mrb[53].mxu0 }
 0x3b9   : > { %v2994_v60 = vadd.f32 %v2993_v3, %v2992_v23  ;;  %v3073_v12 = vpop.f32.mrb[53].mxu1 }
 0x3ba   : > { %v3074_v18 = vadd.f32 %v3073_v12, %v3072_v7 }
 0x3bb   : > { %v2614_v44 = vadd.f32 %v2994_v60, %v5672_v57 }
 0x3bd   : > { %v2759_v9 = vadd.f32 %v3074_v18, %v2614_v44 }
 0x3bf   : > { %v2995_v20 = vpop.f32.mrb[54].mxu0  ;;  %2797 = vst [vmem:[%s5702_s10 + $0x50] sm:$0xff] %v2759_v9 }
 0x3c0   : > { %v2996_v36 = vpop.f32.mrb[55].mxu0 }
 0x3c1   : > { %v2997_v8 = vadd.f32 %v2996_v36, %v2995_v20 }
 0x3c3   : > { %v2619_v51 = vadd.f32 %v2997_v8, %v5672_v57 }
 0x3c6   : > { %v3075_v62 = vpop.f32.mrb[54].mxu1 }
 0x3c7   : > { %v3076_v53 = vpop.f32.mrb[55].mxu1 }
 0x3c8   : > { %v3077_v50 = vadd.f32 %v3076_v53, %v3075_v62 }
 0x3ca   : > { %v2764_v48 = vadd.f32 %v3077_v50, %v2619_v51 }
 0x3cc   : > { %2798 = vst [vmem:[%s5702_s10 + $0x58] sm:$0xff] %v2764_v48 }
 0x3d6   : > { %v2998_v59 = vpop.f32.mrb[56].mxu0 }
 0x3d7   : > { %v2999_v0 = vpop.f32.mrb[57].mxu0 }
 0x3d8   : > { %v3078_v37 = vpop.f32.mrb[56].mxu1  ;;  %v3000_v42 = vadd.f32 %v2999_v0, %v2998_v59 }
 0x3d9   : > { %v3079_v39 = vpop.f32.mrb[57].mxu1 }
 0x3da   : > { %v2624_v16 = vadd.f32 %v3000_v42, %v5672_v57  ;;  %v3080_v34 = vadd.f32 %v3079_v39, %v3078_v37 }
 0x3dc   : > { %v2769_v31 = vadd.f32 %v3080_v34, %v2624_v16 }
 0x3de   : > { %2799 = vst [vmem:[%s5702_s10 + $0x60] sm:$0xff] %v2769_v31 }
 0x3df   : > { %v3001_v22 = vpop.f32.mrb[58].mxu0 }
 0x3e0   : > { %v3002_v11 = vpop.f32.mrb[59].mxu0 }
 0x3e1   : > { %v3003_v47 = vadd.f32 %v3002_v11, %v3001_v22 }
 0x3e3   : > { %v2629_v19 = vadd.f32 %v3003_v47, %v5672_v57 }
 0x3e7   : > { %v3081_v58 = vpop.f32.mrb[58].mxu1 }
 0x3e8   : > { %v3082_v45 = vpop.f32.mrb[59].mxu1 }
 0x3e9   : > { %v3083_v54 = vadd.f32 %v3082_v45, %v3081_v58 }
 0x3eb   : > { %v2774_v13 = vadd.f32 %v3083_v54, %v2629_v19 }
 0x3ed   : > { %2800 = vst [vmem:[%s5702_s10 + $0x68] sm:$0xff] %v2774_v13 }
 0x3f5   : > { %v3004_v49 = vpop.f32.mrb[60].mxu0 }
 0x3f6   : > { %v3005_v17 = vpop.f32.mrb[61].mxu0 }
 0x3f7   : > { %v3006_v52 = vadd.f32 %v3005_v17, %v3004_v49 }
 0x3f8   : > { %v3084_v4 = vpop.f32.mrb[60].mxu1 }
 0x3f9   : > { %v2634_v33 = vadd.f32 %v3006_v52, %v5672_v57  ;;  %v3085_v55 = vpop.f32.mrb[61].mxu1 }
 0x3fa   : > { %v3086_v56 = vadd.f32 %v3085_v55, %v3084_v4 }
 0x3fc   : > { %v2779_v21 = vadd.f32 %v3086_v56, %v2634_v33 }
 0x3fe   : > { %2801 = vst [vmem:[%s5702_s10 + $0x70] sm:$0xff] %v2779_v21 }
 0x3ff   : > { %v3007_v63 = vpop.f32.mrb[62].mxu0 }
 0x400   : > { %v3008_v2 = vpop.f32.mrb[63].mxu0 }
 0x401   : > { %v3009_v30 = vadd.f32 %v3008_v2, %v3007_v63 }
 0x403   : > { %v2639_v25 = vadd.f32 %v3009_v30, %v5672_v57 }
 0x406   : > { %v3087_v29 = vpop.f32.mrb[62].mxu1 }
 0x407   : > { %v3088_v61 = vpop.f32.mrb[63].mxu1 }
 0x408   : > { %v3089_v24 = vadd.f32 %v3088_v61, %v3087_v29 }
 0x40a   : > { %v2784_v5 = vadd.f32 %v3089_v24, %v2639_v25 }
 0x40c   : > { %2802 = vst [vmem:[%s5702_s10 + $0x78] sm:$0xff] %v2784_v5 }
 0x40d   : > { %3647 = shalt.err (!%p3644_p2)
}
 0x40e   : > { %s3648_s14 = scalar_lea.hbm %s5749_s11, 2048  ;;  %s3652_s12 = scalar_lea.hbm %s5801_s5, 4096 }
 0x40f   : > { %p3649_p13 = scmp.ne.s32.totalorder %s5749_s11, %s3648_s14  ;;  %p3653_p4 = scmp.lt.u32.totalorder %s5749_s11, %s5801_s5 }
 0x410   : > { %p3654_p7 = scmp.lt.u32.totalorder %s3652_s12, %s3648_s14  ;;  %p3656_p11 = scmp.lt.u32.totalorder %s3648_s14, %s5749_s11 }
 0x411   : > { %p3650_p6 = pnand %p3649_p13, %p6421_p0 }
 0x412   : > { %p3655_p8 = por %p3654_p7, %p3653_p4 }
 0x413   : > { %p3651_p10 = pneg %p3650_p6 }
 0x414   : > { %p3657_p1 = por %p3656_p11, %p3655_p8 }
 0x416   : > { %p3658_p3 = pnand %p3657_p1, %p3651_p10 }
 0x418   : > { %3661 = shalt.err (!%p3658_p3)
}
 0x419   : > { %s3715_s28 = smov 128   ;;  %s3716_s9 = smov 8  }
 0x41a   : > { %3228 = dma.vmem_to_hbm [thread:$0]  (%p6421_p0), %s5751_s15, 2048, %s5749_s11, %s2804_s23, %s3715_s28, %s3715_s28, %s3716_s9  }
 0x41b PF: > { %s2832_s30 = sand.u32 1, %s3692_s18   ;;  %p6422_p5 = scmp.ne.s32.totalorder %s5966_s25, 0 }
 0x41c   : > { %p6423_p9 = scmp.ge.s32.totalorder %s3704_s21, 2  ;;  %s2833_s7 = scalar_lea.sflag [#allocation4], %s2832_s30 }
 0x41e   : > { %p3242_p12 = pnand %p6423_p9, %p6422_p5 }
 0x420   : > { %3687 = dma.done.wait (!%p3242_p12), %s2833_s7, 2048  }
 0x421   : > { %3689 = vsyncadd (!%p3242_p12), %s2833_s7, 4294965248  ;;  %p19_p2 = scmp.ge.s32.totalorder %s3860_s16, 4   ;;  %s6424_s18 = smov %s3696_s19 }
 0x422   : > { %s6425_s19 = smov %s3700_s20  ;;  %s6426_s20 = smov %s3869_s27 }
 0x423   : > { %s6427_s21 = smov %s3860_s16  ;;  %21 = sbr.rel (!%p19_p2) target bundleno = 6 (0x6), region = 93 }
 0x42a   :  { %2838 = vsyncpa [#allocation3], 1 }
 0x42b   :  { %2840 = vsyncpa [#allocation3 + $0x1], 1 }
 0x42c   :  { %2841 = vsyncpa [#allocation6], 1 }
 0x42d   :  { %2842 = vsyncpa [#allocation4], 1 }
 0x42e   :  { %2844 = vsyncpa [#allocation4 + $0x1], 1 }

</bundles_post_ra>
